<compile_context>
chip_gen: v6e
topology: v6e:2x2x1
jax: 0.10.0
libtpu: 0.0.40
codegen_flags: <defaults>
</compile_context>

<pallas_src>
import functools

import jax
import jax.numpy as jnp
from jax.experimental import pallas as pl
from jax.experimental.pallas import tpu as pltpu  # noqa: F401  (not needed for this grid-less kernel)


D_PAD = 128          # lane-dense (padded) feature width used for every layer
AL_COL = D_PAD - 2   # lane of each relation block holding  h @ (Wsrc_r @ attn_l_r)
AR_COL = D_PAD - 1   # lane of each relation block holding  h @ (Wdst_r @ attn_r_r)


def _rgcn_fused_kernel(x_ref, w_ref, adj_ref, prm_ref, out_ref, *,
                       num_rel, d_outs, relu_flags):
    """All layers fused; everything resident in VMEM (grid-less call).

    x_ref:   (N, D_PAD)             f32 input node features
    w_ref:   (L, D_PAD, R*D_PAD)    bf16 fc_src weights + folded attention columns
    adj_ref: (L, N, R*N)            f32 {0,1} masks, lane-packed [dst, rel*N+src]
    prm_ref: (L, 8, D_PAD)          row0 = bias, row1 = ln_gamma, row2 = ln_beta
    out_ref: (N, D_PAD)             f32 final-layer features (zero-padded lanes)
    """
    n = x_ref.shape[0]
    num_layers = len(d_outs)
    lane = jax.lax.broadcasted_iota(jnp.int32, (1, D_PAD), 1)

    h = x_ref[...]                                            # (N, D_PAD) f32

    for l in range(num_layers):                               # static unroll
        # --- one wide bf16 MXU matmul: all relations' fc_src + attention cols
        w = w_ref[l]                                          # (D_PAD, R*D_PAD) bf16
        f_all = jnp.dot(h.astype(jnp.bfloat16), w,
                        preferred_element_type=jnp.float32)   # (N, R*D_PAD) f32

        # --- lane-packed attention logits: e[i, r*N + j] = er_r[i] + el_r[j]
        el_row = jnp.concatenate(
            [f_all[:, r * D_PAD + AL_COL][None, :] for r in range(num_rel)],
            axis=1)                                           # (1, R*N)
        er_pack = jnp.concatenate(
            [jnp.broadcast_to(f_all[:, r * D_PAD + AR_COL][:, None], (n, n))
             for r in range(num_rel)], axis=1)                # (N, R*N)
        e = er_pack + el_row
        e = jnp.where(e >= 0, e, 0.2 * e)                     # LeakyReLU(0.2)
        mask = adj_ref[l] > 0.5                               # (N, R*N)
        e = jnp.where(mask, e, jnp.float32(-1e30))

        # --- per-relation edge softmax (max + denom segmented; exp on full tile)
        m_pack = jnp.concatenate(
            [jnp.broadcast_to(
                jnp.max(e[:, r * n:(r + 1) * n], axis=-1, keepdims=True), (n, n))
             for r in range(num_rel)], axis=1)                # (N, R*N)
        p = jnp.where(mask, jnp.exp(e - m_pack), 0.0)         # zero-in-degree safe

        alpha_blocks = []
        for r in range(num_rel):
            pr = p[:, r * n:(r + 1) * n]
            denom = jnp.sum(pr, axis=-1, keepdims=True)
            alpha_blocks.append(
                pr * pl.reciprocal(jnp.maximum(denom, 1e-30), approx=True))
        alpha = jnp.concatenate(alpha_blocks, axis=1)         # (N, R*N) f32

        # --- single K = R*N contraction replaces the per-relation alpha@fsrc loop
        fsrc_st = jnp.concatenate(
            [f_all[:, r * D_PAD:(r + 1) * D_PAD] for r in range(num_rel)],
            axis=0).astype(jnp.bfloat16)                      # (R*N, D_PAD)
        acc = jnp.dot(alpha.astype(jnp.bfloat16), fsrc_st,
                      preferred_element_type=jnp.float32)     # (N, D_PAD) f32

        # --- bias (summed over relations in the wrapper) + ReLU + masked LayerNorm
        prm = prm_ref[l]                                      # (8, D_PAD)
        hact = acc + prm[0:1]
        if relu_flags[l]:
            hact = jnp.maximum(hact, 0.0)

        # num_heads == 1 -> mean over heads is identity.
        # Lanes AL_COL/AR_COL of acc carry folded-attention junk -> mask them out.
        d_out = d_outs[l]
        fmask = (lane < d_out).astype(jnp.float32)            # (1, D_PAD)
        hact = hact * fmask
        inv_cnt = 1.0 / d_out
        mean = jnp.sum(hact, axis=-1, keepdims=True) * inv_cnt
        diff = (hact - mean) * fmask
        var = jnp.sum(diff * diff, axis=-1, keepdims=True) * inv_cnt
        h = diff * jax.lax.rsqrt(var + 1e-5) * prm[1:2] + prm[2:3]  # padded lanes -> 0

    out_ref[...] = h


@jax.jit
def rgcn_sampling_forward(x, adjs, layer_params):
    """RGCNSampling.forward for a single node type (dense relation masks).

    x:            (N, Din) float32 node features
    adjs:         list (one per layer) of (R, N, N) float32 {0,1} masks [rel, dst, src]
    layer_params: list of per-layer dicts (see init_layer_params)
    """
    n = x.shape[0]
    num_layers = len(layer_params)
    num_rel = int(adjs[0].shape[0])
    d_out_last = layer_params[-1]["w_src"].shape[-1]

    w_all, prm_all, d_outs = [], [], []
    for p in layer_params:
        w_src, w_dst = p["w_src"], p["w_dst"]                  # (R, Din, Dout)
        _, d_in, d_out = w_src.shape
        assert d_in <= D_PAD and d_out <= AL_COL               # folded cols stay clear
        d_outs.append(int(d_out))
        attn_l = p["attn_l"][:, 0, :]                          # (R, Dout)
        attn_r = p["attn_r"][:, 0, :]

        # fc_src weights + folded attention projections, zero-padded to 128 lanes.
        a_l = jnp.einsum("rio,ro->ri", w_src, attn_l)          # (R, Din) = Wsrc_r @ attn_l_r
        a_r = jnp.einsum("rio,ro->ri", w_dst, attn_r)          # (R, Din) = Wdst_r @ attn_r_r
        w_pad = jnp.zeros((num_rel, D_PAD, D_PAD), jnp.float32)
        w_pad = w_pad.at[:, :d_in, :d_out].set(w_src)
        w_pad = w_pad.at[:, :d_in, AL_COL].set(a_l)
        w_pad = w_pad.at[:, :d_in, AR_COL].set(a_r)
        w_all.append(w_pad.transpose(1, 0, 2).reshape(D_PAD, num_rel * D_PAD))

        # bias/gamma/beta fused into one (8, D_PAD) slab (GAT biases summed over rel).
        bias = (jnp.sum(p["gat_bias"][:, 0, :], axis=0, keepdims=True)
                + p["ntype_bias"])                             # (1, Dout)
        prm = jnp.zeros((8, D_PAD), jnp.float32)
        prm = prm.at[0, :d_out].set(bias[0])
        prm = prm.at[1, :d_out].set(p["ln_gamma"][0])
        prm = prm.at[2, :d_out].set(p["ln_beta"][0])
        prm_all.append(prm)

    w_all = jnp.stack(w_all).astype(jnp.bfloat16)              # (L, D_PAD, R*D_PAD) bf16
    prm_all = jnp.stack(prm_all)                               # (L, 8, D_PAD) f32
    # Lane-pack adjacency: [rel, dst, src] -> [dst, rel*N + src].
    adj_all = jnp.stack([a.transpose(1, 0, 2).reshape(n, num_rel * n)
                         for a in adjs])                       # (L, N, R*N) f32
    x_pad = jnp.zeros((n, D_PAD), jnp.float32).at[:, :x.shape[1]].set(x)

    relu_flags = tuple([True] * (num_layers - 1) + [False])    # ReLU on all but last
    kernel = functools.partial(_rgcn_fused_kernel, num_rel=num_rel,
                               d_outs=tuple(d_outs), relu_flags=relu_flags)

    # Grid-less call: every operand is a single whole block resident in VMEM
    # (total working set well under 1 MiB at these shapes).
    out = pl.pallas_call(
        kernel,
        out_shape=jax.ShapeDtypeStruct((n, D_PAD), jnp.float32),
    )(x_pad, w_all, adj_all, prm_all)

    return out[:, :d_out_last]


def init_layer_params(key, num_rel, d_in, d_out):
    """Deterministic parameter init matching the module's parameter shapes."""
    ks = jax.random.split(key, 6)
    scale_fc = (2.0 / (d_in + d_out)) ** 0.5
    return {
        # GATConv fc_src / fc_dst (xavier-like), per relation
        "w_src": scale_fc * jax.random.normal(ks[0], (num_rel, d_in, d_out), jnp.float32),
        "w_dst": scale_fc * jax.random.normal(ks[1], (num_rel, d_in, d_out), jnp.float32),
        # GATConv attn_l / attn_r: (1, num_heads=1, d_out) per relation
        "attn_l": 0.1 * jax.random.normal(ks[2], (num_rel, 1, d_out), jnp.float32),
        "attn_r": 0.1 * jax.random.normal(ks[3], (num_rel, 1, d_out), jnp.float32),
        # GATConv bias: (num_heads * d_out,) per relation
        "gat_bias": jnp.zeros((num_rel, 1, d_out), jnp.float32),
        # RelGraphConvLayer bias_dict[ntype]: (1, d_out), normal init
        "ntype_bias": jax.random.normal(ks[4], (1, d_out), jnp.float32),
        # LayerNorm affine params
        "ln_gamma": jnp.ones((1, d_out), jnp.float32),
        "ln_beta": jnp.zeros((1, d_out), jnp.float32),
    }


def _reference_forward(x, adjs, layer_params, activations):
    """Pure-JAX f32 reference with the original (un-fused) math, for validation."""
    h = x
    for adj, params, act in zip(adjs, layer_params, activations):
        num_rel, _, d_out = params["w_src"].shape
        acc = jnp.zeros((h.shape[0], d_out), jnp.float32)
        for r in range(num_rel):
            fsrc = h @ params["w_src"][r]
            fdst = h @ params["w_dst"][r]
            el = jnp.sum(fsrc * params["attn_l"][r], axis=-1)
            er = jnp.sum(fdst * params["attn_r"][r], axis=-1)
            e = er[:, None] + el[None, :]
            e = jnp.where(e >= 0, e, 0.2 * e)
            mask = adj[r] > 0.5
            e = jnp.where(mask, e, -1e30)
            m = jnp.max(e, axis=-1, keepdims=True)
            p = jnp.where(mask, jnp.exp(e - m), 0.0)
            alpha = p / jnp.maximum(jnp.sum(p, axis=-1, keepdims=True), 1e-30)
            acc = acc + alpha @ fsrc + params["gat_bias"][r]
        hh = acc + params["ntype_bias"]
        if act:
            hh = jnp.maximum(hh, 0.0)
        mean = jnp.mean(hh, axis=-1, keepdims=True)
        var = jnp.mean((hh - mean) ** 2, axis=-1, keepdims=True)
        h = ((hh - mean) * jax.lax.rsqrt(var + 1e-5) * params["ln_gamma"]
             + params["ln_beta"])
    return h


if __name__ == "__main__":
    key = jax.random.PRNGKey(0)

    N = 64            # nodes per block
    H_DIM = 32        # hidden feature size
    NUM_CLASSES = 16  # output classes
    NUM_REL = 2       # relations (e.g. "calls", "uses")
    NUM_HIDDEN = 1    # num_hidden_layers -> total layers = NUM_HIDDEN + 2

    k_feat, k_adj, k_params = jax.random.split(key, 3)

    # Node features for the single node type.
    x = jax.random.normal(k_feat, (N, H_DIM), jnp.float32)

    # One dense adjacency mask per relation per layer; self-edges added so
    # every dst node has at least one incoming edge.
    adj_keys = jax.random.split(k_adj, NUM_HIDDEN + 2)
    eye = jnp.eye(N, dtype=jnp.float32)
    adjs = []
    for kk in adj_keys:
        a = (jax.random.uniform(kk, (NUM_REL, N, N)) < 0.1).astype(jnp.float32)
        adjs.append(jnp.maximum(a, eye[None]))

    # Layers: [h->h, relu] x (1 + NUM_HIDDEN), then [h->num_classes, no act],
    # each followed by LayerNorm (as in RGCNSampling.__init__).
    layer_dims = [(H_DIM, H_DIM)] * (1 + NUM_HIDDEN) + [(H_DIM, NUM_CLASSES)]
    activations = [True] * (1 + NUM_HIDDEN) + [False]

    param_keys = jax.random.split(k_params, len(layer_dims))
    layer_params = [
        init_layer_params(pk, NUM_REL, din, dout)
        for pk, (din, dout) in zip(param_keys, layer_dims)
    ]

    out = rgcn_sampling_forward(x, adjs, layer_params)
    out = jax.block_until_ready(out)

    assert out.shape == (N, NUM_CLASSES)
    assert bool(jnp.all(jnp.isfinite(out)))

    # Validate against the un-fused pure-JAX f32 reference.  The kernel runs its
    # matmuls in bf16 (f32 accumulation) and uses the EUP approximate reciprocal
    # in the softmax, so the tolerance is loose.
    ref = _reference_forward(x, adjs, layer_params, activations)
    max_err = float(jnp.max(jnp.abs(out - ref)))
    assert bool(jnp.allclose(out, ref, atol=1e-1, rtol=1e-1)), max_err

    print("KERNEL_OK")
</pallas_src>

<mosaic_0001>
module attributes {stable_mosaic.version = 11 : i64} {
  func.func @_rgcn_fused_kernel(%arg0: memref<64x128xf32, #tpu.memory_space<vmem>>, %arg1: memref<3x128x256xbf16, #tpu.memory_space<vmem>>, %arg2: memref<3x64x128xf32, #tpu.memory_space<vmem>>, %arg3: memref<3x8x128xf32, #tpu.memory_space<vmem>>, %arg4: memref<64x128xf32, #tpu.memory_space<vmem>>) attributes {dimension_semantics = [], scalar_prefetch = 0 : i64, scratch_operands = 0 : i64, tpu.core_type = #tpu.core_type<tc>} {
    %0 = tpu.iota {dimensions = array<i32: 1>} : vector<1x128xi32>
    %c0 = arith.constant 0 : index
    %c0_0 = arith.constant 0 : index
    %1 = vector.load %arg0[%c0, %c0_0] : memref<64x128xf32, #tpu.memory_space<vmem>>, vector<64x128xf32>
    %c0_1 = arith.constant 0 : index
    %c0_2 = arith.constant 0 : index
    %c0_3 = arith.constant 0 : index
    %2 = vector.load %arg1[%c0_1, %c0_2, %c0_3] : memref<3x128x256xbf16, #tpu.memory_space<vmem>>, vector<1x128x256xbf16>
    %3 = vector.shape_cast %2 : vector<1x128x256xbf16> to vector<128x256xbf16>
    %4 = arith.truncf %1 : vector<64x128xf32> to vector<64x128xbf16>
    %cst = arith.constant dense<0.000000e+00> : vector<64x256xf32>
    %5 = tpu.matmul %4, %3, %cst {dimension_numbers = #tpu.dot_dimension_numbers<[1], [0], [0], [1], [0, 0, 1, 1], [], []>} : vector<64x128xbf16>, vector<128x256xbf16>, vector<64x256xf32> -> vector<64x256xf32>
    %6 = vector.extract_strided_slice %5 {offsets = [0, 126], sizes = [64, 1], strides = [1, 1]} : vector<64x256xf32> to vector<64x1xf32>
    %7 = vector.shape_cast %6 : vector<64x1xf32> to vector<64xf32>
    %8 = vector.shape_cast %7 : vector<64xf32> to vector<1x64xf32>
    %9 = vector.extract_strided_slice %5 {offsets = [0, 254], sizes = [64, 1], strides = [1, 1]} : vector<64x256xf32> to vector<64x1xf32>
    %10 = vector.shape_cast %9 : vector<64x1xf32> to vector<64xf32>
    %11 = vector.shape_cast %10 : vector<64xf32> to vector<1x64xf32>
    %12 = tpu.concatenate %8, %11 in 1 : vector<1x64xf32>, vector<1x64xf32> -> vector<1x128xf32>
    %13 = vector.extract_strided_slice %5 {offsets = [0, 127], sizes = [64, 1], strides = [1, 1]} : vector<64x256xf32> to vector<64x1xf32>
    %14 = vector.shape_cast %13 : vector<64x1xf32> to vector<64xf32>
    %15 = vector.shape_cast %14 : vector<64xf32> to vector<64x1xf32>
    %16 = vector.shape_cast %15 : vector<64x1xf32> to vector<64x1xf32>
    %17 = vector.broadcast %16 : vector<64x1xf32> to vector<64x64xf32>
    %18 = vector.extract_strided_slice %5 {offsets = [0, 255], sizes = [64, 1], strides = [1, 1]} : vector<64x256xf32> to vector<64x1xf32>
    %19 = vector.shape_cast %18 : vector<64x1xf32> to vector<64xf32>
    %20 = vector.shape_cast %19 : vector<64xf32> to vector<64x1xf32>
    %21 = vector.shape_cast %20 : vector<64x1xf32> to vector<64x1xf32>
    %22 = vector.broadcast %21 : vector<64x1xf32> to vector<64x64xf32>
    %23 = tpu.concatenate %17, %22 in 1 : vector<64x64xf32>, vector<64x64xf32> -> vector<64x128xf32>
    %24 = vector.broadcast %12 : vector<1x128xf32> to vector<64x128xf32>
    %25 = arith.addf %23, %24 : vector<64x128xf32>
    %cst_4 = arith.constant 0.000000e+00 : f32
    %26 = vector.broadcast %cst_4 : f32 to vector<64x128xf32>
    %27 = arith.cmpf oge, %25, %26 : vector<64x128xf32>
    %cst_5 = arith.constant 2.000000e-01 : f32
    %28 = vector.broadcast %cst_5 : f32 to vector<64x128xf32>
    %29 = arith.mulf %28, %25 : vector<64x128xf32>
    %30 = arith.select %27, %25, %29 : vector<64x128xi1>, vector<64x128xf32>
    %c0_6 = arith.constant 0 : index
    %c0_7 = arith.constant 0 : index
    %c0_8 = arith.constant 0 : index
    %31 = vector.load %arg2[%c0_6, %c0_7, %c0_8] : memref<3x64x128xf32, #tpu.memory_space<vmem>>, vector<1x64x128xf32>
    %32 = vector.shape_cast %31 : vector<1x64x128xf32> to vector<64x128xf32>
    %cst_9 = arith.constant 5.000000e-01 : f32
    %33 = vector.broadcast %cst_9 : f32 to vector<64x128xf32>
    %34 = arith.cmpf ogt, %32, %33 : vector<64x128xf32>
    %cst_10 = arith.constant -1.000000e+30 : f32
    %35 = vector.broadcast %cst_10 : f32 to vector<64x128xf32>
    %36 = arith.select %34, %30, %35 : vector<64x128xi1>, vector<64x128xf32>
    %37 = vector.extract_strided_slice %36 {offsets = [0, 0], sizes = [64, 64], strides = [1, 1]} : vector<64x128xf32> to vector<64x64xf32>
    %cst_11 = arith.constant dense<0xFF800000> : vector<64xf32>
    %38 = vector.multi_reduction <maximumf>, %37, %cst_11 [1] : vector<64x64xf32> to vector<64xf32>
    %39 = vector.shape_cast %38 : vector<64xf32> to vector<64x1xf32>
    %40 = vector.shape_cast %39 : vector<64x1xf32> to vector<64x1xf32>
    %41 = vector.broadcast %40 : vector<64x1xf32> to vector<64x64xf32>
    %42 = vector.extract_strided_slice %36 {offsets = [0, 64], sizes = [64, 64], strides = [1, 1]} : vector<64x128xf32> to vector<64x64xf32>
    %cst_12 = arith.constant dense<0xFF800000> : vector<64xf32>
    %43 = vector.multi_reduction <maximumf>, %42, %cst_12 [1] : vector<64x64xf32> to vector<64xf32>
    %44 = vector.shape_cast %43 : vector<64xf32> to vector<64x1xf32>
    %45 = vector.shape_cast %44 : vector<64x1xf32> to vector<64x1xf32>
    %46 = vector.broadcast %45 : vector<64x1xf32> to vector<64x64xf32>
    %47 = tpu.concatenate %41, %46 in 1 : vector<64x64xf32>, vector<64x64xf32> -> vector<64x128xf32>
    %48 = arith.subf %36, %47 : vector<64x128xf32>
    %49 = math.exp %48 : vector<64x128xf32>
    %cst_13 = arith.constant 0.000000e+00 : f32
    %50 = vector.broadcast %cst_13 : f32 to vector<64x128xf32>
    %51 = arith.select %34, %49, %50 : vector<64x128xi1>, vector<64x128xf32>
    %52 = vector.extract_strided_slice %51 {offsets = [0, 0], sizes = [64, 64], strides = [1, 1]} : vector<64x128xf32> to vector<64x64xf32>
    %cst_14 = arith.constant dense<0.000000e+00> : vector<64xf32>
    %53 = vector.multi_reduction <add>, %52, %cst_14 [1] : vector<64x64xf32> to vector<64xf32>
    %54 = vector.shape_cast %53 : vector<64xf32> to vector<64x1xf32>
    %cst_15 = arith.constant 1.000000e-30 : f32
    %55 = vector.broadcast %cst_15 : f32 to vector<64x1xf32>
    %56 = arith.maximumf %54, %55 : vector<64x1xf32>
    %57 = tpu.reciprocal %56 {approx = true} : vector<64x1xf32> -> vector<64x1xf32>
    %58 = vector.broadcast %57 : vector<64x1xf32> to vector<64x64xf32>
    %59 = arith.mulf %52, %58 : vector<64x64xf32>
    %60 = vector.extract_strided_slice %51 {offsets = [0, 64], sizes = [64, 64], strides = [1, 1]} : vector<64x128xf32> to vector<64x64xf32>
    %cst_16 = arith.constant dense<0.000000e+00> : vector<64xf32>
    %61 = vector.multi_reduction <add>, %60, %cst_16 [1] : vector<64x64xf32> to vector<64xf32>
    %62 = vector.shape_cast %61 : vector<64xf32> to vector<64x1xf32>
    %cst_17 = arith.constant 1.000000e-30 : f32
    %63 = vector.broadcast %cst_17 : f32 to vector<64x1xf32>
    %64 = arith.maximumf %62, %63 : vector<64x1xf32>
    %65 = tpu.reciprocal %64 {approx = true} : vector<64x1xf32> -> vector<64x1xf32>
    %66 = vector.broadcast %65 : vector<64x1xf32> to vector<64x64xf32>
    %67 = arith.mulf %60, %66 : vector<64x64xf32>
    %68 = tpu.concatenate %59, %67 in 1 : vector<64x64xf32>, vector<64x64xf32> -> vector<64x128xf32>
    %69 = vector.extract_strided_slice %5 {offsets = [0, 0], sizes = [64, 128], strides = [1, 1]} : vector<64x256xf32> to vector<64x128xf32>
    %70 = vector.extract_strided_slice %5 {offsets = [0, 128], sizes = [64, 128], strides = [1, 1]} : vector<64x256xf32> to vector<64x128xf32>
    %71 = tpu.concatenate %69, %70 in 0 : vector<64x128xf32>, vector<64x128xf32> -> vector<128x128xf32>
    %72 = arith.truncf %71 : vector<128x128xf32> to vector<128x128xbf16>
    %73 = arith.truncf %68 : vector<64x128xf32> to vector<64x128xbf16>
    %cst_18 = arith.constant dense<0.000000e+00> : vector<64x128xf32>
    %74 = tpu.matmul %73, %72, %cst_18 {dimension_numbers = #tpu.dot_dimension_numbers<[1], [0], [0], [1], [0, 0, 1, 1], [], []>} : vector<64x128xbf16>, vector<128x128xbf16>, vector<64x128xf32> -> vector<64x128xf32>
    %c0_19 = arith.constant 0 : index
    %c0_20 = arith.constant 0 : index
    %c0_21 = arith.constant 0 : index
    %75 = vector.load %arg3[%c0_19, %c0_20, %c0_21] : memref<3x8x128xf32, #tpu.memory_space<vmem>>, vector<1x8x128xf32>
    %76 = vector.shape_cast %75 : vector<1x8x128xf32> to vector<8x128xf32>
    %77 = vector.extract_strided_slice %76 {offsets = [0, 0], sizes = [1, 128], strides = [1, 1]} : vector<8x128xf32> to vector<1x128xf32>
    %78 = vector.broadcast %77 : vector<1x128xf32> to vector<64x128xf32>
    %79 = arith.addf %74, %78 : vector<64x128xf32>
    %cst_22 = arith.constant 0.000000e+00 : f32
    %80 = vector.broadcast %cst_22 : f32 to vector<64x128xf32>
    %81 = arith.maximumf %79, %80 : vector<64x128xf32>
    %c32_i32 = arith.constant 32 : i32
    %82 = vector.broadcast %c32_i32 : i32 to vector<1x128xi32>
    %83 = arith.cmpi slt, %0, %82 : vector<1x128xi32>
    %84 = arith.extui %83 : vector<1x128xi1> to vector<1x128xi32>
    %85 = arith.sitofp %84 : vector<1x128xi32> to vector<1x128xf32>
    %86 = vector.broadcast %85 : vector<1x128xf32> to vector<64x128xf32>
    %87 = arith.mulf %81, %86 : vector<64x128xf32>
    %cst_23 = arith.constant dense<0.000000e+00> : vector<64xf32>
    %88 = vector.multi_reduction <add>, %87, %cst_23 [1] : vector<64x128xf32> to vector<64xf32>
    %89 = vector.shape_cast %88 : vector<64xf32> to vector<64x1xf32>
    %cst_24 = arith.constant 3.125000e-02 : f32
    %90 = vector.broadcast %cst_24 : f32 to vector<64x1xf32>
    %91 = arith.mulf %89, %90 : vector<64x1xf32>
    %92 = vector.broadcast %91 : vector<64x1xf32> to vector<64x128xf32>
    %93 = arith.subf %87, %92 : vector<64x128xf32>
    %94 = vector.broadcast %85 : vector<1x128xf32> to vector<64x128xf32>
    %95 = arith.mulf %93, %94 : vector<64x128xf32>
    %96 = arith.mulf %95, %95 : vector<64x128xf32>
    %cst_25 = arith.constant dense<0.000000e+00> : vector<64xf32>
    %97 = vector.multi_reduction <add>, %96, %cst_25 [1] : vector<64x128xf32> to vector<64xf32>
    %98 = vector.shape_cast %97 : vector<64xf32> to vector<64x1xf32>
    %cst_26 = arith.constant 3.125000e-02 : f32
    %99 = vector.broadcast %cst_26 : f32 to vector<64x1xf32>
    %100 = arith.mulf %98, %99 : vector<64x1xf32>
    %cst_27 = arith.constant 9.99999974E-6 : f32
    %101 = vector.broadcast %cst_27 : f32 to vector<64x1xf32>
    %102 = arith.addf %100, %101 : vector<64x1xf32>
    %103 = math.rsqrt %102 : vector<64x1xf32>
    %104 = vector.broadcast %103 : vector<64x1xf32> to vector<64x128xf32>
    %105 = arith.mulf %95, %104 : vector<64x128xf32>
    %106 = vector.extract_strided_slice %76 {offsets = [1, 0], sizes = [1, 128], strides = [1, 1]} : vector<8x128xf32> to vector<1x128xf32>
    %107 = vector.broadcast %106 : vector<1x128xf32> to vector<64x128xf32>
    %108 = arith.mulf %105, %107 : vector<64x128xf32>
    %109 = vector.extract_strided_slice %76 {offsets = [2, 0], sizes = [1, 128], strides = [1, 1]} : vector<8x128xf32> to vector<1x128xf32>
    %110 = vector.broadcast %109 : vector<1x128xf32> to vector<64x128xf32>
    %111 = arith.addf %108, %110 : vector<64x128xf32>
    %c1 = arith.constant 1 : index
    %c0_28 = arith.constant 0 : index
    %c0_29 = arith.constant 0 : index
    %112 = vector.load %arg1[%c1, %c0_28, %c0_29] : memref<3x128x256xbf16, #tpu.memory_space<vmem>>, vector<1x128x256xbf16>
    %113 = vector.shape_cast %112 : vector<1x128x256xbf16> to vector<128x256xbf16>
    %114 = arith.truncf %111 : vector<64x128xf32> to vector<64x128xbf16>
    %cst_30 = arith.constant dense<0.000000e+00> : vector<64x256xf32>
    %115 = tpu.matmul %114, %113, %cst_30 {dimension_numbers = #tpu.dot_dimension_numbers<[1], [0], [0], [1], [0, 0, 1, 1], [], []>} : vector<64x128xbf16>, vector<128x256xbf16>, vector<64x256xf32> -> vector<64x256xf32>
    %116 = vector.extract_strided_slice %115 {offsets = [0, 126], sizes = [64, 1], strides = [1, 1]} : vector<64x256xf32> to vector<64x1xf32>
    %117 = vector.shape_cast %116 : vector<64x1xf32> to vector<64xf32>
    %118 = vector.shape_cast %117 : vector<64xf32> to vector<1x64xf32>
    %119 = vector.extract_strided_slice %115 {offsets = [0, 254], sizes = [64, 1], strides = [1, 1]} : vector<64x256xf32> to vector<64x1xf32>
    %120 = vector.shape_cast %119 : vector<64x1xf32> to vector<64xf32>
    %121 = vector.shape_cast %120 : vector<64xf32> to vector<1x64xf32>
    %122 = tpu.concatenate %118, %121 in 1 : vector<1x64xf32>, vector<1x64xf32> -> vector<1x128xf32>
    %123 = vector.extract_strided_slice %115 {offsets = [0, 127], sizes = [64, 1], strides = [1, 1]} : vector<64x256xf32> to vector<64x1xf32>
    %124 = vector.shape_cast %123 : vector<64x1xf32> to vector<64xf32>
    %125 = vector.shape_cast %124 : vector<64xf32> to vector<64x1xf32>
    %126 = vector.shape_cast %125 : vector<64x1xf32> to vector<64x1xf32>
    %127 = vector.broadcast %126 : vector<64x1xf32> to vector<64x64xf32>
    %128 = vector.extract_strided_slice %115 {offsets = [0, 255], sizes = [64, 1], strides = [1, 1]} : vector<64x256xf32> to vector<64x1xf32>
    %129 = vector.shape_cast %128 : vector<64x1xf32> to vector<64xf32>
    %130 = vector.shape_cast %129 : vector<64xf32> to vector<64x1xf32>
    %131 = vector.shape_cast %130 : vector<64x1xf32> to vector<64x1xf32>
    %132 = vector.broadcast %131 : vector<64x1xf32> to vector<64x64xf32>
    %133 = tpu.concatenate %127, %132 in 1 : vector<64x64xf32>, vector<64x64xf32> -> vector<64x128xf32>
    %134 = vector.broadcast %122 : vector<1x128xf32> to vector<64x128xf32>
    %135 = arith.addf %133, %134 : vector<64x128xf32>
    %cst_31 = arith.constant 0.000000e+00 : f32
    %136 = vector.broadcast %cst_31 : f32 to vector<64x128xf32>
    %137 = arith.cmpf oge, %135, %136 : vector<64x128xf32>
    %cst_32 = arith.constant 2.000000e-01 : f32
    %138 = vector.broadcast %cst_32 : f32 to vector<64x128xf32>
    %139 = arith.mulf %138, %135 : vector<64x128xf32>
    %140 = arith.select %137, %135, %139 : vector<64x128xi1>, vector<64x128xf32>
    %c1_33 = arith.constant 1 : index
    %c0_34 = arith.constant 0 : index
    %c0_35 = arith.constant 0 : index
    %141 = vector.load %arg2[%c1_33, %c0_34, %c0_35] : memref<3x64x128xf32, #tpu.memory_space<vmem>>, vector<1x64x128xf32>
    %142 = vector.shape_cast %141 : vector<1x64x128xf32> to vector<64x128xf32>
    %cst_36 = arith.constant 5.000000e-01 : f32
    %143 = vector.broadcast %cst_36 : f32 to vector<64x128xf32>
    %144 = arith.cmpf ogt, %142, %143 : vector<64x128xf32>
    %cst_37 = arith.constant -1.000000e+30 : f32
    %145 = vector.broadcast %cst_37 : f32 to vector<64x128xf32>
    %146 = arith.select %144, %140, %145 : vector<64x128xi1>, vector<64x128xf32>
    %147 = vector.extract_strided_slice %146 {offsets = [0, 0], sizes = [64, 64], strides = [1, 1]} : vector<64x128xf32> to vector<64x64xf32>
    %cst_38 = arith.constant dense<0xFF800000> : vector<64xf32>
    %148 = vector.multi_reduction <maximumf>, %147, %cst_38 [1] : vector<64x64xf32> to vector<64xf32>
    %149 = vector.shape_cast %148 : vector<64xf32> to vector<64x1xf32>
    %150 = vector.shape_cast %149 : vector<64x1xf32> to vector<64x1xf32>
    %151 = vector.broadcast %150 : vector<64x1xf32> to vector<64x64xf32>
    %152 = vector.extract_strided_slice %146 {offsets = [0, 64], sizes = [64, 64], strides = [1, 1]} : vector<64x128xf32> to vector<64x64xf32>
    %cst_39 = arith.constant dense<0xFF800000> : vector<64xf32>
    %153 = vector.multi_reduction <maximumf>, %152, %cst_39 [1] : vector<64x64xf32> to vector<64xf32>
    %154 = vector.shape_cast %153 : vector<64xf32> to vector<64x1xf32>
    %155 = vector.shape_cast %154 : vector<64x1xf32> to vector<64x1xf32>
    %156 = vector.broadcast %155 : vector<64x1xf32> to vector<64x64xf32>
    %157 = tpu.concatenate %151, %156 in 1 : vector<64x64xf32>, vector<64x64xf32> -> vector<64x128xf32>
    %158 = arith.subf %146, %157 : vector<64x128xf32>
    %159 = math.exp %158 : vector<64x128xf32>
    %cst_40 = arith.constant 0.000000e+00 : f32
    %160 = vector.broadcast %cst_40 : f32 to vector<64x128xf32>
    %161 = arith.select %144, %159, %160 : vector<64x128xi1>, vector<64x128xf32>
    %162 = vector.extract_strided_slice %161 {offsets = [0, 0], sizes = [64, 64], strides = [1, 1]} : vector<64x128xf32> to vector<64x64xf32>
    %cst_41 = arith.constant dense<0.000000e+00> : vector<64xf32>
    %163 = vector.multi_reduction <add>, %162, %cst_41 [1] : vector<64x64xf32> to vector<64xf32>
    %164 = vector.shape_cast %163 : vector<64xf32> to vector<64x1xf32>
    %cst_42 = arith.constant 1.000000e-30 : f32
    %165 = vector.broadcast %cst_42 : f32 to vector<64x1xf32>
    %166 = arith.maximumf %164, %165 : vector<64x1xf32>
    %167 = tpu.reciprocal %166 {approx = true} : vector<64x1xf32> -> vector<64x1xf32>
    %168 = vector.broadcast %167 : vector<64x1xf32> to vector<64x64xf32>
    %169 = arith.mulf %162, %168 : vector<64x64xf32>
    %170 = vector.extract_strided_slice %161 {offsets = [0, 64], sizes = [64, 64], strides = [1, 1]} : vector<64x128xf32> to vector<64x64xf32>
    %cst_43 = arith.constant dense<0.000000e+00> : vector<64xf32>
    %171 = vector.multi_reduction <add>, %170, %cst_43 [1] : vector<64x64xf32> to vector<64xf32>
    %172 = vector.shape_cast %171 : vector<64xf32> to vector<64x1xf32>
    %cst_44 = arith.constant 1.000000e-30 : f32
    %173 = vector.broadcast %cst_44 : f32 to vector<64x1xf32>
    %174 = arith.maximumf %172, %173 : vector<64x1xf32>
    %175 = tpu.reciprocal %174 {approx = true} : vector<64x1xf32> -> vector<64x1xf32>
    %176 = vector.broadcast %175 : vector<64x1xf32> to vector<64x64xf32>
    %177 = arith.mulf %170, %176 : vector<64x64xf32>
    %178 = tpu.concatenate %169, %177 in 1 : vector<64x64xf32>, vector<64x64xf32> -> vector<64x128xf32>
    %179 = vector.extract_strided_slice %115 {offsets = [0, 0], sizes = [64, 128], strides = [1, 1]} : vector<64x256xf32> to vector<64x128xf32>
    %180 = vector.extract_strided_slice %115 {offsets = [0, 128], sizes = [64, 128], strides = [1, 1]} : vector<64x256xf32> to vector<64x128xf32>
    %181 = tpu.concatenate %179, %180 in 0 : vector<64x128xf32>, vector<64x128xf32> -> vector<128x128xf32>
    %182 = arith.truncf %181 : vector<128x128xf32> to vector<128x128xbf16>
    %183 = arith.truncf %178 : vector<64x128xf32> to vector<64x128xbf16>
    %cst_45 = arith.constant dense<0.000000e+00> : vector<64x128xf32>
    %184 = tpu.matmul %183, %182, %cst_45 {dimension_numbers = #tpu.dot_dimension_numbers<[1], [0], [0], [1], [0, 0, 1, 1], [], []>} : vector<64x128xbf16>, vector<128x128xbf16>, vector<64x128xf32> -> vector<64x128xf32>
    %c1_46 = arith.constant 1 : index
    %c0_47 = arith.constant 0 : index
    %c0_48 = arith.constant 0 : index
    %185 = vector.load %arg3[%c1_46, %c0_47, %c0_48] : memref<3x8x128xf32, #tpu.memory_space<vmem>>, vector<1x8x128xf32>
    %186 = vector.shape_cast %185 : vector<1x8x128xf32> to vector<8x128xf32>
    %187 = vector.extract_strided_slice %186 {offsets = [0, 0], sizes = [1, 128], strides = [1, 1]} : vector<8x128xf32> to vector<1x128xf32>
    %188 = vector.broadcast %187 : vector<1x128xf32> to vector<64x128xf32>
    %189 = arith.addf %184, %188 : vector<64x128xf32>
    %cst_49 = arith.constant 0.000000e+00 : f32
    %190 = vector.broadcast %cst_49 : f32 to vector<64x128xf32>
    %191 = arith.maximumf %189, %190 : vector<64x128xf32>
    %c32_i32_50 = arith.constant 32 : i32
    %192 = vector.broadcast %c32_i32_50 : i32 to vector<1x128xi32>
    %193 = arith.cmpi slt, %0, %192 : vector<1x128xi32>
    %194 = arith.extui %193 : vector<1x128xi1> to vector<1x128xi32>
    %195 = arith.sitofp %194 : vector<1x128xi32> to vector<1x128xf32>
    %196 = vector.broadcast %195 : vector<1x128xf32> to vector<64x128xf32>
    %197 = arith.mulf %191, %196 : vector<64x128xf32>
    %cst_51 = arith.constant dense<0.000000e+00> : vector<64xf32>
    %198 = vector.multi_reduction <add>, %197, %cst_51 [1] : vector<64x128xf32> to vector<64xf32>
    %199 = vector.shape_cast %198 : vector<64xf32> to vector<64x1xf32>
    %cst_52 = arith.constant 3.125000e-02 : f32
    %200 = vector.broadcast %cst_52 : f32 to vector<64x1xf32>
    %201 = arith.mulf %199, %200 : vector<64x1xf32>
    %202 = vector.broadcast %201 : vector<64x1xf32> to vector<64x128xf32>
    %203 = arith.subf %197, %202 : vector<64x128xf32>
    %204 = vector.broadcast %195 : vector<1x128xf32> to vector<64x128xf32>
    %205 = arith.mulf %203, %204 : vector<64x128xf32>
    %206 = arith.mulf %205, %205 : vector<64x128xf32>
    %cst_53 = arith.constant dense<0.000000e+00> : vector<64xf32>
    %207 = vector.multi_reduction <add>, %206, %cst_53 [1] : vector<64x128xf32> to vector<64xf32>
    %208 = vector.shape_cast %207 : vector<64xf32> to vector<64x1xf32>
    %cst_54 = arith.constant 3.125000e-02 : f32
    %209 = vector.broadcast %cst_54 : f32 to vector<64x1xf32>
    %210 = arith.mulf %208, %209 : vector<64x1xf32>
    %cst_55 = arith.constant 9.99999974E-6 : f32
    %211 = vector.broadcast %cst_55 : f32 to vector<64x1xf32>
    %212 = arith.addf %210, %211 : vector<64x1xf32>
    %213 = math.rsqrt %212 : vector<64x1xf32>
    %214 = vector.broadcast %213 : vector<64x1xf32> to vector<64x128xf32>
    %215 = arith.mulf %205, %214 : vector<64x128xf32>
    %216 = vector.extract_strided_slice %186 {offsets = [1, 0], sizes = [1, 128], strides = [1, 1]} : vector<8x128xf32> to vector<1x128xf32>
    %217 = vector.broadcast %216 : vector<1x128xf32> to vector<64x128xf32>
    %218 = arith.mulf %215, %217 : vector<64x128xf32>
    %219 = vector.extract_strided_slice %186 {offsets = [2, 0], sizes = [1, 128], strides = [1, 1]} : vector<8x128xf32> to vector<1x128xf32>
    %220 = vector.broadcast %219 : vector<1x128xf32> to vector<64x128xf32>
    %221 = arith.addf %218, %220 : vector<64x128xf32>
    %c2 = arith.constant 2 : index
    %c0_56 = arith.constant 0 : index
    %c0_57 = arith.constant 0 : index
    %222 = vector.load %arg1[%c2, %c0_56, %c0_57] : memref<3x128x256xbf16, #tpu.memory_space<vmem>>, vector<1x128x256xbf16>
    %223 = vector.shape_cast %222 : vector<1x128x256xbf16> to vector<128x256xbf16>
    %224 = arith.truncf %221 : vector<64x128xf32> to vector<64x128xbf16>
    %cst_58 = arith.constant dense<0.000000e+00> : vector<64x256xf32>
    %225 = tpu.matmul %224, %223, %cst_58 {dimension_numbers = #tpu.dot_dimension_numbers<[1], [0], [0], [1], [0, 0, 1, 1], [], []>} : vector<64x128xbf16>, vector<128x256xbf16>, vector<64x256xf32> -> vector<64x256xf32>
    %226 = vector.extract_strided_slice %225 {offsets = [0, 126], sizes = [64, 1], strides = [1, 1]} : vector<64x256xf32> to vector<64x1xf32>
    %227 = vector.shape_cast %226 : vector<64x1xf32> to vector<64xf32>
    %228 = vector.shape_cast %227 : vector<64xf32> to vector<1x64xf32>
    %229 = vector.extract_strided_slice %225 {offsets = [0, 254], sizes = [64, 1], strides = [1, 1]} : vector<64x256xf32> to vector<64x1xf32>
    %230 = vector.shape_cast %229 : vector<64x1xf32> to vector<64xf32>
    %231 = vector.shape_cast %230 : vector<64xf32> to vector<1x64xf32>
    %232 = tpu.concatenate %228, %231 in 1 : vector<1x64xf32>, vector<1x64xf32> -> vector<1x128xf32>
    %233 = vector.extract_strided_slice %225 {offsets = [0, 127], sizes = [64, 1], strides = [1, 1]} : vector<64x256xf32> to vector<64x1xf32>
    %234 = vector.shape_cast %233 : vector<64x1xf32> to vector<64xf32>
    %235 = vector.shape_cast %234 : vector<64xf32> to vector<64x1xf32>
    %236 = vector.shape_cast %235 : vector<64x1xf32> to vector<64x1xf32>
    %237 = vector.broadcast %236 : vector<64x1xf32> to vector<64x64xf32>
    %238 = vector.extract_strided_slice %225 {offsets = [0, 255], sizes = [64, 1], strides = [1, 1]} : vector<64x256xf32> to vector<64x1xf32>
    %239 = vector.shape_cast %238 : vector<64x1xf32> to vector<64xf32>
    %240 = vector.shape_cast %239 : vector<64xf32> to vector<64x1xf32>
    %241 = vector.shape_cast %240 : vector<64x1xf32> to vector<64x1xf32>
    %242 = vector.broadcast %241 : vector<64x1xf32> to vector<64x64xf32>
    %243 = tpu.concatenate %237, %242 in 1 : vector<64x64xf32>, vector<64x64xf32> -> vector<64x128xf32>
    %244 = vector.broadcast %232 : vector<1x128xf32> to vector<64x128xf32>
    %245 = arith.addf %243, %244 : vector<64x128xf32>
    %cst_59 = arith.constant 0.000000e+00 : f32
    %246 = vector.broadcast %cst_59 : f32 to vector<64x128xf32>
    %247 = arith.cmpf oge, %245, %246 : vector<64x128xf32>
    %cst_60 = arith.constant 2.000000e-01 : f32
    %248 = vector.broadcast %cst_60 : f32 to vector<64x128xf32>
    %249 = arith.mulf %248, %245 : vector<64x128xf32>
    %250 = arith.select %247, %245, %249 : vector<64x128xi1>, vector<64x128xf32>
    %c2_61 = arith.constant 2 : index
    %c0_62 = arith.constant 0 : index
    %c0_63 = arith.constant 0 : index
    %251 = vector.load %arg2[%c2_61, %c0_62, %c0_63] : memref<3x64x128xf32, #tpu.memory_space<vmem>>, vector<1x64x128xf32>
    %252 = vector.shape_cast %251 : vector<1x64x128xf32> to vector<64x128xf32>
    %cst_64 = arith.constant 5.000000e-01 : f32
    %253 = vector.broadcast %cst_64 : f32 to vector<64x128xf32>
    %254 = arith.cmpf ogt, %252, %253 : vector<64x128xf32>
    %cst_65 = arith.constant -1.000000e+30 : f32
    %255 = vector.broadcast %cst_65 : f32 to vector<64x128xf32>
    %256 = arith.select %254, %250, %255 : vector<64x128xi1>, vector<64x128xf32>
    %257 = vector.extract_strided_slice %256 {offsets = [0, 0], sizes = [64, 64], strides = [1, 1]} : vector<64x128xf32> to vector<64x64xf32>
    %cst_66 = arith.constant dense<0xFF800000> : vector<64xf32>
    %258 = vector.multi_reduction <maximumf>, %257, %cst_66 [1] : vector<64x64xf32> to vector<64xf32>
    %259 = vector.shape_cast %258 : vector<64xf32> to vector<64x1xf32>
    %260 = vector.shape_cast %259 : vector<64x1xf32> to vector<64x1xf32>
    %261 = vector.broadcast %260 : vector<64x1xf32> to vector<64x64xf32>
    %262 = vector.extract_strided_slice %256 {offsets = [0, 64], sizes = [64, 64], strides = [1, 1]} : vector<64x128xf32> to vector<64x64xf32>
    %cst_67 = arith.constant dense<0xFF800000> : vector<64xf32>
    %263 = vector.multi_reduction <maximumf>, %262, %cst_67 [1] : vector<64x64xf32> to vector<64xf32>
    %264 = vector.shape_cast %263 : vector<64xf32> to vector<64x1xf32>
    %265 = vector.shape_cast %264 : vector<64x1xf32> to vector<64x1xf32>
    %266 = vector.broadcast %265 : vector<64x1xf32> to vector<64x64xf32>
    %267 = tpu.concatenate %261, %266 in 1 : vector<64x64xf32>, vector<64x64xf32> -> vector<64x128xf32>
    %268 = arith.subf %256, %267 : vector<64x128xf32>
    %269 = math.exp %268 : vector<64x128xf32>
    %cst_68 = arith.constant 0.000000e+00 : f32
    %270 = vector.broadcast %cst_68 : f32 to vector<64x128xf32>
    %271 = arith.select %254, %269, %270 : vector<64x128xi1>, vector<64x128xf32>
    %272 = vector.extract_strided_slice %271 {offsets = [0, 0], sizes = [64, 64], strides = [1, 1]} : vector<64x128xf32> to vector<64x64xf32>
    %cst_69 = arith.constant dense<0.000000e+00> : vector<64xf32>
    %273 = vector.multi_reduction <add>, %272, %cst_69 [1] : vector<64x64xf32> to vector<64xf32>
    %274 = vector.shape_cast %273 : vector<64xf32> to vector<64x1xf32>
    %cst_70 = arith.constant 1.000000e-30 : f32
    %275 = vector.broadcast %cst_70 : f32 to vector<64x1xf32>
    %276 = arith.maximumf %274, %275 : vector<64x1xf32>
    %277 = tpu.reciprocal %276 {approx = true} : vector<64x1xf32> -> vector<64x1xf32>
    %278 = vector.broadcast %277 : vector<64x1xf32> to vector<64x64xf32>
    %279 = arith.mulf %272, %278 : vector<64x64xf32>
    %280 = vector.extract_strided_slice %271 {offsets = [0, 64], sizes = [64, 64], strides = [1, 1]} : vector<64x128xf32> to vector<64x64xf32>
    %cst_71 = arith.constant dense<0.000000e+00> : vector<64xf32>
    %281 = vector.multi_reduction <add>, %280, %cst_71 [1] : vector<64x64xf32> to vector<64xf32>
    %282 = vector.shape_cast %281 : vector<64xf32> to vector<64x1xf32>
    %cst_72 = arith.constant 1.000000e-30 : f32
    %283 = vector.broadcast %cst_72 : f32 to vector<64x1xf32>
    %284 = arith.maximumf %282, %283 : vector<64x1xf32>
    %285 = tpu.reciprocal %284 {approx = true} : vector<64x1xf32> -> vector<64x1xf32>
    %286 = vector.broadcast %285 : vector<64x1xf32> to vector<64x64xf32>
    %287 = arith.mulf %280, %286 : vector<64x64xf32>
    %288 = tpu.concatenate %279, %287 in 1 : vector<64x64xf32>, vector<64x64xf32> -> vector<64x128xf32>
    %289 = vector.extract_strided_slice %225 {offsets = [0, 0], sizes = [64, 128], strides = [1, 1]} : vector<64x256xf32> to vector<64x128xf32>
    %290 = vector.extract_strided_slice %225 {offsets = [0, 128], sizes = [64, 128], strides = [1, 1]} : vector<64x256xf32> to vector<64x128xf32>
    %291 = tpu.concatenate %289, %290 in 0 : vector<64x128xf32>, vector<64x128xf32> -> vector<128x128xf32>
    %292 = arith.truncf %291 : vector<128x128xf32> to vector<128x128xbf16>
    %293 = arith.truncf %288 : vector<64x128xf32> to vector<64x128xbf16>
    %cst_73 = arith.constant dense<0.000000e+00> : vector<64x128xf32>
    %294 = tpu.matmul %293, %292, %cst_73 {dimension_numbers = #tpu.dot_dimension_numbers<[1], [0], [0], [1], [0, 0, 1, 1], [], []>} : vector<64x128xbf16>, vector<128x128xbf16>, vector<64x128xf32> -> vector<64x128xf32>
    %c2_74 = arith.constant 2 : index
    %c0_75 = arith.constant 0 : index
    %c0_76 = arith.constant 0 : index
    %295 = vector.load %arg3[%c2_74, %c0_75, %c0_76] : memref<3x8x128xf32, #tpu.memory_space<vmem>>, vector<1x8x128xf32>
    %296 = vector.shape_cast %295 : vector<1x8x128xf32> to vector<8x128xf32>
    %297 = vector.extract_strided_slice %296 {offsets = [0, 0], sizes = [1, 128], strides = [1, 1]} : vector<8x128xf32> to vector<1x128xf32>
    %298 = vector.broadcast %297 : vector<1x128xf32> to vector<64x128xf32>
    %299 = arith.addf %294, %298 : vector<64x128xf32>
    %c16_i32 = arith.constant 16 : i32
    %300 = vector.broadcast %c16_i32 : i32 to vector<1x128xi32>
    %301 = arith.cmpi slt, %0, %300 : vector<1x128xi32>
    %302 = arith.extui %301 : vector<1x128xi1> to vector<1x128xi32>
    %303 = arith.sitofp %302 : vector<1x128xi32> to vector<1x128xf32>
    %304 = vector.broadcast %303 : vector<1x128xf32> to vector<64x128xf32>
    %305 = arith.mulf %299, %304 : vector<64x128xf32>
    %cst_77 = arith.constant dense<0.000000e+00> : vector<64xf32>
    %306 = vector.multi_reduction <add>, %305, %cst_77 [1] : vector<64x128xf32> to vector<64xf32>
    %307 = vector.shape_cast %306 : vector<64xf32> to vector<64x1xf32>
    %cst_78 = arith.constant 6.250000e-02 : f32
    %308 = vector.broadcast %cst_78 : f32 to vector<64x1xf32>
    %309 = arith.mulf %307, %308 : vector<64x1xf32>
    %310 = vector.broadcast %309 : vector<64x1xf32> to vector<64x128xf32>
    %311 = arith.subf %305, %310 : vector<64x128xf32>
    %312 = vector.broadcast %303 : vector<1x128xf32> to vector<64x128xf32>
    %313 = arith.mulf %311, %312 : vector<64x128xf32>
    %314 = arith.mulf %313, %313 : vector<64x128xf32>
    %cst_79 = arith.constant dense<0.000000e+00> : vector<64xf32>
    %315 = vector.multi_reduction <add>, %314, %cst_79 [1] : vector<64x128xf32> to vector<64xf32>
    %316 = vector.shape_cast %315 : vector<64xf32> to vector<64x1xf32>
    %cst_80 = arith.constant 6.250000e-02 : f32
    %317 = vector.broadcast %cst_80 : f32 to vector<64x1xf32>
    %318 = arith.mulf %316, %317 : vector<64x1xf32>
    %cst_81 = arith.constant 9.99999974E-6 : f32
    %319 = vector.broadcast %cst_81 : f32 to vector<64x1xf32>
    %320 = arith.addf %318, %319 : vector<64x1xf32>
    %321 = math.rsqrt %320 : vector<64x1xf32>
    %322 = vector.broadcast %321 : vector<64x1xf32> to vector<64x128xf32>
    %323 = arith.mulf %313, %322 : vector<64x128xf32>
    %324 = vector.extract_strided_slice %296 {offsets = [1, 0], sizes = [1, 128], strides = [1, 1]} : vector<8x128xf32> to vector<1x128xf32>
    %325 = vector.broadcast %324 : vector<1x128xf32> to vector<64x128xf32>
    %326 = arith.mulf %323, %325 : vector<64x128xf32>
    %327 = vector.extract_strided_slice %296 {offsets = [2, 0], sizes = [1, 128], strides = [1, 1]} : vector<8x128xf32> to vector<1x128xf32>
    %328 = vector.broadcast %327 : vector<1x128xf32> to vector<64x128xf32>
    %329 = arith.addf %326, %328 : vector<64x128xf32>
    %c0_82 = arith.constant 0 : index
    %c0_83 = arith.constant 0 : index
    %330 = vector.load %arg4[%c0_82, %c0_83] : memref<64x128xf32, #tpu.memory_space<vmem>>, vector<64x128xf32>
    tpu.vector_store %arg4[%c0_82, %c0_83], %329 {strides = array<i32>} : memref<64x128xf32, #tpu.memory_space<vmem>>, vector<64x128xf32>,
    return
  }
}

</mosaic_0001>

<bundles_post_ra>
// kernel: rgcn_sampling_forward.1
= control target key start
LH: loop header
LB: loop body
LE: loop exit
PB: predicated region body
PF: predicated region fallthrough
CT: control target
= control target key end

     0   :  { %v3262_v1 = vmov 0   ;;  %v3263_v2 = vmov 126   ;;  %v3264_v33 = vmov 127   ;;  %v18_v61 = vlaneseq  ;;  %s3265_s26 = smov 64   ;;  %s4691_s1 = inlined_call_operand.vmem [shape: bf16[3,128,256], index: 1, kind: input, shape index: {}]   ;;  %s4692_s0 = inlined_call_operand.vmem [shape: f32[64,128], index: 0, kind: input, shape index: {}]   ;;  %s4693_s2 = inlined_call_operand.vmem [shape: f32[3,64,128], index: 2, kind: input, shape index: {}]   ;;  %s4694_s3 = inlined_call_operand.vmem [shape: f32[3,8,128], index: 3, kind: input, shape index: {}]   ;;  %s4695_s4 = inlined_call_operand.vmem [shape: f32[64,128], index: 4, kind: output, shape index: {}]  }
   0x1   :  { %v2998_v0 = vld [vmem:[%s4691_s1 + $0x74] ss:$8 sps:$4 sm:$0xff]   ;;  %160 = vmatprep.mubr.bf16.mxu0 %v3262_v1  ;;  %2964 = vset.pattern.permute.xlu0 %v3263_v2  ;;  %v3000_v3 = vld [vmem:[%s4691_s1 + $0x70] ss:$8 sps:$4 sm:$0xff]   ;;  %v3001_v4 = vld [vmem:[%s4691_s1 + $0x64] ss:$8 sps:$4 sm:$0xff]  }
   0x2   :  { %2966 = vset.pattern.permute.xlu1 %v3263_v2  ;;  %128 = vmatprep.subr.bf16.mxu0 %v2998_v0  ;;  %v3003_v5 = vld [vmem:[%s4691_s1 + $0x60] ss:$8 sps:$4 sm:$0xff]   ;;  %v3004_v6 = vld [vmem:[%s4691_s1 + $0x54] ss:$8 sps:$4 sm:$0xff]   ;;  %v3006_v7 = vld [vmem:[%s4691_s1 + $0x50] ss:$8 sps:$4 sm:$0xff]  }
   0x3   :  { %129 = vmatpush1.bf16.msra.mxu0 %v3000_v3  ;;  %v3007_v8 = vld [vmem:[%s4691_s1 + $0x44] ss:$8 sps:$4 sm:$0xff]   ;;  %v3009_v9 = vld [vmem:[%s4691_s1 + $0x40] ss:$8 sps:$4 sm:$0xff]   ;;  %v3010_v10 = vld [vmem:[%s4691_s1 + $0x34] ss:$8 sps:$4 sm:$0xff]  }
   0x4   :  { %130 = vmatprep.subr.bf16.mxu0 %v3001_v4  ;;  %v3012_v11 = vld [vmem:[%s4691_s1 + $0x30] ss:$8 sps:$4 sm:$0xff]   ;;  %v3013_v12 = vld [vmem:[%s4691_s1 + $0x24] ss:$8 sps:$4 sm:$0xff]   ;;  %v3015_v13 = vld [vmem:[%s4691_s1 + $0x20] ss:$8 sps:$4 sm:$0xff]  }
   0x5   :  { %v3016_v14 = vld [vmem:[%s4691_s1 + $0x14] ss:$8 sps:$4 sm:$0xff]   ;;  %v3018_v15 = vld [vmem:[%s4691_s1 + $0x10] ss:$8 sps:$4 sm:$0xff]   ;;  %v3019_v16 = vld [vmem:[%s4691_s1 + $0x4] ss:$8 sps:$4 sm:$0xff]  }
   0x6   :  { %v3021_v17 = vld [vmem:[%s4691_s1] ss:$8 sps:$4 sm:$0xff]   ;;  %v22_v21 = vld [vmem:[%s4692_s0 + $0x10] sm:$0xff]  ;;  %v23_v22 = vld [vmem:[%s4692_s0 + $0x18] sm:$0xff]  ;;  %v3406_v0 = vand.u32 127, %v18_v61  ;;  %vm4705_vm0 = vcmask 130112  }
   0x7   :  { %131 = vmatpush1.bf16.msra.mxu0 %v3003_v5  ;;  %v20_v18 = vld [vmem:[%s4692_s0] sm:$0xff]  ;;  %v21_v19 = vld [vmem:[%s4692_s0 + $0x8] sm:$0xff]  ;;  %v45_v23 = vpack.c.bf16 %v23_v22, %v22_v21  ;;  %v26_v27 = vld [vmem:[%s4692_s0 + $0x30] sm:$0xff]  ;;  %v3412_v5 = vshrl.u32 %v18_v61, 7  ;;  %vm329_vm1 = vcmask 654912   ;;  %vm4703_vm2 = vcmask 195712  }
   0x8   :  { %132 = vmatprep.subr.bf16.mxu0 %v3004_v6  ;;  %v44_v20 = vpack.c.bf16 %v21_v19, %v20_v18  ;;  %v24_v24 = vld [vmem:[%s4692_s0 + $0x20] sm:$0xff]  ;;  %v25_v25 = vld [vmem:[%s4692_s0 + $0x28] sm:$0xff]  ;;  %v27_v28 = vld [vmem:[%s4692_s0 + $0x38] sm:$0xff]  ;;  %v319_v6 = vadd.s32 4294967232, %v3406_v0  ;;  %v258_v19 = vadd.s32 4294967264, %v3406_v0  ;;  %vm336_vm3 = vcmask 720512  }
   0x9   :  { %v46_v26 = vpack.c.bf16 %v25_v25, %v24_v24  ;;  %v47_v29 = vpack.c.bf16 %v27_v28, %v26_v27  ;;  %v265_v25 = vadd.s32 4294967256, %v3406_v0  ;;  %vm4702_vm4 = vcmask 261312  }
   0xa   :  { %vm343_vm5 = vcmask 786112   ;;  %vm4701_vm6 = vcmask 326912   ;;  %vm350_vm7 = vcmask 851712   ;;  %vm4699_vm8 = vcmask 392512  }
   0xb   :  { %133 = vmatpush1.bf16.msra.mxu0 %v3006_v7  ;;  %v237_v7 = vadd.s32 4294967288, %v3406_v0  ;;  %vm4704_vm9 = vcmask 917312   ;;  %vm4698_vm10 = vcmask 458112   ;;  %vm4700_vm11 = vcmask 982912  }
   0xc   :  { %134 = vmatprep.subr.bf16.mxu0 %v3007_v8  ;;  %v324_v8 = vadd.s32 4294967224, %v3406_v0  ;;  %vm4697_vm12 = vcmask 523712   ;;  %vm4696_vm13 = vcmask 1048512   ;;  %vm374_vm14 = vcmask 523264  }
   0xe   :  { %v3436_v18 = vsub.s32 %v324_v8, %v3412_v5 }
   0xf   :  { %135 = vmatpush1.bf16.msra.mxu0 %v3009_v9  ;;  %v244_v9 = vadd.s32 4294967280, %v3406_v0 }
  0x10   :  { %136 = vmatprep.subr.bf16.mxu0 %v3010_v10  ;;  %v331_v10 = vadd.s32 4294967216, %v3406_v0 }
  0x11   :  { %v3441_v21 = vsub.s32 %v244_v9, %v3412_v5 }
  0x12   :  { %v3444_v22 = vsub.s32 %v331_v10, %v3412_v5 }
  0x13   :  { %137 = vmatpush1.bf16.msra.mxu0 %v3012_v11 }
  0x14   :  { %138 = vmatprep.subr.bf16.mxu0 %v3013_v12 }
  0x17   :  { %139 = vmatpush1.bf16.msra.mxu0 %v3015_v13  ;;  %v3425_v13 = vsub.s32 %v3406_v0, %v3412_v5 }
  0x18   :  { %140 = vmatprep.subr.bf16.mxu0 %v3016_v14  ;;  %v251_v14 = vadd.s32 4294967272, %v3406_v0 }
  0x1a   :  { %v3449_v27 = vsub.s32 %v251_v14, %v3412_v5  ;;  %v3513_v14 = vsub.s32 0, %v3412_v5 }
  0x1b   :  { %141 = vmatpush1.bf16.msra.mxu0 %v3018_v15  ;;  %v338_v15 = vadd.s32 4294967208, %v3406_v0 }
  0x1c   :  { %142 = vmatprep.subr.bf16.mxu0 %v3019_v16  ;;  %v3430_v16 = vsub.s32 %v319_v6, %v3412_v5 }
  0x1d   :  { %v3452_v28 = vsub.s32 %v338_v15, %v3412_v5 }
  0x1f   :  { %143 = vmatpush1.bf16.msra.mxu0 %v3021_v17  ;;  %v3433_v17 = vsub.s32 %v237_v7, %v3412_v5 }
  0x22   :  { %161 = vmatmul.mubr.bf16.vlgmr.msra.gmra.mxu0 %v44_v20  ;;  %v345_v20 = vadd.s32 4294967200, %v3406_v0 }
  0x23   :  { %170 = vmatprep.mubr.bf16.mxu0 %v3262_v1 }
  0x2a   :  { %171 = vmatmul.mubr.bf16.gmra.mxu0 %v45_v23 }
  0x2b   :  { %180 = vmatprep.mubr.bf16.mxu0 %v3262_v1 }
  0x32   :  { %181 = vmatmul.mubr.bf16.gmra.mxu0 %v46_v26  ;;  %v352_v26 = vadd.s32 4294967192, %v3406_v0 }
  0x33   :  { %190 = vmatprep.mubr.bf16.mxu0 %v3262_v1 }
  0x3a   :  { %191 = vmatmul.mubr.bf16.gmra.mxu0 %v47_v29  ;;  %v272_v29 = vadd.s32 4294967248, %v3406_v0 }
  0x3b   :  { %1087 = vmatprep.mubr.bf16.mxu0 %v3262_v1 }
  0xe2   :  { %v3371_v30 = vpop.f32.mrf.mxu0 }
  0xe3   :  { %210 = vperm.xlu0 %2964, %v3371_v30  }
  0xe4   :  { %v164_v31 = vpop.f32.mrf.mxu0 }
  0xe5   :  { %296 = vperm.xlu1 %2966, %v164_v31  }
  0xe6   :  { %v3374_v32 = vpop.f32.mrf.mxu0 }
  0xe7   :  { %2965 = vset.pattern.permute.xlu0 %v3264_v33  ;;  %v733_v54 = vpack.c.bf16 %v3374_v32, %v3371_v30 }
  0xe8   :  { %377 = vperm.xlu0 %2965, %v3371_v30   ;;  %v168_v34 = vpop.f32.mrf.mxu0  ;;  %v359_v30 = vadd.s32 4294967184, %v3406_v0 }
  0xe9   :  { %2967 = vset.pattern.permute.xlu1 %v3264_v33  ;;  %v737_v50 = vpack.c.bf16 %v168_v34, %v164_v31 }
  0xea   :  { %409 = vperm.xlu1 %2967, %v164_v31   ;;  %v172_v35 = vpop.f32.mrf.mxu0  ;;  %v3457_v31 = vsub.s32 %v258_v19, %v3412_v5 }
  0xec   :  { %2968 = vset.pattern.permute.xlu0 %v3263_v2  ;;  %v174_v36 = vpop.f32.mrf.mxu0 }
  0xed   :  { %213 = vperm.xlu0 %2968, %v3374_v32  }
  0xee   :  { %381 = vperm.xlu1 %2967, %v3374_v32   ;;  %v176_v37 = vpop.f32.mrf.mxu0  ;;  %v3460_v32 = vsub.s32 %v345_v20, %v3412_v5 }
  0xef   :  { %v734_v53 = vpack.c.bf16 %v176_v37, %v172_v35 }
  0xf0   :  { %v178_v38 = vpop.f32.mrf.mxu0 }
  0xf1   :  { %2970 = vset.pattern.permute.xlu0 %v3264_v33  ;;  %v738_v49 = vpack.c.bf16 %v178_v38, %v174_v36 }
  0xf2   :  { %2969 = vset.pattern.permute.xlu1 %v3263_v2  ;;  %413 = vperm.xlu0 %2970, %v168_v34   ;;  %v182_v39 = vpop.f32.mrf.mxu0 }
  0xf3   :  { %299 = vperm.xlu1 %2969, %v168_v34   ;;  %v3463_v34 = vsub.s32 %v265_v25, %v3412_v5 }
  0xf4   :  { %v184_v40 = vpop.f32.mrf.mxu0 }
  0xf6   :  { %2971 = vset.pattern.permute.xlu0 %v3263_v2  ;;  %v186_v41 = vpop.f32.mrf.mxu0 }
  0xf7   :  { %216 = vperm.xlu0 %2971, %v172_v35   ;;  %302 = vperm.xlu1 %2969, %v174_v36   ;;  %v735_v52 = vpack.c.bf16 %v186_v41, %v182_v39 }
  0xf8   :  { %v188_v42 = vpop.f32.mrf.mxu0 }
  0xf9   :  { %v739_v48 = vpack.c.bf16 %v188_v42, %v184_v40 }
  0xfa   :  { %v192_v43 = vpop.f32.mrf.mxu0 }
  0xfb   :  { %219 = vperm.xlu0 %2971, %v176_v37   ;;  %305 = vperm.xlu1 %2969, %v178_v38  }
  0xfc   :  { %v194_v44 = vpop.f32.mrf.mxu0 }
  0xfe   :  { %v196_v45 = vpop.f32.mrf.mxu0 }
  0xff   :  { %222 = vperm.xlu0 %2971, %v182_v39   ;;  %308 = vperm.xlu1 %2969, %v184_v40   ;;  %v736_v51 = vpack.c.bf16 %v196_v45, %v192_v43 }
 0x100   :  { %v198_v46 = vpop.f32.mrf.mxu0 }
 0x101   :  { %v740_v47 = vpack.c.bf16 %v198_v46, %v194_v44 }
 0x103   :  { %225 = vperm.xlu0 %2971, %v186_v41   ;;  %311 = vperm.xlu1 %2969, %v188_v42  }
 0x104   :  { %2887 = vmatprep.subr.bf16.mxu1 %v740_v47 }
 0x105   :  { %2888 = vmatpush3.bf16.msra.mxu1 %v740_v47 }
 0x106   :  { %2889 = vmatprep.subr.bf16.mxu1 %v739_v48 }
 0x107   :  { %228 = vperm.xlu0 %2971, %v192_v43   ;;  %314 = vperm.xlu1 %2969, %v194_v44  }
 0x109   :  { %2890 = vmatpush3.bf16.msra.mxu1 %v739_v48 }
 0x10a   :  { %2891 = vmatprep.subr.bf16.mxu1 %v738_v49 }
 0x10b   :  { %231 = vperm.xlu0 %2971, %v196_v45   ;;  %317 = vperm.xlu1 %2969, %v198_v46  }
 0x10d   :  { %2892 = vmatpush3.bf16.msra.mxu1 %v738_v49 }
 0x10e   :  { %2893 = vmatprep.subr.bf16.mxu1 %v737_v50 }
 0x10f   :  { %2973 = vset.pattern.permute.xlu0 %v3264_v33  ;;  %2972 = vset.pattern.permute.xlu1 %v3264_v33 }
 0x110   :  { %389 = vperm.xlu0 %2973, %v176_v37   ;;  %385 = vperm.xlu1 %2972, %v172_v35  }
 0x111   :  { %2894 = vmatpush3.bf16.msra.mxu1 %v737_v50 }
 0x112   :  { %2895 = vmatprep.subr.bf16.mxu1 %v736_v51 }
 0x114   :  { %421 = vperm.xlu0 %2973, %v178_v38   ;;  %417 = vperm.xlu1 %2972, %v174_v36   ;;  %v3466_v36 = vsub.s32 %v352_v26, %v3412_v5  ;;  %v279_v38 = vadd.s32 4294967240, %v3406_v0 }
 0x115   :  { %2896 = vmatpush3.bf16.msra.mxu1 %v736_v51 }
 0x116   :  { %2897 = vmatprep.subr.bf16.mxu1 %v735_v52 }
 0x118   :  { %397 = vperm.xlu0 %2973, %v186_v41   ;;  %393 = vperm.xlu1 %2972, %v182_v39   ;;  %v366_v39 = vadd.s32 4294967176, %v3406_v0 }
 0x119   :  { %2898 = vmatpush3.bf16.msra.mxu1 %v735_v52 }
 0x11a   :  { %2899 = vmatprep.subr.bf16.mxu1 %v734_v53 }
 0x11c   :  { %429 = vperm.xlu0 %2973, %v188_v42   ;;  %425 = vperm.xlu1 %2972, %v184_v40  }
 0x11d   :  { %2900 = vmatpush3.bf16.msra.mxu1 %v734_v53 }
 0x11e   :  { %2901 = vmatprep.subr.bf16.mxu1 %v733_v54 }
 0x120   :  { %405 = vperm.xlu0 %2973, %v196_v45   ;;  %401 = vperm.xlu1 %2972, %v192_v43   ;;  %v3482_v45 = vsub.s32 %v359_v30, %v3412_v5 }
 0x121   :  { %2902 = vmatpush3.bf16.msra.mxu1 %v733_v54  ;;  %v3495_v54 = vsub.s32 %v279_v38, %v3412_v5 }
 0x124   :  { %437 = vperm.xlu0 %2973, %v198_v46   ;;  %433 = vperm.xlu1 %2972, %v194_v44   ;;  %v3479_v44 = vsub.s32 %v272_v29, %v3412_v5 }
 0x128   :  { %2974 = vset.pattern.permute.xlu0 %v3263_v2 }
 0x15e   :  { %v3390_v55 = vpop.permute.xlu0 %210 }
 0x15f   :  { %v236_v46 = vrot.slane %v3390_v55, %v3425_v13  ;;  %v3498_v55 = vsub.s32 %v366_v39, %v3412_v5 }
 0x160   :  { %v3392_v56 = vpop.permute.xlu1 %296 }
 0x161   :  { %v323_v47 = vrot.slane %v3392_v56, %v3430_v16 }
 0x163   :  { %v3394_v57 = vpop.permute.xlu0 %377 }
 0x165   :  { %v3396_v58 = vpop.permute.xlu1 %409 }
 0x168   :  { %v3398_v59 = vpop.permute.xlu0 %213 }
 0x169   :  { %v3400_v60 = vpop.permute.xlu1 %381  ;;  %v241_v40 = vrot.slane %v3398_v59, %v3433_v17 }
 0x16b   :  { %v243_v56 = vsel %vm4705_vm0, %v241_v40, %v236_v46  ;;  %v3530_v40 = vld [vmem:[%s4693_s2 + $0x8] sm:$0xff] }
 0x16c   :  { %vm493_vm15 = vcmp.gt.f32.partialorder %v3530_v40, 0.5 }
 0x16d   :  { %v3402_v62 = vpop.permute.xlu0 %413 }
 0x16e   :  { %v3404_v63 = vpop.permute.xlu1 %299 }
 0x16f   :  { %v328_v41 = vrot.slane %v3404_v63, %v3436_v18 }
 0x171   :  { %v330_v59 = vsel %vm329_vm1, %v328_v41, %v323_v47  ;;  %v3535_v41 = vld [vmem:[%s4693_s2] sm:$0xff] }
 0x172   :  { %v3408_v3 = vpop.permute.xlu0 %216  ;;  %v3410_v4 = vpop.permute.xlu1 %302 }
 0x173   :  { %v248_v42 = vrot.slane %v3408_v3, %v3441_v21  ;;  %v335_v43 = vrot.slane %v3410_v4, %v3444_v22 }
 0x175   :  { %v250_v3 = vsel %vm4703_vm2, %v248_v42, %v243_v56  ;;  %v337_v4 = vsel %vm336_vm3, %v335_v43, %v330_v59  ;;  %v440_v42 = vsel %vm374_vm14, %v3394_v57, %v3396_v58  ;;  %v441_v43 = vsel %vm374_vm14, %v3400_v60, %v3402_v62  ;;  %v3554_v56 = vld [vmem:[%s4693_s2 + $0x18] sm:$0xff]  ;;  %v3559_v59 = vld [vmem:[%s4693_s2 + $0x10] sm:$0xff] }
 0x176   :  { %v3419_v11 = vpop.permute.xlu0 %219  ;;  %v3421_v12 = vpop.permute.xlu1 %305 }
 0x177   :  { %v255_v48 = vrot.slane %v3419_v11, %v3449_v27  ;;  %v342_v49 = vrot.slane %v3421_v12, %v3452_v28 }
 0x179   :  { %v257_v8 = vsel %vm4702_vm4, %v255_v48, %v250_v3  ;;  %v344_v9 = vsel %vm343_vm5, %v342_v49, %v337_v4 }
 0x17a   :  { %v223_v23 = vpop.permute.xlu0 %222  ;;  %v309_v24 = vpop.permute.xlu1 %308 }
 0x17b   :  { %v262_v50 = vrot.slane %v223_v23, %v3457_v31  ;;  %v349_v51 = vrot.slane %v309_v24, %v3460_v32 }
 0x17d   :  { %v264_v10 = vsel %vm4701_vm6, %v262_v50, %v257_v8  ;;  %v351_v11 = vsel %vm350_vm7, %v349_v51, %v344_v9  ;;  %vm494_vm6 = vcmp.gt.f32.partialorder %v3559_v59, 0.5 }
 0x17e   :  { %v226_v35 = vpop.permute.xlu0 %225  ;;  %v312_v37 = vpop.permute.xlu1 %311 }
 0x17f   :  { %v269_v61 = vrot.slane %v226_v35, %v3463_v34  ;;  %v356_v63 = vrot.slane %v312_v37, %v3466_v36 }
 0x181   :  { %v271_v19 = vsel %vm4699_vm8, %v269_v61, %v264_v10  ;;  %v358_v20 = vsel %vm4704_vm9, %v356_v63, %v351_v11  ;;  %vm495_vm8 = vcmp.gt.f32.partialorder %v3554_v56, 0.5 }
 0x182   :  { %v229_v52 = vpop.permute.xlu0 %228  ;;  %v315_v53 = vpop.permute.xlu1 %314 }
 0x183   :  { %v276_v6 = vrot.slane %v229_v52, %v3479_v44  ;;  %v363_v7 = vrot.slane %v315_v53, %v3482_v45 }
 0x185   :  { %v278_v25 = vsel %vm4698_vm10, %v276_v6, %v271_v19  ;;  %v365_v26 = vsel %vm4700_vm11, %v363_v7, %v358_v20 }
 0x186   :  { %v232_v12 = vpop.permute.xlu0 %231  ;;  %v318_v15 = vpop.permute.xlu1 %317 }
 0x187   :  { %v283_v23 = vrot.slane %v232_v12, %v3495_v54  ;;  %v370_v24 = vrot.slane %v318_v15, %v3498_v55 }
 0x189   :  { %v285_v29 = vsel %vm4697_vm12, %v283_v23, %v278_v25  ;;  %v372_v30 = vsel %vm4696_vm13, %v370_v24, %v365_v26  ;;  %vm492_vm13 = vcmp.gt.f32.partialorder %v3535_v41, 0.5 }
 0x18a   :  { %v375_v35 = vsel %vm374_vm14, %v285_v29, %v372_v30 }
 0x18b   :  { %v3525_v37 = vrot.slane %v375_v35, %v3513_v14  ;;  %v390_v38 = vpop.permute.xlu0 %389  ;;  %v386_v39 = vpop.permute.xlu1 %385  ;;  %v3594_v35 = vld [vmem:[%s4693_s2 + $0x28] sm:$0xff] }
 0x18c   :  { %vm497_vm4 = vcmp.gt.f32.partialorder %v3594_v35, 0.5 }
 0x18d   :  { %v453_v46 = vadd.f32 %v3525_v37, %v441_v43  ;;  %v452_v47 = vadd.f32 %v3525_v37, %v440_v42 }
 0x18f   :  { %v422_v48 = vpop.permute.xlu0 %421  ;;  %v418_v49 = vpop.permute.xlu1 %417  ;;  %vm461_vm12 = vcmp.ge.f32.partialorder %v453_v46, 0.0  ;;  %v469_v50 = vmul.f32 0.2, %v453_v46  ;;  %vm460_vm10 = vcmp.ge.f32.partialorder %v452_v47, 0.0  ;;  %v468_v51 = vmul.f32 0.2, %v452_v47 }
 0x190   :  { %v443_v57 = vsel %vm374_vm14, %v390_v38, %v422_v48  ;;  %v442_v58 = vsel %vm374_vm14, %v386_v39, %v418_v49  ;;  %v3599_v38 = vld [vmem:[%s4693_s2 + $0x20] sm:$0xff] }
 0x191   :  { %v455_v60 = vadd.f32 %v3525_v37, %v443_v57  ;;  %v454_v62 = vadd.f32 %v3525_v37, %v442_v58  ;;  %v477_v52 = vsel %vm461_vm12, %v453_v46, %v469_v50  ;;  %v476_v53 = vsel %vm460_vm10, %v452_v47, %v468_v51 }
 0x192   :  { %v3563_v61 = vsel %vm493_vm15, %v477_v52, -1e+30  ;;  %v3567_v63 = vsel %vm492_vm13, %v476_v53, -1e+30  ;;  %vm532_vm12 = vcmask 1048064   ;;  %vm496_vm2 = vcmp.gt.f32.partialorder %v3599_v38, 0.5 }
 0x193   :  { %v471_v3 = vmul.f32 0.2, %v455_v60  ;;  %v470_v4 = vmul.f32 0.2, %v454_v62  ;;  %v398_v6 = vpop.permute.xlu0 %397  ;;  %v394_v7 = vpop.permute.xlu1 %393  ;;  %v511_v8 = vsel %vm374_vm14, %v3563_v61, -inf  ;;  %v508_v9 = vsel %vm374_vm14, %v3567_v63, -inf }
 0x194   :  { %512 = vmax.xlane.f32.xlu0 %v511_v8  ;;  %509 = vmax.xlane.f32.xlu1 %v508_v9  ;;  %vm463_vm10 = vcmp.ge.f32.partialorder %v455_v60, 0.0  ;;  %vm462_vm11 = vcmp.ge.f32.partialorder %v454_v62, 0.0  ;;  %v533_v19 = vsel %vm532_vm12, %v3567_v63, -inf  ;;  %v536_v20 = vsel %vm532_vm12, %v3563_v61, -inf  ;;  %v3630_v9 = vld [vmem:[%s4693_s2 + $0x38] sm:$0xff] }
 0x195   :  { %v479_v10 = vsel %vm463_vm10, %v455_v60, %v471_v3  ;;  %v478_v11 = vsel %vm462_vm11, %v454_v62, %v470_v4  ;;  %vm499_vm9 = vcmp.gt.f32.partialorder %v3630_v9, 0.5 }
 0x196   :  { %v3581_v23 = vsel %vm495_vm8, %v479_v10, -1e+30  ;;  %v3585_v24 = vsel %vm494_vm6, %v478_v11, -1e+30  ;;  %v3635_v10 = vld [vmem:[%s4693_s2 + $0x30] sm:$0xff] }
 0x197   :  { %v430_v12 = vpop.permute.xlu0 %429  ;;  %v426_v15 = vpop.permute.xlu1 %425  ;;  %v517_v39 = vsel %vm374_vm14, %v3581_v23, -inf  ;;  %v514_v42 = vsel %vm374_vm14, %v3585_v24, -inf  ;;  %v542_v58 = vsel %vm532_vm12, %v3581_v23, -inf  ;;  %v539_v60 = vsel %vm532_vm12, %v3585_v24, -inf }
 0x198   :  { %v445_v25 = vsel %vm374_vm14, %v398_v6, %v430_v12  ;;  %v444_v26 = vsel %vm374_vm14, %v394_v7, %v426_v15  ;;  %534 = vmax.xlane.f32.xlu0 %v533_v19  ;;  %537 = vmax.xlane.f32.xlu1 %v536_v20  ;;  %vm498_vm0 = vcmp.gt.f32.partialorder %v3635_v10, 0.5 }
 0x199   :  { %v457_v29 = vadd.f32 %v3525_v37, %v445_v25  ;;  %v456_v30 = vadd.f32 %v3525_v37, %v444_v26 }
 0x19b   :  { %v473_v43 = vmul.f32 0.2, %v457_v29  ;;  %v472_v46 = vmul.f32 0.2, %v456_v30  ;;  %v406_v47 = vpop.permute.xlu0 %405  ;;  %v402_v48 = vpop.permute.xlu1 %401  ;;  %vm465_vm11 = vcmp.ge.f32.partialorder %v457_v29, 0.0  ;;  %vm464_vm10 = vcmp.ge.f32.partialorder %v456_v30, 0.0 }
 0x19c   :  { %518 = vmax.xlane.f32.xlu1 %v517_v39  ;;  %515 = vmax.xlane.f32.xlu0 %v514_v42 }
 0x19d   :  { %v481_v49 = vsel %vm465_vm11, %v457_v29, %v473_v43  ;;  %v480_v50 = vsel %vm464_vm10, %v456_v30, %v472_v46 }
 0x19e   :  { %v3613_v62 = vsel %vm497_vm4, %v481_v49, -1e+30  ;;  %v3617_v52 = vsel %vm496_vm2, %v480_v50, -1e+30 }
 0x19f   :  { %v438_v51 = vpop.permute.xlu0 %437  ;;  %v434_v57 = vpop.permute.xlu1 %433  ;;  %v523_v7 = vsel %vm374_vm14, %v3613_v62, -inf  ;;  %v520_v8 = vsel %vm374_vm14, %v3617_v52, -inf  ;;  %v548_v19 = vsel %vm532_vm12, %v3613_v62, -inf  ;;  %v545_v20 = vsel %vm532_vm12, %v3617_v52, -inf }
 0x1a0   :  { %v447_v53 = vsel %vm374_vm14, %v406_v47, %v438_v51  ;;  %v446_v3 = vsel %vm374_vm14, %v402_v48, %v434_v57  ;;  %543 = vmax.xlane.f32.xlu1 %v542_v58  ;;  %540 = vmax.xlane.f32.xlu0 %v539_v60 }
 0x1a1   :  { %v459_v4 = vadd.f32 %v3525_v37, %v447_v53  ;;  %v458_v6 = vadd.f32 %v3525_v37, %v446_v3 }
 0x1a3   :  { %v475_v11 = vmul.f32 0.2, %v459_v4  ;;  %v474_v12 = vmul.f32 0.2, %v458_v6  ;;  %vm467_vm11 = vcmp.ge.f32.partialorder %v459_v4, 0.0  ;;  %vm466_vm10 = vcmp.ge.f32.partialorder %v458_v6, 0.0 }
 0x1a4   :  { %524 = vmax.xlane.f32.xlu1 %v523_v7  ;;  %521 = vmax.xlane.f32.xlu0 %v520_v8 }
 0x1a5   :  { %v483_v37 = vsel %vm467_vm11, %v459_v4, %v475_v11  ;;  %v482_v15 = vsel %vm466_vm10, %v458_v6, %v474_v12  ;;  %vm4713_vm11 = vcmask 458112   ;;  %vm4714_vm10 = vcmask 523712  }
 0x1a6   :  { %v3645_v25 = vsel %vm499_vm9, %v483_v37, -1e+30  ;;  %v506_v26 = vsel %vm498_vm0, %v482_v15, -1e+30 }
 0x1a7   :  { %v529_v29 = vsel %vm374_vm14, %v3645_v25, -inf  ;;  %v526_v30 = vsel %vm374_vm14, %v506_v26, -inf  ;;  %v554_v39 = vsel %vm532_vm12, %v3645_v25, -inf  ;;  %v551_v42 = vsel %vm532_vm12, %v506_v26, -inf }
 0x1a8   :  { %549 = vmax.xlane.f32.xlu1 %v548_v19  ;;  %546 = vmax.xlane.f32.xlu0 %v545_v20 }
 0x1ac   :  { %530 = vmax.xlane.f32.xlu1 %v529_v29  ;;  %527 = vmax.xlane.f32.xlu0 %v526_v30 }
 0x1b0   :  { %555 = vmax.xlane.f32.xlu1 %v554_v39  ;;  %552 = vmax.xlane.f32.xlu0 %v551_v42 }
 0x21d   :  { %v513_v43 = vpop.xlane.xlu0 %512  ;;  %v510_v46 = vpop.xlane.xlu1 %509 }
 0x221   :  { %v535_v47 = vpop.xlane.xlu0 %534  ;;  %v538_v48 = vpop.xlane.xlu1 %537 }
 0x222   :  { %v557_v49 = vsel %vm374_vm14, %v510_v46, %v535_v47  ;;  %v558_v50 = vsel %vm374_vm14, %v513_v43, %v538_v48 }
 0x223   :  { %v565_v51 = vsub.f32 %v3567_v63, %v557_v49  ;;  %v566_v57 = vsub.f32 %v3563_v61, %v558_v50 }
 0x225   :  { %v573_v58 = vmul.f32 1.442695, %v565_v51  ;;  %v575_v60 = vmul.f32 1.442695, %v566_v57  ;;  %v516_v53 = vpop.xlane.xlu0 %515  ;;  %v519_v3 = vpop.xlane.xlu1 %518 }
 0x227   :  { %3070 = vpow2.f32 %v573_v58 }
 0x228   :  { %3072 = vpow2.f32 %v575_v60 }
 0x229   :  { %v541_v4 = vpop.xlane.xlu0 %540  ;;  %v544_v6 = vpop.xlane.xlu1 %543 }
 0x22a   :  { %v559_v7 = vsel %vm374_vm14, %v516_v53, %v541_v4  ;;  %v560_v8 = vsel %vm374_vm14, %v519_v3, %v544_v6 }
 0x22b   :  { %v567_v11 = vsub.f32 %v3585_v24, %v559_v7  ;;  %v568_v12 = vsub.f32 %v3581_v23, %v560_v8 }
 0x22d   :  { %v577_v37 = vmul.f32 1.442695, %v567_v11  ;;  %v579_v63 = vmul.f32 1.442695, %v568_v12  ;;  %v522_v15 = vpop.xlane.xlu0 %521  ;;  %v525_v61 = vpop.xlane.xlu1 %524 }
 0x22f   :  { %3074 = vpow2.f32 %v577_v37 }
 0x230   :  { %3076 = vpow2.f32 %v579_v63 }
 0x231   :  { %v547_v19 = vpop.xlane.xlu0 %546  ;;  %v550_v20 = vpop.xlane.xlu1 %549 }
 0x232   :  { %v561_v29 = vsel %vm374_vm14, %v522_v15, %v547_v19  ;;  %v562_v30 = vsel %vm374_vm14, %v525_v61, %v550_v20 }
 0x233   :  { %v569_v39 = vsub.f32 %v3617_v52, %v561_v29  ;;  %v570_v42 = vsub.f32 %v3613_v62, %v562_v30 }
 0x234   :  { %v3071_v43 = vpop.eup %3070 }
 0x235   :  { %v3073_v24 = vpop.eup %3072  ;;  %v581_v46 = vmul.f32 1.442695, %v569_v39  ;;  %v583_v23 = vmul.f32 1.442695, %v570_v42  ;;  %v528_v47 = vpop.xlane.xlu0 %527  ;;  %v3669_v49 = vsel %vm492_vm13, %v3071_v43, 0.0  ;;  %vm4711_vm13 = vcmask 982912  }
 0x236   :  { %v531_v48 = vpop.xlane.xlu1 %530  ;;  %653 = vrot.lane.b32.xlu0 %v3669_v49, %s3265_s26  ;;  %v3675_v50 = vsel %vm493_vm15, %v3073_v24, 0.0  ;;  %v597_v10 = vsel %vm374_vm14, %v3669_v49, 0.0  ;;  %vm4712_vm15 = vcmask 392512  }
 0x237   :  { %3078 = vpow2.f32 %v581_v46  ;;  %655 = vrot.lane.b32.xlu1 %v3675_v50, %s3265_s26  ;;  %v600_v35 = vsel %vm374_vm14, %v3675_v50, 0.0 }
 0x238   :  { %3080 = vpow2.f32 %v583_v23 }
 0x239   :  { %v553_v62 = vpop.xlane.xlu0 %552 }
 0x23a   :  { %v556_v52 = vpop.xlane.xlu1 %555  ;;  %v563_v51 = vsel %vm374_vm14, %v528_v47, %v553_v62 }
 0x23b   :  { %v564_v41 = vsel %vm374_vm14, %v531_v48, %v556_v52  ;;  %v571_v57 = vsub.f32 %v506_v26, %v563_v51 }
 0x23c   :  { %v572_v58 = vsub.f32 %v3645_v25, %v564_v41  ;;  %v3075_v60 = vpop.eup %3074 }
 0x23d   :  { %v3077_v53 = vpop.eup %3076  ;;  %v585_v3 = vmul.f32 1.442695, %v571_v57  ;;  %v3684_v4 = vsel %vm494_vm6, %v3075_v60, 0.0  ;;  %vm4708_vm6 = vcmask 195712  }
 0x23e   :  { %v587_v40 = vmul.f32 1.442695, %v572_v58  ;;  %657 = vrot.lane.b32.xlu1 %v3684_v4, %s3265_s26  ;;  %v3690_v6 = vsel %vm495_vm8, %v3077_v53, 0.0  ;;  %v603_v12 = vsel %vm374_vm14, %v3684_v4, 0.0  ;;  %vm4709_vm8 = vcmask 261312  }
 0x23f   :  { %3082 = vpow2.f32 %v585_v3  ;;  %659 = vrot.lane.b32.xlu0 %v3690_v6, %s3265_s26  ;;  %v606_v9 = vsel %vm374_vm14, %v3690_v6, 0.0 }
 0x240   :  { %3084 = vpow2.f32 %v587_v40 }
 0x244   :  { %v3079_v25 = vpop.eup %3078 }
 0x245   :  { %v3081_v26 = vpop.eup %3080  ;;  %v3696_v7 = vsel %vm496_vm2, %v3079_v25, 0.0  ;;  %vm4706_vm2 = vcmask 130112  }
 0x246   :  { %661 = vrot.lane.b32.xlu1 %v3696_v7, %s3265_s26  ;;  %v3702_v59 = vsel %vm497_vm4, %v3081_v26, 0.0  ;;  %v609_v39 = vsel %vm374_vm14, %v3696_v7, 0.0  ;;  %vm4707_vm4 = vcmask 917312  }
 0x247   :  { %663 = vrot.lane.b32.xlu0 %v3702_v59, %s3265_s26  ;;  %v612_v42 = vsel %vm374_vm14, %v3702_v59, 0.0 }
 0x24c   :  { %v3083_v56 = vpop.eup %3082 }
 0x24d   :  { %v3085_v8 = vpop.eup %3084  ;;  %v3708_v11 = vsel %vm498_vm0, %v3083_v56, 0.0  ;;  %vm823_vm0 = vcmp.lt.s32.totalorder %v3406_v0, 32 }
 0x24e   :  { %665 = vrot.lane.b32.xlu1 %v3708_v11, %s3265_s26  ;;  %v3714_v38 = vsel %vm499_vm9, %v3085_v8, 0.0  ;;  %v615_v43 = vsel %vm374_vm14, %v3708_v11, 0.0  ;;  %vm4710_vm9 = vcmask 326912  }
 0x24f   :  { %667 = vrot.lane.b32.xlu0 %v3714_v38, %s3265_s26  ;;  %v618_v46 = vsel %vm374_vm14, %v3714_v38, 0.0 }
 0x26e   :  { %601 = vadd.xlane.f32.xlu0 %v600_v35 }
 0x272   :  { %604 = vadd.xlane.f32.xlu0 %v603_v12  ;;  %598 = vadd.xlane.f32.xlu1 %v597_v10 }
 0x276   :  { %607 = vadd.xlane.f32.xlu1 %v606_v9 }
 0x2a8   :  { %v654_v37 = vpop.permute.xlu0 %653 }
 0x2a9   :  { %v656_v63 = vpop.permute.xlu1 %655  ;;  %v677_v15 = vsel %vm374_vm14, %v654_v37, 0.0 }
 0x2aa   :  { %678 = vadd.xlane.f32.xlu0 %v677_v15  ;;  %v680_v61 = vsel %vm374_vm14, %v656_v63, 0.0 }
 0x2ab   :  { %681 = vadd.xlane.f32.xlu1 %v680_v61 }
 0x2b0   :  { %v658_v19 = vpop.permute.xlu1 %657 }
 0x2b1   :  { %v660_v20 = vpop.permute.xlu0 %659  ;;  %v683_v29 = vsel %vm374_vm14, %v658_v19, 0.0 }
 0x2b2   :  { %v686_v30 = vsel %vm374_vm14, %v660_v20, 0.0  ;;  %684 = vadd.xlane.f32.xlu0 %v683_v29 }
 0x2b3   :  { %687 = vadd.xlane.f32.xlu1 %v686_v30 }
 0x2b6   :  { %610 = vadd.xlane.f32.xlu0 %v609_v39 }
 0x2b7   :  { %613 = vadd.xlane.f32.xlu1 %v612_v42 }
 0x2b8   :  { %v662_v24 = vpop.permute.xlu1 %661 }
 0x2b9   :  { %v664_v23 = vpop.permute.xlu0 %663  ;;  %v689_v47 = vsel %vm374_vm14, %v662_v24, 0.0 }
 0x2ba   :  { %616 = vadd.xlane.f32.xlu0 %v615_v43  ;;  %v692_v48 = vsel %vm374_vm14, %v664_v23, 0.0 }
 0x2bb   :  { %619 = vadd.xlane.f32.xlu1 %v618_v46 }
 0x2be   :  { %690 = vadd.xlane.f32.xlu0 %v689_v47 }
 0x2bf   :  { %693 = vadd.xlane.f32.xlu1 %v692_v48 }
 0x2c0   :  { %v666_v62 = vpop.permute.xlu1 %665 }
 0x2c1   :  { %v668_v52 = vpop.permute.xlu0 %667  ;;  %v695_v51 = vsel %vm374_vm14, %v666_v62, 0.0 }
 0x2c2   :  { %v698_v41 = vsel %vm374_vm14, %v668_v52, 0.0  ;;  %696 = vadd.xlane.f32.xlu0 %v695_v51 }
 0x2c3   :  { %699 = vadd.xlane.f32.xlu1 %v698_v41 }
 0x2f7   :  { %v602_v57 = vpop.xlane.xlu0 %601 }
 0x2f8   :  { %v622_v40 = vmax.f32 %v602_v57, 1e-30 }
 0x2fb   :  { %v599_v58 = vpop.xlane.xlu1 %598  ;;  %v605_v60 = vpop.xlane.xlu0 %604 }
 0x2fc   :  { %v621_v53 = vmax.f32 %v599_v58, 1e-30  ;;  %v623_v35 = vmax.f32 %v605_v60, 1e-30 }
 0x2fe   :  { %3086 = vrcp.f32 %v621_v53 }
 0x2ff   :  { %v608_v3 = vpop.xlane.xlu1 %607  ;;  %3088 = vrcp.f32 %v622_v40 }
 0x300   :  { %v624_v12 = vmax.f32 %v608_v3, 1e-30 }
 0x30b   :  { %v3087_v19 = vpop.eup %3086 }
 0x30c   :  { %v3089_v20 = vpop.eup %3088  ;;  %v637_v24 = vmul.f32 %v3087_v19, %v3669_v49 }
 0x30d   :  { %v638_v47 = vmul.f32 %v3089_v20, %v3675_v50 }
 0x333   :  { %v679_v25 = vpop.xlane.xlu0 %678 }
 0x334   :  { %v701_v26 = vmax.f32 %v679_v25, 1e-30  ;;  %v682_v56 = vpop.xlane.xlu1 %681 }
 0x335   :  { %v702_v8 = vmax.f32 %v682_v56, 1e-30 }
 0x336   :  { %3090 = vrcp.f32 %v701_v26 }
 0x337   :  { %3092 = vrcp.f32 %v702_v8 }
 0x338   :  { %3094 = vrcp.f32 %v623_v35 }
 0x339   :  { %3096 = vrcp.f32 %v624_v12 }
 0x33b   :  { %v685_v10 = vpop.xlane.xlu0 %684 }
 0x33c   :  { %v703_v9 = vmax.f32 %v685_v10, 1e-30  ;;  %v688_v37 = vpop.xlane.xlu1 %687 }
 0x33d   :  { %v704_v63 = vmax.f32 %v688_v37, 1e-30 }
 0x33e   :  { %3098 = vrcp.f32 %v703_v9 }
 0x33f   :  { %3100 = vrcp.f32 %v704_v63  ;;  %v611_v15 = vpop.xlane.xlu0 %610 }
 0x340   :  { %v614_v61 = vpop.xlane.xlu1 %613  ;;  %v625_v42 = vmax.f32 %v611_v15, 1e-30 }
 0x341   :  { %v626_v23 = vmax.f32 %v614_v61, 1e-30 }
 0x342   :  { %3102 = vrcp.f32 %v625_v42 }
 0x343   :  { %v3091_v29 = vpop.eup %3090  ;;  %v617_v30 = vpop.xlane.xlu0 %616  ;;  %3104 = vrcp.f32 %v626_v23 }
 0x344   :  { %v3093_v39 = vpop.eup %3092  ;;  %v620_v43 = vpop.xlane.xlu1 %619  ;;  %v717_v46 = vmul.f32 %v3091_v29, %v3669_v49  ;;  %v627_v41 = vmax.f32 %v617_v30, 1e-30 }
 0x345   :  { %v718_v48 = vmul.f32 %v3093_v39, %v3675_v50  ;;  %v3095_v53 = vpop.eup %3094  ;;  %v628_v3 = vmax.f32 %v620_v43, 1e-30 }
 0x346   :  { %v725_v62 = vsel %vm374_vm14, %v637_v24, %v717_v46  ;;  %v3097_v49 = vpop.eup %3096  ;;  %v639_v35 = vmul.f32 %v3095_v53, %v3684_v4 }
 0x347   :  { %v691_v52 = vpop.xlane.xlu0 %690  ;;  %v726_v51 = vsel %vm374_vm14, %v638_v47, %v718_v48  ;;  %v640_v9 = vmul.f32 %v3097_v49, %v3690_v6 }
 0x348   :  { %v705_v57 = vmax.f32 %v691_v52, 1e-30  ;;  %v694_v58 = vpop.xlane.xlu1 %693  ;;  %v741_v60 = vpack.c.bf16 %v726_v51, %v725_v62 }
 0x349   :  { %v706_v40 = vmax.f32 %v694_v58, 1e-30 }
 0x34a   :  { %3106 = vrcp.f32 %v705_v57  ;;  %2903 = vmatprep.mubr.bf16.mxu1 %v741_v60  ;;  %v3769_v60 = vld [vmem:[%s4694_s3] sm:$0xff] }
 0x34b   :  { %v3099_v25 = vpop.eup %3098  ;;  %3108 = vrcp.f32 %v706_v40  ;;  %v697_v50 = vpop.xlane.xlu0 %696  ;;  %v749_v53 = vrot.slane %v3769_v60, %v3513_v14 }
 0x34c   :  { %v3101_v26 = vpop.eup %3100  ;;  %3110 = vrcp.f32 %v627_v41  ;;  %v707_v56 = vmax.f32 %v697_v50, 1e-30  ;;  %v700_v8 = vpop.xlane.xlu1 %699  ;;  %v719_v12 = vmul.f32 %v3099_v25, %v3684_v4 }
 0x34d   :  { %3112 = vrcp.f32 %v628_v3  ;;  %v708_v10 = vmax.f32 %v700_v8, 1e-30  ;;  %v720_v37 = vmul.f32 %v3101_v26, %v3690_v6  ;;  %v3266_v26 = vmov 0.0  }
 0x34e   :  { %3114 = vrcp.f32 %v707_v56  ;;  %v727_v63 = vsel %vm374_vm14, %v639_v35, %v719_v12  ;;  %v3775_v56 = vsel %vm823_vm0, 1.0, %v3266_v26  ;;  %vm4715_vm0 = vcmask 1048512  }
 0x34f   :  { %3116 = vrcp.f32 %v708_v10  ;;  %v728_v15 = vsel %vm374_vm14, %v640_v9, %v720_v37  ;;  %v3103_v19 = vpop.eup %3102 }
 0x350   :  { %v742_v61 = vpack.c.bf16 %v728_v15, %v727_v63  ;;  %v3105_v20 = vpop.eup %3104  ;;  %v641_v4 = vmul.f32 %v3103_v19, %v3696_v7 }
 0x351   :  { %v642_v43 = vmul.f32 %v3105_v20, %v3702_v59 }
 0x352   :  { %2904 = vmatmul.mubr.bf16.vlgmr.msra.gmra.mxu1 %v742_v61 }
 0x357   :  { %v3107_v29 = vpop.eup %3106 }
 0x358   :  { %v3109_v30 = vpop.eup %3108  ;;  %v721_v39 = vmul.f32 %v3107_v29, %v3696_v7 }
 0x359   :  { %v3111_v42 = vpop.eup %3110  ;;  %v722_v6 = vmul.f32 %v3109_v30, %v3702_v59 }
 0x35a   :  { %v3113_v24 = vpop.eup %3112  ;;  %v729_v46 = vsel %vm374_vm14, %v641_v4, %v721_v39  ;;  %v643_v52 = vmul.f32 %v3111_v42, %v3708_v11 }
 0x35b   :  { %v3115_v23 = vpop.eup %3114  ;;  %v730_v47 = vsel %vm374_vm14, %v642_v43, %v722_v6  ;;  %v644_v41 = vmul.f32 %v3113_v24, %v3714_v38 }
 0x35c   :  { %v3117_v48 = vpop.eup %3116  ;;  %v743_v62 = vpack.c.bf16 %v730_v47, %v729_v46  ;;  %v723_v51 = vmul.f32 %v3115_v23, %v3708_v11 }
 0x35d   :  { %v724_v7 = vmul.f32 %v3117_v48, %v3714_v38 }
 0x35e   :  { %2907 = vmatprep.mubr.bf16.mxu1 %v743_v62  ;;  %v731_v57 = vsel %vm374_vm14, %v643_v52, %v723_v51  ;;  %v3022_v51 = vld [vmem:[%s4691_s1 + $0xf0] ss:$8 sps:$4 sm:$0xff]  }
 0x35f   :  { %v732_v59 = vsel %vm374_vm14, %v644_v41, %v724_v7  ;;  %v3024_v41 = vld [vmem:[%s4691_s1 + $0xf4] ss:$8 sps:$4 sm:$0xff]  }
 0x360   :  { %v744_v58 = vpack.c.bf16 %v732_v59, %v731_v57  ;;  %1055 = vmatprep.subr.bf16.mxu0 %v3024_v41 }
 0x361   :  { %1056 = vmatpush1.bf16.msra.mxu0 %v3022_v51  ;;  %v3030_v51 = vld [vmem:[%s4691_s1 + $0xd4] ss:$8 sps:$4 sm:$0xff]  }
 0x362   :  { %2908 = vmatmul.mubr.bf16.gmra.mxu1 %v744_v58 }
 0x412   :  { %v2905_v11 = vpop.f32.mrf.mxu1 }
 0x413   :  { %v793_v40 = vadd.f32 %v2905_v11, %v749_v53 }
 0x414   :  { %v784_v3 = vpop.f32.mrf.mxu1 }
 0x415   :  { %v785_v49 = vadd.f32 %v784_v3, %v749_v53  ;;  %v817_v8 = vmax.f32 %v793_v40, 0.0 }
 0x416   :  { %v2906_v38 = vpop.f32.mrf.mxu1 }
 0x417   :  { %v815_v25 = vmax.f32 %v785_v49, 0.0  ;;  %v796_v35 = vadd.f32 %v2906_v38, %v749_v53  ;;  %v828_v15 = vmul.f32 %v3775_v56, %v817_v8 }
 0x418   :  { %v787_v50 = vpop.f32.mrf.mxu1 }
 0x419   :  { %v788_v12 = vadd.f32 %v787_v50, %v749_v53  ;;  %v826_v10 = vmul.f32 %v3775_v56, %v815_v25  ;;  %v818_v37 = vmax.f32 %v796_v35, 0.0 }
 0x41b   :  { %v816_v9 = vmax.f32 %v788_v12, 0.0  ;;  %834 = vadd.xlane.f32.xlu0 %v826_v10  ;;  %v829_v61 = vmul.f32 %v3775_v56, %v818_v37 }
 0x41d   :  { %v827_v63 = vmul.f32 %v3775_v56, %v816_v9 }
 0x41f   :  { %836 = vadd.xlane.f32.xlu1 %v827_v63  ;;  %838 = vadd.xlane.f32.xlu0 %v828_v15 }
 0x422   :  { %v2909_v19 = vpop.f32.mrf.mxu1 }
 0x423   :  { %840 = vadd.xlane.f32.xlu1 %v829_v61  ;;  %v809_v29 = vadd.f32 %v2909_v19, %v749_v53 }
 0x424   :  { %v800_v20 = vpop.f32.mrf.mxu1 }
 0x425   :  { %v801_v30 = vadd.f32 %v800_v20, %v749_v53  ;;  %v821_v43 = vmax.f32 %v809_v29, 0.0 }
 0x426   :  { %v2910_v4 = vpop.f32.mrf.mxu1 }
 0x427   :  { %v819_v39 = vmax.f32 %v801_v30, 0.0  ;;  %v812_v6 = vadd.f32 %v2910_v4, %v749_v53  ;;  %v832_v62 = vmul.f32 %v3775_v56, %v821_v43 }
 0x428   :  { %v803_v42 = vpop.f32.mrf.mxu1 }
 0x429   :  { %v804_v24 = vadd.f32 %v803_v42, %v749_v53  ;;  %v830_v46 = vmul.f32 %v3775_v56, %v819_v39  ;;  %v822_v47 = vmax.f32 %v812_v6, 0.0  ;;  %v3025_v39 = vld [vmem:[%s4691_s1 + $0xe0] ss:$8 sps:$4 sm:$0xff]  }
 0x42b   :  { %v820_v23 = vmax.f32 %v804_v24, 0.0  ;;  %842 = vadd.xlane.f32.xlu0 %v830_v46  ;;  %v833_v52 = vmul.f32 %v3775_v56, %v822_v47 }
 0x42d   :  { %v831_v48 = vmul.f32 %v3775_v56, %v820_v23 }
 0x42f   :  { %844 = vadd.xlane.f32.xlu1 %v831_v48  ;;  %846 = vadd.xlane.f32.xlu0 %v832_v62 }
 0x433   :  { %848 = vadd.xlane.f32.xlu1 %v833_v52 }
 0x4a4   :  { %v835_v7 = vpop.xlane.xlu0 %834 }
 0x4a5   :  { %v850_v57 = vmul.f32 0.03125, %v835_v7 }
 0x4a7   :  { %v858_v59 = vsub.f32 %v826_v10, %v850_v57 }
 0x4a8   :  { %v837_v58 = vpop.xlane.xlu1 %836  ;;  %v839_v53 = vpop.xlane.xlu0 %838 }
 0x4a9   :  { %v851_v11 = vmul.f32 0.03125, %v837_v58  ;;  %v852_v3 = vmul.f32 0.03125, %v839_v53  ;;  %v3792_v40 = vmul.f32 %v3775_v56, %v858_v59  ;;  %v3033_v53 = vld [vmem:[%s4691_s1 + $0xc4] ss:$8 sps:$4 sm:$0xff]  }
 0x4ab   :  { %v859_v49 = vsub.f32 %v827_v63, %v851_v11  ;;  %v860_v38 = vsub.f32 %v828_v15, %v852_v3  ;;  %v874_v25 = vmul.f32 %v3792_v40, %v3792_v40 }
 0x4ac   :  { %v841_v50 = vpop.xlane.xlu1 %840 }
 0x4ad   :  { %v853_v8 = vmul.f32 0.03125, %v841_v50  ;;  %882 = vadd.xlane.f32.xlu0 %v874_v25  ;;  %v3797_v35 = vmul.f32 %v3775_v56, %v859_v49  ;;  %v3800_v12 = vmul.f32 %v3775_v56, %v860_v38  ;;  %v3036_v49 = vld [vmem:[%s4691_s1 + $0xb4] ss:$8 sps:$4 sm:$0xff]   ;;  %v3034_v38 = vld [vmem:[%s4691_s1 + $0xb0] ss:$8 sps:$4 sm:$0xff]  }
 0x4ae   :  { %v3039_v25 = vld [vmem:[%s4691_s1 + $0xa4] ss:$8 sps:$4 sm:$0xff]   ;;  %v3037_v50 = vld [vmem:[%s4691_s1 + $0xa0] ss:$8 sps:$4 sm:$0xff]  }
 0x4af   :  { %v861_v10 = vsub.f32 %v829_v61, %v853_v8  ;;  %v875_v9 = vmul.f32 %v3797_v35, %v3797_v35  ;;  %v876_v37 = vmul.f32 %v3800_v12, %v3800_v12  ;;  %v3027_v61 = vld [vmem:[%s4691_s1 + $0xe4] ss:$8 sps:$4 sm:$0xff]   ;;  %v3042_v8 = vld [vmem:[%s4691_s1 + $0x94] ss:$8 sps:$4 sm:$0xff]  }
 0x4b0   :  { %1057 = vmatprep.subr.bf16.mxu0 %v3027_v61 }
 0x4b1   :  { %884 = vadd.xlane.f32.xlu1 %v875_v9  ;;  %886 = vadd.xlane.f32.xlu0 %v876_v37  ;;  %v3807_v63 = vmul.f32 %v3775_v56, %v861_v10  ;;  %v3040_v10 = vld [vmem:[%s4691_s1 + $0x90] ss:$8 sps:$4 sm:$0xff]   ;;  %v3045_v9 = vld [vmem:[%s4691_s1 + $0x84] ss:$8 sps:$4 sm:$0xff]   ;;  %v3043_v37 = vld [vmem:[%s4691_s1 + $0x80] ss:$8 sps:$4 sm:$0xff]  }
 0x4b2   :  { %1058 = vmatpush1.bf16.msra.mxu0 %v3025_v39 }
 0x4b3   :  { %v877_v15 = vmul.f32 %v3807_v63, %v3807_v63  ;;  %1059 = vmatprep.subr.bf16.mxu0 %v3030_v51 }
 0x4b4   :  { %v843_v19 = vpop.xlane.xlu0 %842 }
 0x4b5   :  { %v854_v20 = vmul.f32 0.03125, %v843_v19  ;;  %888 = vadd.xlane.f32.xlu1 %v877_v15 }
 0x4b7   :  { %v862_v29 = vsub.f32 %v830_v46, %v854_v20 }
 0x4b8   :  { %v845_v30 = vpop.xlane.xlu1 %844  ;;  %v847_v4 = vpop.xlane.xlu0 %846 }
 0x4b9   :  { %v855_v42 = vmul.f32 0.03125, %v845_v30  ;;  %v856_v43 = vmul.f32 0.03125, %v847_v4  ;;  %v3818_v6 = vmul.f32 %v3775_v56, %v862_v29 }
 0x4bb   :  { %v863_v24 = vsub.f32 %v831_v48, %v855_v42  ;;  %v864_v23 = vsub.f32 %v832_v62, %v856_v43  ;;  %v878_v46 = vmul.f32 %v3818_v6, %v3818_v6  ;;  %v3028_v48 = vld [vmem:[%s4691_s1 + $0xd0] ss:$8 sps:$4 sm:$0xff]  }
 0x4bc   :  { %v849_v47 = vpop.xlane.xlu1 %848  ;;  %1060 = vmatpush1.bf16.msra.mxu0 %v3028_v48 }
 0x4bd   :  { %v857_v41 = vmul.f32 0.03125, %v849_v47  ;;  %890 = vadd.xlane.f32.xlu0 %v878_v46  ;;  %v3826_v7 = vmul.f32 %v3775_v56, %v863_v24  ;;  %v3829_v57 = vmul.f32 %v3775_v56, %v864_v23  ;;  %1061 = vmatprep.subr.bf16.mxu0 %v3033_v53  ;;  %v3874_v46 = vsub.s32 1, %v3412_v5 }
 0x4bf   :  { %v865_v62 = vsub.f32 %v833_v52, %v857_v41  ;;  %v879_v59 = vmul.f32 %v3826_v7, %v3826_v7  ;;  %v880_v58 = vmul.f32 %v3829_v57, %v3829_v57  ;;  %v3031_v52 = vld [vmem:[%s4691_s1 + $0xc0] ss:$8 sps:$4 sm:$0xff]   ;;  %v933_v48 = vrot.slane %v3769_v60, %v3874_v46 }
 0x4c0   :  { %1062 = vmatpush1.bf16.msra.mxu0 %v3031_v52 }
 0x4c1   :  { %892 = vadd.xlane.f32.xlu1 %v879_v59  ;;  %894 = vadd.xlane.f32.xlu0 %v880_v58  ;;  %v3842_v11 = vmul.f32 %v3775_v56, %v865_v62  ;;  %v3879_v62 = vsub.s32 2, %v3412_v5 }
 0x4c2   :  { %1063 = vmatprep.subr.bf16.mxu0 %v3036_v49 }
 0x4c3   :  { %v881_v3 = vmul.f32 %v3842_v11, %v3842_v11 }
 0x4c4   :  { %1064 = vmatpush1.bf16.msra.mxu0 %v3034_v38 }
 0x4c5   :  { %896 = vadd.xlane.f32.xlu1 %v881_v3  ;;  %1065 = vmatprep.subr.bf16.mxu0 %v3039_v25  ;;  %v945_v25 = vrot.slane %v3769_v60, %v3879_v62 }
 0x4c8   :  { %1066 = vmatpush1.bf16.msra.mxu0 %v3037_v50 }
 0x4c9   :  { %1067 = vmatprep.subr.bf16.mxu0 %v3042_v8 }
 0x4cc   :  { %1068 = vmatpush1.bf16.msra.mxu0 %v3040_v10 }
 0x4cd   :  { %1069 = vmatprep.subr.bf16.mxu0 %v3045_v9 }
 0x4d0   :  { %1070 = vmatpush1.bf16.msra.mxu0 %v3043_v37 }
 0x536   :  { %v883_v15 = vpop.xlane.xlu0 %882 }
 0x537   :  { %v898_v19 = vmul.f32 0.03125, %v883_v15 }
 0x539   :  { %v906_v20 = vadd.f32 1e-05, %v898_v19 }
 0x53a   :  { %v885_v29 = vpop.xlane.xlu1 %884  ;;  %v887_v61 = vpop.xlane.xlu0 %886 }
 0x53b   :  { %3118 = vrsqrt.f32 %v906_v20  ;;  %v899_v30 = vmul.f32 0.03125, %v885_v29  ;;  %v900_v4 = vmul.f32 0.03125, %v887_v61 }
 0x53d   :  { %v907_v39 = vadd.f32 1e-05, %v899_v30  ;;  %v908_v42 = vadd.f32 1e-05, %v900_v4 }
 0x53e   :  { %v889_v43 = vpop.xlane.xlu1 %888 }
 0x53f   :  { %3120 = vrsqrt.f32 %v907_v39  ;;  %v901_v24 = vmul.f32 0.03125, %v889_v43 }
 0x540   :  { %3122 = vrsqrt.f32 %v908_v42 }
 0x541   :  { %v909_v23 = vadd.f32 1e-05, %v901_v24 }
 0x543   :  { %3124 = vrsqrt.f32 %v909_v23 }
 0x546   :  { %v891_v47 = vpop.xlane.xlu0 %890 }
 0x547   :  { %v902_v51 = vmul.f32 0.03125, %v891_v47 }
 0x548   :  { %v3119_v41 = vpop.eup %3118 }
 0x549   :  { %v922_v59 = vmul.f32 %v3119_v41, %v3792_v40  ;;  %v910_v58 = vadd.f32 1e-05, %v902_v51 }
 0x54a   :  { %v893_v53 = vpop.xlane.xlu1 %892  ;;  %v895_v52 = vpop.xlane.xlu0 %894 }
 0x54b   :  { %3126 = vrsqrt.f32 %v910_v58  ;;  %v903_v3 = vmul.f32 0.03125, %v893_v53  ;;  %v904_v49 = vmul.f32 0.03125, %v895_v52  ;;  %v934_v50 = vmul.f32 %v933_v48, %v922_v59 }
 0x54c   :  { %v3121_v38 = vpop.eup %3120 }
 0x54d   :  { %v3123_v8 = vpop.eup %3122  ;;  %v923_v10 = vmul.f32 %v3121_v38, %v3797_v35  ;;  %v911_v9 = vadd.f32 1e-05, %v903_v3  ;;  %v912_v37 = vadd.f32 1e-05, %v904_v49  ;;  %v946_v20 = vadd.f32 %v945_v25, %v934_v50 }
 0x54e   :  { %v897_v5 = vpop.xlane.xlu1 %896  ;;  %v924_v29 = vmul.f32 %v3123_v8, %v3800_v12 }
 0x54f   :  { %3128 = vrsqrt.f32 %v911_v9  ;;  %v905_v15 = vmul.f32 0.03125, %v897_v5  ;;  %v935_v40 = vmul.f32 %v933_v48, %v923_v10 }
 0x550   :  { %v3125_v19 = vpop.eup %3124  ;;  %3130 = vrsqrt.f32 %v912_v37  ;;  %v936_v35 = vmul.f32 %v933_v48, %v924_v29 }
 0x551   :  { %v913_v61 = vadd.f32 1e-05, %v905_v15  ;;  %v947_v30 = vadd.f32 %v945_v25, %v935_v40  ;;  %v925_v4 = vmul.f32 %v3125_v19, %v3807_v63 }
 0x552   :  { %v948_v24 = vadd.f32 %v945_v25, %v936_v35 }
 0x553   :  { %3132 = vrsqrt.f32 %v913_v61  ;;  %v971_v60 = vpack.c.bf16 %v947_v30, %v946_v20  ;;  %v937_v39 = vmul.f32 %v933_v48, %v925_v4 }
 0x555   :  { %1088 = vmatmul.mubr.bf16.vlgmr.msra.gmra.mxu0 %v971_v60  ;;  %v949_v42 = vadd.f32 %v945_v25, %v937_v39 }
 0x556   :  { %1097 = vmatprep.mubr.bf16.mxu0 %v3262_v1 }
 0x557   :  { %v972_v47 = vpack.c.bf16 %v949_v42, %v948_v24 }
 0x558   :  { %v3127_v43 = vpop.eup %3126 }
 0x559   :  { %v926_v23 = vmul.f32 %v3127_v43, %v3818_v6 }
 0x55b   :  { %v938_v41 = vmul.f32 %v933_v48, %v926_v23 }
 0x55c   :  { %v3129_v51 = vpop.eup %3128 }
 0x55d   :  { %1098 = vmatmul.mubr.bf16.gmra.mxu0 %v972_v47  ;;  %v927_v12 = vmul.f32 %v3129_v51, %v3826_v7  ;;  %v3131_v59 = vpop.eup %3130  ;;  %v950_v53 = vadd.f32 %v945_v25, %v938_v41 }
 0x55e   :  { %1107 = vmatprep.mubr.bf16.mxu0 %v3262_v1  ;;  %v928_v3 = vmul.f32 %v3131_v59, %v3829_v57 }
 0x55f   :  { %v939_v63 = vmul.f32 %v933_v48, %v927_v12 }
 0x560   :  { %v3133_v58 = vpop.eup %3132  ;;  %v940_v6 = vmul.f32 %v933_v48, %v928_v3 }
 0x561   :  { %v951_v52 = vadd.f32 %v945_v25, %v939_v63  ;;  %v929_v49 = vmul.f32 %v3133_v58, %v3842_v11 }
 0x562   :  { %v952_v7 = vadd.f32 %v945_v25, %v940_v6 }
 0x563   :  { %v973_v38 = vpack.c.bf16 %v951_v52, %v950_v53  ;;  %v941_v50 = vmul.f32 %v933_v48, %v929_v49 }
 0x565   :  { %1108 = vmatmul.mubr.bf16.gmra.mxu0 %v973_v38  ;;  %v953_v8 = vadd.f32 %v945_v25, %v941_v50 }
 0x566   :  { %1117 = vmatprep.mubr.bf16.mxu0 %v3262_v1 }
 0x567   :  { %v974_v10 = vpack.c.bf16 %v953_v8, %v952_v7 }
 0x56d   :  { %1118 = vmatmul.mubr.bf16.gmra.mxu0 %v974_v10 }
 0x56e   :  { %1982 = vmatprep.mubr.bf16.mxu0 %v3262_v1 }
 0x615   :  { %v3895_v9 = vpop.f32.mrf.mxu0 }
 0x616   :  { %1274 = vperm.xlu1 %2972, %v3895_v9   ;;  %1137 = vperm.xlu0 %2974, %v3895_v9  }
 0x617   :  { %v1091_v57 = vpop.f32.mrf.mxu0 }
 0x619   :  { %v3899_v11 = vpop.f32.mrf.mxu0 }
 0x61a   :  { %2975 = vset.pattern.permute.xlu1 %v3263_v2  ;;  %2978 = vset.pattern.permute.xlu0 %v3264_v33  ;;  %v1630_v51 = vpack.c.bf16 %v3899_v11, %v3895_v9 }
 0x61b   :  { %1209 = vperm.xlu1 %2975, %v1091_v57   ;;  %1278 = vperm.xlu0 %2978, %v3899_v11   ;;  %v1095_v48 = vpop.f32.mrf.mxu0 }
 0x61c   :  { %v1634_v43 = vpack.c.bf16 %v1095_v48, %v1091_v57 }
 0x61d   :  { %v1099_v25 = vpop.f32.mrf.mxu0 }
 0x61f   :  { %2976 = vset.pattern.permute.xlu1 %v3264_v33  ;;  %1282 = vperm.xlu0 %2978, %v1099_v25   ;;  %v1101_v37 = vpop.f32.mrf.mxu0 }
 0x620   :  { %1306 = vperm.xlu1 %2976, %v1091_v57  }
 0x621   :  { %v1103_v5 = vpop.f32.mrf.mxu0 }
 0x622   :  { %v1631_v47 = vpack.c.bf16 %v1103_v5, %v1099_v25 }
 0x623   :  { %v1105_v15 = vpop.f32.mrf.mxu0  ;;  %2981 = vset.pattern.permute.xlu0 %v3263_v2 }
 0x624   :  { %2977 = vset.pattern.permute.xlu1 %v3263_v2  ;;  %v1635_v42 = vpack.c.bf16 %v1105_v15, %v1101_v37 }
 0x625   :  { %1140 = vperm.xlu1 %2977, %v3899_v11   ;;  %v1109_v40 = vpop.f32.mrf.mxu0 }
 0x627   :  { %v1111_v19 = vpop.f32.mrf.mxu0 }
 0x628   :  { %1221 = vperm.xlu0 %2981, %v1111_v19  }
 0x629   :  { %1212 = vperm.xlu1 %2977, %v1095_v48   ;;  %v1113_v20 = vpop.f32.mrf.mxu0 }
 0x62a   :  { %v1632_v23 = vpack.c.bf16 %v1113_v20, %v1109_v40 }
 0x62b   :  { %v1115_v29 = vpop.f32.mrf.mxu0 }
 0x62c   :  { %1224 = vperm.xlu0 %2981, %v1115_v29   ;;  %v1636_v35 = vpack.c.bf16 %v1115_v29, %v1111_v19 }
 0x62d   :  { %2979 = vset.pattern.permute.xlu1 %v3264_v33  ;;  %v1119_v61 = vpop.f32.mrf.mxu0 }
 0x62e   :  { %1310 = vperm.xlu1 %2979, %v1095_v48  }
 0x62f   :  { %v1121_v30 = vpop.f32.mrf.mxu0 }
 0x630   :  { %1227 = vperm.xlu0 %2981, %v1121_v30  }
 0x631   :  { %v1123_v4 = vpop.f32.mrf.mxu0 }
 0x632   :  { %2980 = vset.pattern.permute.xlu1 %v3263_v2  ;;  %v1633_v24 = vpack.c.bf16 %v1123_v4, %v1119_v61 }
 0x633   :  { %1143 = vperm.xlu1 %2980, %v1099_v25   ;;  %v1125_v60 = vpop.f32.mrf.mxu0 }
 0x634   :  { %v1637_v39 = vpack.c.bf16 %v1125_v60, %v1121_v30  ;;  %1230 = vperm.xlu0 %2981, %v1125_v60  }
 0x636   :  { %2911 = vmatprep.subr.bf16.mxu1 %v1637_v39 }
 0x637   :  { %1215 = vperm.xlu1 %2980, %v1101_v37   ;;  %2912 = vmatpush3.bf16.msra.mxu1 %v1637_v39 }
 0x638   :  { %2983 = vset.pattern.permute.xlu0 %v3264_v33  ;;  %2913 = vmatprep.subr.bf16.mxu1 %v1636_v35 }
 0x639   :  { %1314 = vperm.xlu0 %2983, %v1101_v37  }
 0x63b   :  { %1146 = vperm.xlu1 %2980, %v1103_v5   ;;  %2914 = vmatpush3.bf16.msra.mxu1 %v1636_v35 }
 0x63c   :  { %2915 = vmatprep.subr.bf16.mxu1 %v1635_v42 }
 0x63d   :  { %1290 = vperm.xlu0 %2983, %v1109_v40  }
 0x63f   :  { %1218 = vperm.xlu1 %2980, %v1105_v15   ;;  %2916 = vmatpush3.bf16.msra.mxu1 %v1635_v42 }
 0x640   :  { %2917 = vmatprep.subr.bf16.mxu1 %v1634_v43 }
 0x641   :  { %1322 = vperm.xlu0 %2983, %v1111_v19  }
 0x643   :  { %1149 = vperm.xlu1 %2980, %v1109_v40   ;;  %2918 = vmatpush3.bf16.msra.mxu1 %v1634_v43 }
 0x644   :  { %2919 = vmatprep.subr.bf16.mxu1 %v1633_v24 }
 0x645   :  { %1298 = vperm.xlu0 %2983, %v1119_v61  }
 0x647   :  { %1152 = vperm.xlu1 %2980, %v1113_v20   ;;  %2920 = vmatpush3.bf16.msra.mxu1 %v1633_v24 }
 0x648   :  { %2921 = vmatprep.subr.bf16.mxu1 %v1632_v23 }
 0x649   :  { %1330 = vperm.xlu0 %2983, %v1121_v30  }
 0x64b   :  { %1155 = vperm.xlu1 %2980, %v1119_v61   ;;  %2922 = vmatpush3.bf16.msra.mxu1 %v1632_v23 }
 0x64c   :  { %2923 = vmatprep.subr.bf16.mxu1 %v1631_v47 }
 0x64f   :  { %1158 = vperm.xlu1 %2980, %v1123_v4   ;;  %2924 = vmatpush3.bf16.msra.mxu1 %v1631_v47 }
 0x650   :  { %2925 = vmatprep.subr.bf16.mxu1 %v1630_v51 }
 0x653   :  { %2982 = vset.pattern.permute.xlu1 %v3264_v33  ;;  %2926 = vmatpush3.bf16.msra.mxu1 %v1630_v51 }
 0x654   :  { %1286 = vperm.xlu1 %2982, %v1103_v5  }
 0x658   :  { %1318 = vperm.xlu1 %2982, %v1105_v15  }
 0x65c   :  { %1294 = vperm.xlu1 %2982, %v1113_v20  }
 0x660   :  { %1326 = vperm.xlu1 %2982, %v1115_v29  }
 0x664   :  { %1302 = vperm.xlu1 %2982, %v1123_v4  }
 0x668   :  { %1334 = vperm.xlu1 %2982, %v1125_v60  }
 0x66c   :  { %2984 = vset.pattern.permute.xlu1 %v3263_v2 }
 0x691   :  { %v1275_v12 = vpop.permute.xlu1 %1274  ;;  %v1138_v59 = vpop.permute.xlu0 %1137 }
 0x692   :  { %v1163_v39 = vrot.slane %v1138_v59, %v3425_v13 }
 0x696   :  { %v1210_v41 = vpop.permute.xlu1 %1209  ;;  %v1279_v58 = vpop.permute.xlu0 %1278 }
 0x697   :  { %v1235_v25 = vrot.slane %v1210_v41, %v3430_v16 }
 0x69a   :  { %v1283_v3 = vpop.permute.xlu0 %1282 }
 0x69b   :  { %v1307_v63 = vpop.permute.xlu1 %1306 }
 0x6a0   :  { %v1141_v53 = vpop.permute.xlu1 %1140 }
 0x6a1   :  { %v1167_v30 = vrot.slane %v1141_v53, %v3433_v17 }
 0x6a3   :  { %v1222_v49 = vpop.permute.xlu0 %1221  ;;  %v1168_v23 = vsel %vm4706_vm2, %v1167_v30, %v1163_v39 }
 0x6a4   :  { %v1213_v52 = vpop.permute.xlu1 %1212  ;;  %v1254_v29 = vrot.slane %v1222_v49, %v3460_v32 }
 0x6a5   :  { %v1239_v57 = vrot.slane %v1213_v52, %v3436_v18 }
 0x6a7   :  { %v1225_v6 = vpop.permute.xlu0 %1224  ;;  %v1240_v15 = vsel %vm329_vm1, %v1239_v57, %v1235_v25 }
 0x6a8   :  { %v1259_v35 = vrot.slane %v1225_v6, %v3466_v36 }
 0x6a9   :  { %v1311_v38 = vpop.permute.xlu1 %1310 }
 0x6aa   :  { %v1338_v30 = vsel %vm374_vm14, %v1279_v58, %v1311_v38 }
 0x6ab   :  { %v1228_v7 = vpop.permute.xlu0 %1227 }
 0x6ac   :  { %v1264_v53 = vrot.slane %v1228_v7, %v3482_v45 }
 0x6ae   :  { %v1144_v50 = vpop.permute.xlu1 %1143 }
 0x6af   :  { %v1231_v11 = vpop.permute.xlu0 %1230  ;;  %v1172_v4 = vrot.slane %v1144_v50, %v3441_v21 }
 0x6b1   :  { %v1173_v52 = vsel %vm4708_vm6, %v1172_v4, %v1168_v23 }
 0x6b2   :  { %v1216_v8 = vpop.permute.xlu1 %1215 }
 0x6b3   :  { %v1244_v48 = vrot.slane %v1216_v8, %v3444_v22 }
 0x6b4   :  { %v1315_v19 = vpop.permute.xlu0 %1314 }
 0x6b5   :  { %v1245_v40 = vsel %vm336_vm3, %v1244_v48, %v1240_v15  ;;  %v1339_v4 = vsel %vm374_vm14, %v1283_v3, %v1315_v19 }
 0x6b6   :  { %v1147_v10 = vpop.permute.xlu1 %1146 }
 0x6b7   :  { %v1177_v42 = vrot.slane %v1147_v10, %v3449_v27  ;;  %v1269_v10 = vrot.slane %v1231_v11, %v3498_v55  ;;  %v3952_v11 = vld [vmem:[%s4693_s2 + $0x48] sm:$0xff] }
 0x6b8   :  { %v1291_v47 = vpop.permute.xlu0 %1290  ;;  %vm1391_vm2 = vcmp.gt.f32.partialorder %v3952_v11, 0.5 }
 0x6b9   :  { %v1178_v49 = vsel %vm4709_vm8, %v1177_v42, %v1173_v52 }
 0x6ba   :  { %v1219_v9 = vpop.permute.xlu1 %1218 }
 0x6bb   :  { %v1249_v37 = vrot.slane %v1219_v9, %v3452_v28 }
 0x6bc   :  { %v1323_v7 = vpop.permute.xlu0 %1322 }
 0x6bd   :  { %v1250_v20 = vsel %vm343_vm5, %v1249_v37, %v1245_v40  ;;  %v1341_v58 = vsel %vm374_vm14, %v1291_v47, %v1323_v7 }
 0x6be   :  { %v1150_v5 = vpop.permute.xlu1 %1149  ;;  %v1255_v60 = vsel %vm350_vm7, %v1254_v29, %v1250_v20  ;;  %v3957_v20 = vld [vmem:[%s4693_s2 + $0x40] sm:$0xff]  ;;  %v3962_v29 = vld [vmem:[%s4693_s2 + $0x50] sm:$0xff] }
 0x6bf   :  { %v1182_v43 = vrot.slane %v1150_v5, %v3457_v31  ;;  %v1260_v51 = vsel %vm4707_vm4, %v1259_v35, %v1255_v60  ;;  %vm1390_vm4 = vcmp.gt.f32.partialorder %v3957_v20, 0.5  ;;  %vm1392_vm6 = vcmp.gt.f32.partialorder %v3962_v29, 0.5 }
 0x6c0   :  { %v1265_v8 = vsel %vm4711_vm13, %v1264_v53, %v1260_v51  ;;  %v1299_v42 = vpop.permute.xlu0 %1298 }
 0x6c1   :  { %v1183_v50 = vsel %vm4710_vm9, %v1182_v43, %v1178_v49  ;;  %v1270_v37 = vsel %vm4715_vm0, %v1269_v10, %v1265_v8  ;;  %v3996_v10 = vld [vmem:[%s4693_s2 + $0x58] sm:$0xff] }
 0x6c2   :  { %v1153_v61 = vpop.permute.xlu1 %1152 }
 0x6c3   :  { %v1187_v41 = vrot.slane %v1153_v61, %v3463_v34  ;;  %v1337_v61 = vsel %vm374_vm14, %v1275_v12, %v1307_v63 }
 0x6c5   :  { %v1188_v9 = vsel %vm4712_vm15, %v1187_v41, %v1183_v50 }
 0x6c6   :  { %v1156_v24 = vpop.permute.xlu1 %1155 }
 0x6c7   :  { %v1192_v59 = vrot.slane %v1156_v24, %v3479_v44 }
 0x6c9   :  { %v1193_v48 = vsel %vm4713_vm11, %v1192_v59, %v1188_v9 }
 0x6ca   :  { %v1159_v6 = vpop.permute.xlu1 %1158 }
 0x6cb   :  { %v1197_v57 = vrot.slane %v1159_v6, %v3495_v54  ;;  %v1331_v6 = vpop.permute.xlu0 %1330 }
 0x6cd   :  { %v1198_v25 = vsel %vm4714_vm10, %v1197_v57, %v1193_v48  ;;  %v4001_v57 = vld [vmem:[%s4693_s2 + $0x60] sm:$0xff]  ;;  %vm1393_vm10 = vcmp.gt.f32.partialorder %v3996_v10, 0.5 }
 0x6ce   :  { %v1272_v5 = vsel %vm374_vm14, %v1198_v25, %v1270_v37  ;;  %v1343_v37 = vsel %vm374_vm14, %v1299_v42, %v1331_v6  ;;  %vm1394_vm0 = vcmp.gt.f32.partialorder %v4001_v57, 0.5 }
 0x6cf   :  { %v3947_v15 = vrot.slane %v1272_v5, %v3513_v14  ;;  %v1287_v40 = vpop.permute.xlu1 %1286 }
 0x6d1   :  { %v1350_v60 = vadd.f32 %v3947_v15, %v1338_v30  ;;  %v1349_v39 = vadd.f32 %v3947_v15, %v1337_v61  ;;  %v1351_v35 = vadd.f32 %v3947_v15, %v1339_v4  ;;  %v1353_v51 = vadd.f32 %v3947_v15, %v1341_v58  ;;  %v4028_v58 = vld [vmem:[%s4693_s2 + $0x70] sm:$0xff] }
 0x6d2   :  { %v1355_v4 = vadd.f32 %v3947_v15, %v1343_v37 }
 0x6d3   :  { %v1319_v43 = vpop.permute.xlu1 %1318  ;;  %vm1358_vm8 = vcmp.ge.f32.partialorder %v1350_v60, 0.0  ;;  %v1366_v12 = vmul.f32 0.2, %v1350_v60  ;;  %vm1357_vm9 = vcmp.ge.f32.partialorder %v1349_v39, 0.0  ;;  %v1365_v63 = vmul.f32 0.2, %v1349_v39 }
 0x6d4   :  { %v1340_v3 = vsel %vm374_vm14, %v1287_v40, %v1319_v43  ;;  %vm1359_vm13 = vcmp.ge.f32.partialorder %v1351_v35, 0.0  ;;  %v1367_v38 = vmul.f32 0.2, %v1351_v35  ;;  %v1369_v9 = vmul.f32 0.2, %v1353_v51 }
 0x6d5   :  { %v1352_v19 = vadd.f32 %v3947_v15, %v1340_v3  ;;  %v1374_v24 = vsel %vm1358_vm8, %v1350_v60, %v1366_v12  ;;  %v1373_v23 = vsel %vm1357_vm9, %v1349_v39, %v1365_v63  ;;  %vm1361_vm11 = vcmp.ge.f32.partialorder %v1353_v51, 0.0  ;;  %v4033_v3 = vld [vmem:[%s4693_s2 + $0x68] sm:$0xff] }
 0x6d6   :  { %v3979_v41 = vsel %vm1391_vm2, %v1374_v24, -1e+30  ;;  %v3983_v53 = vsel %vm1390_vm4, %v1373_v23, -1e+30  ;;  %v1375_v52 = vsel %vm1359_vm13, %v1351_v35, %v1367_v38  ;;  %v1377_v30 = vsel %vm1361_vm11, %v1353_v51, %v1369_v9  ;;  %v4056_v9 = vld [vmem:[%s4693_s2 + $0x78] sm:$0xff] }
 0x6d7   :  { %v1295_v47 = vpop.permute.xlu1 %1294  ;;  %v1409_v59 = vsel %vm374_vm14, %v3979_v41, -inf  ;;  %v1406_v49 = vsel %vm374_vm14, %v3983_v53, -inf  ;;  %v3991_v50 = vsel %vm1392_vm6, %v1375_v52, -1e+30  ;;  %v1368_v8 = vmul.f32 0.2, %v1352_v19 }
 0x6d8   :  { %1410 = vmax.xlane.f32.xlu1 %v1409_v59  ;;  %1407 = vmax.xlane.f32.xlu0 %v1406_v49  ;;  %vm1360_vm15 = vcmp.ge.f32.partialorder %v1352_v19, 0.0  ;;  %v1430_v7 = vsel %vm532_vm12, %v3983_v53, -inf  ;;  %v1412_v25 = vsel %vm374_vm14, %v3991_v50, -inf  ;;  %v1433_v39 = vsel %vm532_vm12, %v3979_v41, -inf }
 0x6d9   :  { %v1376_v61 = vsel %vm1360_vm15, %v1352_v19, %v1368_v8  ;;  %v1436_v35 = vsel %vm532_vm12, %v3991_v50, -inf  ;;  %v4023_v43 = vsel %vm1394_vm0, %v1377_v30, -1e+30  ;;  %v1371_v63 = vmul.f32 0.2, %v1355_v4 }
 0x6da   :  { %v4019_v42 = vsel %vm1393_vm10, %v1376_v61, -1e+30  ;;  %vm1363_vm9 = vcmp.ge.f32.partialorder %v1355_v4, 0.0  ;;  %v1418_v24 = vsel %vm374_vm14, %v4023_v43, -inf  ;;  %vm1396_vm13 = vcmp.gt.f32.partialorder %v4028_v58, 0.5 }
 0x6db   :  { %v1327_v48 = vpop.permute.xlu1 %1326  ;;  %v1415_v19 = vsel %vm374_vm14, %v4019_v42, -inf  ;;  %vm1395_vm15 = vcmp.gt.f32.partialorder %v4033_v3, 0.5  ;;  %v1439_v59 = vsel %vm532_vm12, %v4019_v42, -inf  ;;  %v1442_v49 = vsel %vm532_vm12, %v4023_v43, -inf }
 0x6dc   :  { %v1342_v5 = vsel %vm374_vm14, %v1295_v47, %v1327_v48  ;;  %1431 = vmax.xlane.f32.xlu0 %v1430_v7  ;;  %1413 = vmax.xlane.f32.xlu1 %v1412_v25  ;;  %v1379_v47 = vsel %vm1363_vm9, %v1355_v4, %v1371_v63  ;;  %vm4725_vm9 = vcmask 1048512  }
 0x6dd   :  { %v1354_v40 = vadd.f32 %v3947_v15, %v1342_v5  ;;  %v1404_v8 = vsel %vm1396_vm13, %v1379_v47, -1e+30 }
 0x6de   :  { %v1424_v7 = vsel %vm374_vm14, %v1404_v8, -inf  ;;  %v1448_v5 = vsel %vm532_vm12, %v1404_v8, -inf }
 0x6df   :  { %v1303_v60 = vpop.permute.xlu1 %1302  ;;  %v1370_v12 = vmul.f32 0.2, %v1354_v40  ;;  %vm1362_vm8 = vcmp.ge.f32.partialorder %v1354_v40, 0.0 }
 0x6e0   :  { %1434 = vmax.xlane.f32.xlu0 %v1433_v39  ;;  %1437 = vmax.xlane.f32.xlu1 %v1436_v35 }
 0x6e1   :  { %v1378_v52 = vsel %vm1362_vm8, %v1354_v40, %v1370_v12  ;;  %vm1397_vm8 = vcmp.gt.f32.partialorder %v4056_v9, 0.5 }
 0x6e2   :  { %v4049_v6 = vsel %vm1395_vm15, %v1378_v52, -1e+30 }
 0x6e3   :  { %v1335_v38 = vpop.permute.xlu1 %1334  ;;  %v1421_v48 = vsel %vm374_vm14, %v4049_v6, -inf  ;;  %v1445_v37 = vsel %vm532_vm12, %v4049_v6, -inf }
 0x6e4   :  { %v1344_v23 = vsel %vm374_vm14, %v1303_v60, %v1335_v38  ;;  %1416 = vmax.xlane.f32.xlu0 %v1415_v19  ;;  %1419 = vmax.xlane.f32.xlu1 %v1418_v24 }
 0x6e5   :  { %v1356_v51 = vadd.f32 %v3947_v15, %v1344_v23 }
 0x6e7   :  { %v1372_v15 = vmul.f32 0.2, %v1356_v51  ;;  %vm1364_vm11 = vcmp.ge.f32.partialorder %v1356_v51, 0.0 }
 0x6e8   :  { %1440 = vmax.xlane.f32.xlu0 %v1439_v59  ;;  %1443 = vmax.xlane.f32.xlu1 %v1442_v49 }
 0x6e9   :  { %v1380_v25 = vsel %vm1364_vm11, %v1356_v51, %v1372_v15 }
 0x6ea   :  { %v1405_v40 = vsel %vm1397_vm8, %v1380_v25, -1e+30 }
 0x6eb   :  { %v1427_v61 = vsel %vm374_vm14, %v1405_v40, -inf  ;;  %v1451_v30 = vsel %vm532_vm12, %v1405_v40, -inf }
 0x6ec   :  { %1422 = vmax.xlane.f32.xlu0 %v1421_v48  ;;  %1425 = vmax.xlane.f32.xlu1 %v1424_v7 }
 0x6f0   :  { %1446 = vmax.xlane.f32.xlu0 %v1445_v37  ;;  %1449 = vmax.xlane.f32.xlu1 %v1448_v5 }
 0x6f4   :  { %1428 = vmax.xlane.f32.xlu0 %v1427_v61 }
 0x6f8   :  { %1452 = vmax.xlane.f32.xlu0 %v1451_v30 }
 0x761   :  { %v1411_v4 = vpop.xlane.xlu1 %1410  ;;  %v1408_v60 = vpop.xlane.xlu0 %1407 }
 0x765   :  { %v1414_v39 = vpop.xlane.xlu1 %1413  ;;  %v1432_v35 = vpop.xlane.xlu0 %1431 }
 0x766   :  { %v1454_v12 = vsel %vm374_vm14, %v1408_v60, %v1432_v35 }
 0x767   :  { %v1462_v63 = vsub.f32 %v3983_v53, %v1454_v12 }
 0x769   :  { %v1470_v38 = vmul.f32 1.442695, %v1462_v63  ;;  %v1438_v19 = vpop.xlane.xlu1 %1437  ;;  %v1435_v24 = vpop.xlane.xlu0 %1434 }
 0x76a   :  { %v1456_v23 = vsel %vm374_vm14, %v1414_v39, %v1438_v19  ;;  %v1455_v51 = vsel %vm374_vm14, %v1411_v4, %v1435_v24 }
 0x76b   :  { %3134 = vpow2.f32 %v1470_v38  ;;  %v1464_v52 = vsub.f32 %v3991_v50, %v1456_v23  ;;  %v1463_v47 = vsub.f32 %v3979_v41, %v1455_v51 }
 0x76d   :  { %v1474_v59 = vmul.f32 1.442695, %v1464_v52  ;;  %v1472_v49 = vmul.f32 1.442695, %v1463_v47  ;;  %v1420_v15 = vpop.xlane.xlu1 %1419  ;;  %v1417_v48 = vpop.xlane.xlu0 %1416 }
 0x76f   :  { %3136 = vpow2.f32 %v1474_v59 }
 0x770   :  { %3138 = vpow2.f32 %v1472_v49 }
 0x771   :  { %v1444_v7 = vpop.xlane.xlu1 %1443  ;;  %v1441_v53 = vpop.xlane.xlu0 %1440 }
 0x772   :  { %v1458_v25 = vsel %vm374_vm14, %v1420_v15, %v1444_v7  ;;  %v1457_v37 = vsel %vm374_vm14, %v1417_v48, %v1441_v53 }
 0x773   :  { %v1466_v5 = vsub.f32 %v4023_v43, %v1458_v25  ;;  %v1465_v61 = vsub.f32 %v4019_v42, %v1457_v37 }
 0x775   :  { %v1478_v30 = vmul.f32 1.442695, %v1466_v5  ;;  %v1476_v50 = vmul.f32 1.442695, %v1465_v61  ;;  %v1426_v4 = vpop.xlane.xlu1 %1425  ;;  %v1423_v41 = vpop.xlane.xlu0 %1422 }
 0x777   :  { %3140 = vpow2.f32 %v1478_v30 }
 0x778   :  { %v3135_v60 = vpop.eup %3134  ;;  %3142 = vpow2.f32 %v1476_v50 }
 0x779   :  { %v1450_v39 = vpop.xlane.xlu1 %1449  ;;  %v1447_v35 = vpop.xlane.xlu0 %1446  ;;  %v4081_v12 = vsel %vm1390_vm4, %v3135_v60, 0.0  ;;  %vm4721_vm4 = vcmask 982912  }
 0x77a   :  { %v1460_v63 = vsel %vm374_vm14, %v1426_v4, %v1450_v39  ;;  %v1459_v38 = vsel %vm374_vm14, %v1423_v41, %v1447_v35  ;;  %1550 = vrot.lane.b32.xlu1 %v4081_v12, %s3265_s26  ;;  %v1494_v58 = vsel %vm374_vm14, %v4081_v12, 0.0 }
 0x77b   :  { %v1468_v42 = vsub.f32 %v1404_v8, %v1460_v63  ;;  %v1467_v43 = vsub.f32 %v4049_v6, %v1459_v38 }
 0x77c   :  { %v3137_v19 = vpop.eup %3136 }
 0x77d   :  { %v3139_v24 = vpop.eup %3138  ;;  %v1482_v23 = vmul.f32 1.442695, %v1468_v42  ;;  %v1480_v51 = vmul.f32 1.442695, %v1467_v43  ;;  %v1429_v52 = vpop.xlane.xlu0 %1428  ;;  %v4090_v20 = vsel %vm1392_vm6, %v3137_v19, 0.0  ;;  %vm4722_vm6 = vcmask 392512  }
 0x77e   :  { %1554 = vrot.lane.b32.xlu1 %v4090_v20, %s3265_s26  ;;  %v4096_v47 = vsel %vm1391_vm2, %v3139_v24, 0.0  ;;  %v1500_v9 = vsel %vm374_vm14, %v4090_v20, 0.0  ;;  %vm4720_vm2 = vcmask 326912  }
 0x77f   :  { %3144 = vpow2.f32 %v1482_v23  ;;  %1552 = vrot.lane.b32.xlu0 %v4096_v47, %s3265_s26  ;;  %v1497_v37 = vsel %vm374_vm14, %v4096_v47, 0.0 }
 0x780   :  { %3146 = vpow2.f32 %v1480_v51 }
 0x781   :  { %v1453_v6 = vpop.xlane.xlu0 %1452 }
 0x782   :  { %v1461_v8 = vsel %vm374_vm14, %v1429_v52, %v1453_v6 }
 0x783   :  { %v1469_v59 = vsub.f32 %v1405_v40, %v1461_v8 }
 0x784   :  { %v3141_v49 = vpop.eup %3140 }
 0x785   :  { %v3143_v29 = vpop.eup %3142  ;;  %v1484_v15 = vmul.f32 1.442695, %v1469_v59  ;;  %v4103_v48 = vsel %vm1394_vm0, %v3141_v49, 0.0  ;;  %vm4724_vm0 = vcmask 523712  }
 0x786   :  { %1558 = vrot.lane.b32.xlu0 %v4103_v48, %s3265_s26  ;;  %v4109_v11 = vsel %vm1393_vm10, %v3143_v29, 0.0  ;;  %v1506_v60 = vsel %vm374_vm14, %v4103_v48, 0.0  ;;  %vm4723_vm10 = vcmask 458112  }
 0x787   :  { %3148 = vpow2.f32 %v1484_v15  ;;  %1556 = vrot.lane.b32.xlu1 %v4109_v11, %s3265_s26  ;;  %v1503_v3 = vsel %vm374_vm14, %v4109_v11, 0.0 }
 0x78c   :  { %v3145_v7 = vpop.eup %3144 }
 0x78d   :  { %v3147_v40 = vpop.eup %3146  ;;  %v4115_v53 = vsel %vm1396_vm13, %v3145_v7, 0.0 }
 0x78e   :  { %1562 = vrot.lane.b32.xlu0 %v4115_v53, %s3265_s26  ;;  %v4121_v57 = vsel %vm1395_vm15, %v3147_v40, 0.0  ;;  %v1512_v35 = vsel %vm374_vm14, %v4115_v53, 0.0 }
 0x78f   :  { %1560 = vrot.lane.b32.xlu1 %v4121_v57, %s3265_s26  ;;  %v1509_v43 = vsel %vm374_vm14, %v4121_v57, 0.0 }
 0x794   :  { %v3149_v10 = vpop.eup %3148 }
 0x795   :  { %v4127_v25 = vsel %vm1397_vm8, %v3149_v10, 0.0 }
 0x796   :  { %1564 = vrot.lane.b32.xlu1 %v4127_v25, %s3265_s26  ;;  %v1515_v23 = vsel %vm374_vm14, %v4127_v25, 0.0 }
 0x7ad   :  { %1495 = vadd.xlane.f32.xlu0 %v1494_v58 }
 0x7b1   :  { %1504 = vadd.xlane.f32.xlu0 %v1503_v3 }
 0x7ba   :  { %1498 = vadd.xlane.f32.xlu1 %v1497_v37 }
 0x7be   :  { %1501 = vadd.xlane.f32.xlu1 %v1500_v9 }
 0x7ec   :  { %v1551_v5 = vpop.permute.xlu1 %1550 }
 0x7ed   :  { %v1574_v61 = vsel %vm374_vm14, %v1551_v5, 0.0 }
 0x7ee   :  { %1575 = vadd.xlane.f32.xlu0 %v1574_v61 }
 0x7f0   :  { %v1555_v30 = vpop.permute.xlu1 %1554 }
 0x7f1   :  { %v1553_v50 = vpop.permute.xlu0 %1552  ;;  %v1580_v4 = vsel %vm374_vm14, %v1555_v30, 0.0 }
 0x7f2   :  { %1581 = vadd.xlane.f32.xlu1 %v1580_v4  ;;  %v1577_v41 = vsel %vm374_vm14, %v1553_v50, 0.0 }
 0x7f3   :  { %1578 = vadd.xlane.f32.xlu0 %v1577_v41 }
 0x7f6   :  { %1507 = vadd.xlane.f32.xlu1 %v1506_v60 }
 0x7f8   :  { %v1559_v63 = vpop.permute.xlu0 %1558 }
 0x7f9   :  { %v1557_v39 = vpop.permute.xlu1 %1556  ;;  %v1586_v42 = vsel %vm374_vm14, %v1559_v63, 0.0 }
 0x7fa   :  { %1513 = vadd.xlane.f32.xlu1 %v1512_v35  ;;  %v1583_v38 = vsel %vm374_vm14, %v1557_v39, 0.0 }
 0x7fb   :  { %1584 = vadd.xlane.f32.xlu0 %v1583_v38 }
 0x7fe   :  { %1587 = vadd.xlane.f32.xlu1 %v1586_v42 }
 0x7ff   :  { %1510 = vadd.xlane.f32.xlu0 %v1509_v43 }
 0x800   :  { %v1563_v19 = vpop.permute.xlu0 %1562 }
 0x801   :  { %v1592_v24 = vsel %vm374_vm14, %v1563_v19, 0.0  ;;  %v1561_v51 = vpop.permute.xlu1 %1560 }
 0x802   :  { %1593 = vadd.xlane.f32.xlu1 %v1592_v24  ;;  %v1589_v52 = vsel %vm374_vm14, %v1561_v51, 0.0 }
 0x803   :  { %1516 = vadd.xlane.f32.xlu0 %v1515_v23 }
 0x807   :  { %1590 = vadd.xlane.f32.xlu0 %v1589_v52 }
 0x808   :  { %v1565_v6 = vpop.permute.xlu1 %1564 }
 0x809   :  { %v1595_v8 = vsel %vm374_vm14, %v1565_v6, 0.0 }
 0x80b   :  { %1596 = vadd.xlane.f32.xlu0 %v1595_v8 }
 0x836   :  { %v1496_v59 = vpop.xlane.xlu0 %1495 }
 0x837   :  { %v1518_v40 = vmax.f32 %v1496_v59, 1e-30 }
 0x83a   :  { %v1505_v29 = vpop.xlane.xlu0 %1504 }
 0x83b   :  { %v1521_v30 = vmax.f32 %v1505_v29, 1e-30 }
 0x843   :  { %v1499_v49 = vpop.xlane.xlu1 %1498 }
 0x844   :  { %v1519_v58 = vmax.f32 %v1499_v49, 1e-30 }
 0x847   :  { %v1502_v15 = vpop.xlane.xlu1 %1501 }
 0x848   :  { %v1520_v50 = vmax.f32 %v1502_v15, 1e-30 }
 0x877   :  { %v1576_v7 = vpop.xlane.xlu0 %1575 }
 0x878   :  { %v1598_v10 = vmax.f32 %v1576_v7, 1e-30 }
 0x87a   :  { %3150 = vrcp.f32 %v1598_v10 }
 0x87b   :  { %v1582_v3 = vpop.xlane.xlu1 %1581  ;;  %3152 = vrcp.f32 %v1518_v40 }
 0x87c   :  { %v1579_v37 = vpop.xlane.xlu0 %1578  ;;  %3154 = vrcp.f32 %v1519_v58  ;;  %v1600_v5 = vmax.f32 %v1582_v3, 1e-30 }
 0x87d   :  { %v1599_v9 = vmax.f32 %v1579_v37, 1e-30 }
 0x87f   :  { %3156 = vrcp.f32 %v1599_v9  ;;  %v1508_v61 = vpop.xlane.xlu1 %1507 }
 0x880   :  { %3158 = vrcp.f32 %v1600_v5  ;;  %v1522_v51 = vmax.f32 %v1508_v61, 1e-30 }
 0x881   :  { %3160 = vrcp.f32 %v1521_v30 }
 0x882   :  { %3162 = vrcp.f32 %v1520_v50 }
 0x883   :  { %v1514_v4 = vpop.xlane.xlu1 %1513 }
 0x884   :  { %v1585_v41 = vpop.xlane.xlu0 %1584  ;;  %v1524_v10 = vmax.f32 %v1514_v4, 1e-30 }
 0x885   :  { %v1601_v60 = vmax.f32 %v1585_v41, 1e-30 }
 0x887   :  { %3164 = vrcp.f32 %v1601_v60  ;;  %v1588_v39 = vpop.xlane.xlu1 %1587  ;;  %v3151_v35 = vpop.eup %3150 }
 0x888   :  { %v1511_v63 = vpop.xlane.xlu0 %1510  ;;  %v3153_v38 = vpop.eup %3152  ;;  %v1602_v43 = vmax.f32 %v1588_v39, 1e-30  ;;  %v1614_v24 = vmul.f32 %v3151_v35, %v4081_v12 }
 0x889   :  { %v3155_v42 = vpop.eup %3154  ;;  %v1523_v6 = vmax.f32 %v1511_v63, 1e-30  ;;  %v1534_v8 = vmul.f32 %v3153_v38, %v4081_v12 }
 0x88a   :  { %v1535_v59 = vmul.f32 %v3155_v42, %v4096_v47  ;;  %3166 = vrcp.f32 %v1602_v43 }
 0x88b   :  { %v1594_v19 = vpop.xlane.xlu1 %1593  ;;  %v1622_v15 = vsel %vm374_vm14, %v1534_v8, %v1614_v24  ;;  %3168 = vrcp.f32 %v1522_v51 }
 0x88c   :  { %v3157_v23 = vpop.eup %3156  ;;  %v1517_v52 = vpop.xlane.xlu0 %1516  ;;  %v1604_v29 = vmax.f32 %v1594_v19, 1e-30  ;;  %3170 = vrcp.f32 %v1523_v6 }
 0x88d   :  { %v1615_v49 = vmul.f32 %v3157_v23, %v4096_v47  ;;  %v3159_v40 = vpop.eup %3158  ;;  %v1525_v9 = vmax.f32 %v1517_v52, 1e-30 }
 0x88e   :  { %v3161_v37 = vpop.eup %3160  ;;  %3172 = vrcp.f32 %v1604_v29  ;;  %v1616_v47 = vmul.f32 %v3159_v40, %v4090_v20 }
 0x88f   :  { %v1623_v7 = vsel %vm374_vm14, %v1535_v59, %v1615_v49  ;;  %v3163_v12 = vpop.eup %3162  ;;  %v1537_v30 = vmul.f32 %v3161_v37, %v4109_v11 }
 0x890   :  { %v1591_v58 = vpop.xlane.xlu0 %1590  ;;  %v1638_v3 = vpack.c.bf16 %v1623_v7, %v1622_v15  ;;  %v1536_v41 = vmul.f32 %v3163_v12, %v4090_v20 }
 0x891   :  { %v1603_v5 = vmax.f32 %v1591_v58, 1e-30 }
 0x892   :  { %2927 = vmatprep.mubr.bf16.mxu1 %v1638_v3  ;;  %v1624_v39 = vsel %vm374_vm14, %v1536_v41, %v1616_v47  ;;  %v4182_v3 = vld [vmem:[%s4694_s3 + $0x8] sm:$0xff] }
 0x893   :  { %3174 = vrcp.f32 %v1603_v5  ;;  %v1647_v37 = vrot.slane %v4182_v3, %v3513_v14 }
 0x894   :  { %v3165_v61 = vpop.eup %3164  ;;  %3176 = vrcp.f32 %v1524_v10  ;;  %v1597_v50 = vpop.xlane.xlu0 %1596 }
 0x895   :  { %v1617_v4 = vmul.f32 %v3165_v61, %v4109_v11  ;;  %3178 = vrcp.f32 %v1525_v9  ;;  %v1605_v60 = vmax.f32 %v1597_v50, 1e-30 }
 0x897   :  { %3180 = vrcp.f32 %v1605_v60  ;;  %v1625_v35 = vsel %vm374_vm14, %v1537_v30, %v1617_v4  ;;  %v3167_v38 = vpop.eup %3166 }
 0x898   :  { %v1639_v63 = vpack.c.bf16 %v1625_v35, %v1624_v39  ;;  %v3169_v42 = vpop.eup %3168  ;;  %v1618_v24 = vmul.f32 %v3167_v38, %v4103_v48 }
 0x899   :  { %v3171_v43 = vpop.eup %3170  ;;  %v1538_v20 = vmul.f32 %v3169_v42, %v4103_v48 }
 0x89a   :  { %2928 = vmatmul.mubr.bf16.vlgmr.msra.gmra.mxu1 %v1639_v63  ;;  %v1539_v11 = vmul.f32 %v3171_v43, %v4121_v57 }
 0x89b   :  { %v3173_v19 = vpop.eup %3172  ;;  %v1626_v8 = vsel %vm374_vm14, %v1538_v20, %v1618_v24 }
 0x89c   :  { %v1620_v49 = vmul.f32 %v3173_v19, %v4115_v53 }
 0x8a0   :  { %v3175_v23 = vpop.eup %3174 }
 0x8a1   :  { %v3177_v51 = vpop.eup %3176  ;;  %v1619_v52 = vmul.f32 %v3175_v23, %v4121_v57 }
 0x8a2   :  { %v3179_v6 = vpop.eup %3178  ;;  %v1540_v7 = vmul.f32 %v3177_v51, %v4115_v53 }
 0x8a3   :  { %v1627_v59 = vsel %vm374_vm14, %v1539_v11, %v1619_v52  ;;  %v1541_v40 = vmul.f32 %v3179_v6, %v4127_v25 }
 0x8a4   :  { %v3181_v29 = vpop.eup %3180  ;;  %v1640_v15 = vpack.c.bf16 %v1627_v59, %v1626_v8  ;;  %v1628_v48 = vsel %vm374_vm14, %v1540_v7, %v1620_v49 }
 0x8a5   :  { %v1621_v10 = vmul.f32 %v3181_v29, %v4127_v25 }
 0x8a6   :  { %2931 = vmatprep.mubr.bf16.mxu1 %v1640_v15 }
 0x8a7   :  { %v1629_v57 = vsel %vm374_vm14, %v1541_v40, %v1621_v10  ;;  %v3046_v40 = vld [vmem:[%s4691_s1 + $0x170] ss:$8 sps:$4 sm:$0xff]   ;;  %v3048_v10 = vld [vmem:[%s4691_s1 + $0x174] ss:$8 sps:$4 sm:$0xff]  }
 0x8a8   :  { %v1641_v58 = vpack.c.bf16 %v1629_v57, %v1628_v48  ;;  %1950 = vmatprep.subr.bf16.mxu0 %v3048_v10 }
 0x8a9   :  { %1951 = vmatpush1.bf16.msra.mxu0 %v3046_v40 }
 0x8aa   :  { %2932 = vmatmul.mubr.bf16.gmra.mxu1 %v1641_v58 }
 0x95a   :  { %v2929_v53 = vpop.f32.mrf.mxu1 }
 0x95b   :  { %v1691_v5 = vadd.f32 %v2929_v53, %v1647_v37 }
 0x95c   :  { %v1682_v9 = vpop.f32.mrf.mxu1 }
 0x95d   :  { %v1683_v12 = vadd.f32 %v1682_v9, %v1647_v37  ;;  %v1715_v30 = vmax.f32 %v1691_v5, 0.0 }
 0x95e   :  { %v2930_v25 = vpop.f32.mrf.mxu1 }
 0x95f   :  { %v1713_v47 = vmax.f32 %v1683_v12, 0.0  ;;  %v1694_v41 = vadd.f32 %v2930_v25, %v1647_v37  ;;  %v1723_v39 = vmul.f32 %v3775_v56, %v1715_v30 }
 0x960   :  { %v1685_v61 = vpop.f32.mrf.mxu1 }
 0x961   :  { %v1721_v50 = vmul.f32 %v3775_v56, %v1713_v47  ;;  %v1686_v4 = vadd.f32 %v1685_v61, %v1647_v37  ;;  %v1716_v35 = vmax.f32 %v1694_v41, 0.0 }
 0x963   :  { %v1714_v60 = vmax.f32 %v1686_v4, 0.0  ;;  %1729 = vadd.xlane.f32.xlu1 %v1721_v50  ;;  %v1724_v38 = vmul.f32 %v3775_v56, %v1716_v35 }
 0x965   :  { %v1722_v63 = vmul.f32 %v3775_v56, %v1714_v60 }
 0x967   :  { %1731 = vadd.xlane.f32.xlu0 %v1722_v63  ;;  %1733 = vadd.xlane.f32.xlu1 %v1723_v39 }
 0x96a   :  { %v2933_v42 = vpop.f32.mrf.mxu1 }
 0x96b   :  { %1735 = vadd.xlane.f32.xlu0 %v1724_v38  ;;  %v1707_v19 = vadd.f32 %v2933_v42, %v1647_v37 }
 0x96c   :  { %v1698_v43 = vpop.f32.mrf.mxu1 }
 0x96d   :  { %v1699_v24 = vadd.f32 %v1698_v43, %v1647_v37  ;;  %v1719_v11 = vmax.f32 %v1707_v19, 0.0 }
 0x96e   :  { %v2934_v23 = vpop.f32.mrf.mxu1 }
 0x96f   :  { %v1717_v51 = vmax.f32 %v1699_v24, 0.0  ;;  %v1710_v6 = vadd.f32 %v2934_v23, %v1647_v37  ;;  %v1727_v49 = vmul.f32 %v3775_v56, %v1719_v11 }
 0x970   :  { %v1701_v20 = vpop.f32.mrf.mxu1 }
 0x971   :  { %v1725_v52 = vmul.f32 %v3775_v56, %v1717_v51  ;;  %v1702_v8 = vadd.f32 %v1701_v20, %v1647_v37  ;;  %v1720_v29 = vmax.f32 %v1710_v6, 0.0 }
 0x973   :  { %v1718_v59 = vmax.f32 %v1702_v8, 0.0  ;;  %1737 = vadd.xlane.f32.xlu1 %v1725_v52  ;;  %v1728_v7 = vmul.f32 %v3775_v56, %v1720_v29 }
 0x975   :  { %v1726_v15 = vmul.f32 %v3775_v56, %v1718_v59 }
 0x977   :  { %1739 = vadd.xlane.f32.xlu0 %v1726_v15  ;;  %1741 = vadd.xlane.f32.xlu1 %v1727_v49 }
 0x97b   :  { %1743 = vadd.xlane.f32.xlu0 %v1728_v7 }
 0x9ec   :  { %v1730_v48 = vpop.xlane.xlu1 %1729 }
 0x9ed   :  { %v1745_v57 = vmul.f32 0.03125, %v1730_v48  ;;  %v3051_v48 = vld [vmem:[%s4691_s1 + $0x164] ss:$8 sps:$4 sm:$0xff]  }
 0x9ee   :  { %1952 = vmatprep.subr.bf16.mxu0 %v3051_v48 }
 0x9ef   :  { %v1753_v58 = vsub.f32 %v1721_v50, %v1745_v57 }
 0x9f0   :  { %v1734_v37 = vpop.xlane.xlu1 %1733  ;;  %v1732_v53 = vpop.xlane.xlu0 %1731 }
 0x9f1   :  { %v4201_v9 = vmul.f32 %v3775_v56, %v1753_v58  ;;  %v1747_v5 = vmul.f32 0.03125, %v1734_v37  ;;  %v1746_v12 = vmul.f32 0.03125, %v1732_v53  ;;  %v3054_v53 = vld [vmem:[%s4691_s1 + $0x154] ss:$8 sps:$4 sm:$0xff]  }
 0x9f3   :  { %v1755_v25 = vsub.f32 %v1723_v39, %v1747_v5  ;;  %v1754_v47 = vsub.f32 %v1722_v63, %v1746_v12  ;;  %v1769_v61 = vmul.f32 %v4201_v9, %v4201_v9  ;;  %v3055_v12 = vld [vmem:[%s4691_s1 + $0x140] ss:$8 sps:$4 sm:$0xff]  }
 0x9f4   :  { %v1736_v30 = vpop.xlane.xlu0 %1735 }
 0x9f5   :  { %v4206_v41 = vmul.f32 %v3775_v56, %v1755_v25  ;;  %v4209_v4 = vmul.f32 %v3775_v56, %v1754_v47  ;;  %v1748_v50 = vmul.f32 0.03125, %v1736_v30  ;;  %1777 = vadd.xlane.f32.xlu1 %v1769_v61  ;;  %v3060_v25 = vld [vmem:[%s4691_s1 + $0x134] ss:$8 sps:$4 sm:$0xff]   ;;  %v3058_v47 = vld [vmem:[%s4691_s1 + $0x130] ss:$8 sps:$4 sm:$0xff]  }
 0x9f6   :  { %v3063_v61 = vld [vmem:[%s4691_s1 + $0x124] ss:$8 sps:$4 sm:$0xff]   ;;  %v3061_v30 = vld [vmem:[%s4691_s1 + $0x120] ss:$8 sps:$4 sm:$0xff]  }
 0x9f7   :  { %v1756_v60 = vsub.f32 %v1724_v38, %v1748_v50  ;;  %v1771_v35 = vmul.f32 %v4206_v41, %v4206_v41  ;;  %v1770_v39 = vmul.f32 %v4209_v4, %v4209_v4  ;;  %v3064_v50 = vld [vmem:[%s4691_s1 + $0x110] ss:$8 sps:$4 sm:$0xff]  }
 0x9f9   :  { %v4216_v63 = vmul.f32 %v3775_v56, %v1756_v60  ;;  %1781 = vadd.xlane.f32.xlu1 %v1771_v35  ;;  %1779 = vadd.xlane.f32.xlu0 %v1770_v39  ;;  %v3066_v60 = vld [vmem:[%s4691_s1 + $0x114] ss:$8 sps:$4 sm:$0xff]   ;;  %v3069_v35 = vld [vmem:[%s4691_s1 + $0x104] ss:$8 sps:$4 sm:$0xff]   ;;  %v3067_v39 = vld [vmem:[%s4691_s1 + $0x100] ss:$8 sps:$4 sm:$0xff]  }
 0x9fb   :  { %v1772_v42 = vmul.f32 %v4216_v63, %v4216_v63 }
 0x9fc   :  { %v1738_v43 = vpop.xlane.xlu1 %1737 }
 0x9fd   :  { %v1749_v19 = vmul.f32 0.03125, %v1738_v43  ;;  %1783 = vadd.xlane.f32.xlu0 %v1772_v42 }
 0x9ff   :  { %v1757_v24 = vsub.f32 %v1725_v52, %v1749_v19 }
 0xa00   :  { %v1742_v23 = vpop.xlane.xlu1 %1741  ;;  %v1740_v38 = vpop.xlane.xlu0 %1739 }
 0xa01   :  { %v4221_v51 = vmul.f32 %v3775_v56, %v1757_v24  ;;  %v1751_v20 = vmul.f32 0.03125, %v1742_v23  ;;  %v1750_v11 = vmul.f32 0.03125, %v1740_v38 }
 0xa03   :  { %v1759_v6 = vsub.f32 %v1727_v49, %v1751_v20  ;;  %v1758_v8 = vsub.f32 %v1726_v15, %v1750_v11  ;;  %v1773_v59 = vmul.f32 %v4221_v51, %v4221_v51  ;;  %v3049_v49 = vld [vmem:[%s4691_s1 + $0x160] ss:$8 sps:$4 sm:$0xff]  }
 0xa04   :  { %v1744_v29 = vpop.xlane.xlu0 %1743  ;;  %1953 = vmatpush1.bf16.msra.mxu0 %v3049_v49 }
 0xa05   :  { %v4226_v40 = vmul.f32 %v3775_v56, %v1759_v6  ;;  %v4229_v10 = vmul.f32 %v3775_v56, %v1758_v8  ;;  %v1752_v52 = vmul.f32 0.03125, %v1744_v29  ;;  %1785 = vadd.xlane.f32.xlu1 %v1773_v59  ;;  %1954 = vmatprep.subr.bf16.mxu0 %v3054_v53 }
 0xa07   :  { %v1760_v15 = vsub.f32 %v1728_v7, %v1752_v52  ;;  %v1775_v57 = vmul.f32 %v4226_v40, %v4226_v40  ;;  %v1774_v58 = vmul.f32 %v4229_v10, %v4229_v10  ;;  %v3052_v7 = vld [vmem:[%s4691_s1 + $0x150] ss:$8 sps:$4 sm:$0xff]  }
 0xa08   :  { %1955 = vmatpush1.bf16.msra.mxu0 %v3052_v7 }
 0xa09   :  { %v4242_v37 = vmul.f32 %v3775_v56, %v1760_v15  ;;  %1789 = vadd.xlane.f32.xlu1 %v1775_v57  ;;  %1787 = vadd.xlane.f32.xlu0 %v1774_v58  ;;  %v3057_v56 = vld [vmem:[%s4691_s1 + $0x144] ss:$8 sps:$4 sm:$0xff]   ;;  %v1828_v57 = vrot.slane %v4182_v3, %v3874_v46 }
 0xa0a   :  { %1956 = vmatprep.subr.bf16.mxu0 %v3057_v56 }
 0xa0b   :  { %v1776_v5 = vmul.f32 %v4242_v37, %v4242_v37 }
 0xa0c   :  { %1957 = vmatpush1.bf16.msra.mxu0 %v3055_v12 }
 0xa0d   :  { %1791 = vadd.xlane.f32.xlu0 %v1776_v5  ;;  %1958 = vmatprep.subr.bf16.mxu0 %v3060_v25 }
 0xa10   :  { %1959 = vmatpush1.bf16.msra.mxu0 %v3058_v47  ;;  %v1840_v47 = vrot.slane %v4182_v3, %v3879_v62 }
 0xa11   :  { %1960 = vmatprep.subr.bf16.mxu0 %v3063_v61 }
 0xa14   :  { %1961 = vmatpush1.bf16.msra.mxu0 %v3061_v30 }
 0xa15   :  { %1962 = vmatprep.subr.bf16.mxu0 %v3066_v60 }
 0xa18   :  { %1963 = vmatpush1.bf16.msra.mxu0 %v3064_v50 }
 0xa19   :  { %1964 = vmatprep.subr.bf16.mxu0 %v3069_v35 }
 0xa1c   :  { %1965 = vmatpush1.bf16.msra.mxu0 %v3067_v39 }
 0xa7e   :  { %v1778_v42 = vpop.xlane.xlu1 %1777 }
 0xa7f   :  { %v1793_v43 = vmul.f32 0.03125, %v1778_v42 }
 0xa81   :  { %v1801_v19 = vadd.f32 1e-05, %v1793_v43 }
 0xa82   :  { %v1782_v24 = vpop.xlane.xlu1 %1781  ;;  %v1780_v23 = vpop.xlane.xlu0 %1779 }
 0xa83   :  { %3182 = vrsqrt.f32 %v1801_v19  ;;  %v1795_v38 = vmul.f32 0.03125, %v1782_v24  ;;  %v1794_v20 = vmul.f32 0.03125, %v1780_v23 }
 0xa85   :  { %v1802_v11 = vadd.f32 1e-05, %v1794_v20  ;;  %v1803_v6 = vadd.f32 1e-05, %v1795_v38 }
 0xa86   :  { %v1784_v8 = vpop.xlane.xlu0 %1783 }
 0xa87   :  { %v1796_v59 = vmul.f32 0.03125, %v1784_v8  ;;  %3184 = vrsqrt.f32 %v1802_v11 }
 0xa88   :  { %3186 = vrsqrt.f32 %v1803_v6 }
 0xa89   :  { %v1804_v29 = vadd.f32 1e-05, %v1796_v59 }
 0xa8b   :  { %3188 = vrsqrt.f32 %v1804_v29 }
 0xa8e   :  { %v1786_v52 = vpop.xlane.xlu1 %1785 }
 0xa8f   :  { %v1797_v48 = vmul.f32 0.03125, %v1786_v52 }
 0xa90   :  { %v3183_v49 = vpop.eup %3182 }
 0xa91   :  { %v1805_v15 = vadd.f32 1e-05, %v1797_v48  ;;  %v1817_v58 = vmul.f32 %v3183_v49, %v4201_v9 }
 0xa92   :  { %v1790_v53 = vpop.xlane.xlu1 %1789  ;;  %v1788_v7 = vpop.xlane.xlu0 %1787 }
 0xa93   :  { %3190 = vrsqrt.f32 %v1805_v15  ;;  %v1799_v5 = vmul.f32 0.03125, %v1790_v53  ;;  %v1798_v56 = vmul.f32 0.03125, %v1788_v7  ;;  %v1829_v60 = vmul.f32 %v1828_v57, %v1817_v58 }
 0xa94   :  { %v3185_v12 = vpop.eup %3184 }
 0xa95   :  { %v1806_v25 = vadd.f32 1e-05, %v1798_v56  ;;  %v1818_v61 = vmul.f32 %v3185_v12, %v4209_v4  ;;  %v1807_v30 = vadd.f32 1e-05, %v1799_v5  ;;  %v3187_v35 = vpop.eup %3186  ;;  %v1841_v24 = vadd.f32 %v1840_v47, %v1829_v60 }
 0xa96   :  { %v1792_v50 = vpop.xlane.xlu0 %1791  ;;  %v1819_v38 = vmul.f32 %v3187_v35, %v4206_v41 }
 0xa97   :  { %v1800_v39 = vmul.f32 0.03125, %v1792_v50  ;;  %3192 = vrsqrt.f32 %v1806_v25  ;;  %v1830_v9 = vmul.f32 %v1828_v57, %v1818_v61 }
 0xa98   :  { %v3189_v42 = vpop.eup %3188  ;;  %3194 = vrsqrt.f32 %v1807_v30  ;;  %v1831_v4 = vmul.f32 %v1828_v57, %v1819_v38 }
 0xa99   :  { %v1808_v43 = vadd.f32 1e-05, %v1800_v39  ;;  %v1820_v19 = vmul.f32 %v3189_v42, %v4216_v63  ;;  %v1842_v23 = vadd.f32 %v1840_v47, %v1830_v9 }
 0xa9a   :  { %v1843_v8 = vadd.f32 %v1840_v47, %v1831_v4 }
 0xa9b   :  { %3196 = vrsqrt.f32 %v1808_v43  ;;  %v1866_v3 = vpack.c.bf16 %v1842_v23, %v1841_v24  ;;  %v1832_v20 = vmul.f32 %v1828_v57, %v1820_v19 }
 0xa9d   :  { %1983 = vmatmul.mubr.bf16.vlgmr.msra.gmra.mxu0 %v1866_v3  ;;  %v1844_v6 = vadd.f32 %v1840_v47, %v1832_v20 }
 0xa9e   :  { %1992 = vmatprep.mubr.bf16.mxu0 %v3262_v1 }
 0xa9f   :  { %v1867_v29 = vpack.c.bf16 %v1844_v6, %v1843_v8 }
 0xaa0   :  { %v3191_v11 = vpop.eup %3190 }
 0xaa1   :  { %v1821_v59 = vmul.f32 %v3191_v11, %v4221_v51 }
 0xaa3   :  { %v1833_v48 = vmul.f32 %v1828_v57, %v1821_v59 }
 0xaa4   :  { %v3193_v52 = vpop.eup %3192 }
 0xaa5   :  { %1993 = vmatmul.mubr.bf16.gmra.mxu0 %v1867_v29  ;;  %v1822_v63 = vmul.f32 %v3193_v52, %v4229_v10  ;;  %v3195_v49 = vpop.eup %3194  ;;  %v1845_v53 = vadd.f32 %v1840_v47, %v1833_v48 }
 0xaa6   :  { %2002 = vmatprep.mubr.bf16.mxu0 %v3262_v1  ;;  %v1823_v5 = vmul.f32 %v3195_v49, %v4226_v40 }
 0xaa7   :  { %v1834_v15 = vmul.f32 %v1828_v57, %v1822_v63 }
 0xaa8   :  { %v3197_v41 = vpop.eup %3196  ;;  %v1835_v51 = vmul.f32 %v1828_v57, %v1823_v5 }
 0xaa9   :  { %v1824_v58 = vmul.f32 %v3197_v41, %v4242_v37  ;;  %v1846_v7 = vadd.f32 %v1840_v47, %v1834_v15 }
 0xaaa   :  { %v1847_v10 = vadd.f32 %v1840_v47, %v1835_v51 }
 0xaab   :  { %v1868_v56 = vpack.c.bf16 %v1846_v7, %v1845_v53  ;;  %v1836_v12 = vmul.f32 %v1828_v57, %v1824_v58 }
 0xaad   :  { %2003 = vmatmul.mubr.bf16.gmra.mxu0 %v1868_v56  ;;  %v1848_v25 = vadd.f32 %v1840_v47, %v1836_v12 }
 0xaae   :  { %2012 = vmatprep.mubr.bf16.mxu0 %v3262_v1 }
 0xaaf   :  { %v1869_v61 = vpack.c.bf16 %v1848_v25, %v1847_v10 }
 0xab5   :  { %2013 = vmatmul.mubr.bf16.gmra.mxu0 %v1869_v61 }
 0xb5d   :  { %v4297_v30 = vpop.f32.mrf.mxu0 }
 0xb5e   :  { %2032 = vperm.xlu1 %2984, %v4297_v30  }
 0xb5f   :  { %v1986_v50 = vpop.f32.mrf.mxu0 }
 0xb61   :  { %v4300_v37 = vpop.f32.mrf.mxu0 }
 0xb62   :  { %2985 = vset.pattern.permute.xlu1 %v3264_v33  ;;  %2173 = vperm.xlu0 %2983, %v4300_v37   ;;  %v2525_v59 = vpack.c.bf16 %v4300_v37, %v4297_v30 }
 0xb63   :  { %2169 = vperm.xlu1 %2985, %v4297_v30   ;;  %v1990_v40 = vpop.f32.mrf.mxu0 }
 0xb64   :  { %v2529_v4 = vpack.c.bf16 %v1990_v40, %v1986_v50 }
 0xb65   :  { %v1994_v57 = vpop.f32.mrf.mxu0 }
 0xb66   :  { %2177 = vperm.xlu0 %2983, %v1994_v57  }
 0xb67   :  { %2986 = vset.pattern.permute.xlu1 %v3263_v2  ;;  %v1996_v1 = vpop.f32.mrf.mxu0 }
 0xb68   :  { %2104 = vperm.xlu1 %2986, %v1986_v50  }
 0xb69   :  { %v1998_v47 = vpop.f32.mrf.mxu0 }
 0xb6a   :  { %2209 = vperm.xlu0 %2983, %v1996_v1   ;;  %v2526_v8 = vpack.c.bf16 %v1998_v47, %v1994_v57 }
 0xb6b   :  { %v2000_v60 = vpop.f32.mrf.mxu0 }
 0xb6c   :  { %2987 = vset.pattern.permute.xlu1 %v3264_v33  ;;  %v2530_v20 = vpack.c.bf16 %v2000_v60, %v1996_v1 }
 0xb6d   :  { %2201 = vperm.xlu1 %2987, %v1986_v50   ;;  %v2004_v35 = vpop.f32.mrf.mxu0 }
 0xb6e   :  { %2185 = vperm.xlu0 %2983, %v2004_v35  }
 0xb6f   :  { %v2006_v39 = vpop.f32.mrf.mxu0 }
 0xb71   :  { %2988 = vset.pattern.permute.xlu1 %v3263_v2  ;;  %v2008_v42 = vpop.f32.mrf.mxu0 }
 0xb72   :  { %2107 = vperm.xlu1 %2988, %v1990_v40   ;;  %2217 = vperm.xlu0 %2983, %v2006_v39   ;;  %v2527_v6 = vpack.c.bf16 %v2008_v42, %v2004_v35 }
 0xb73   :  { %v2010_v9 = vpop.f32.mrf.mxu0 }
 0xb74   :  { %v2531_v3 = vpack.c.bf16 %v2010_v9, %v2006_v39 }
 0xb75   :  { %v2014_v43 = vpop.f32.mrf.mxu0 }
 0xb76   :  { %2989 = vset.pattern.permute.xlu1 %v3264_v33  ;;  %2996 = vset.pattern.permute.xlu0 %v3263_v2 }
 0xb77   :  { %2205 = vperm.xlu1 %2989, %v1990_v40   ;;  %2035 = vperm.xlu0 %2996, %v4300_v37   ;;  %v2016_v19 = vpop.f32.mrf.mxu0 }
 0xb79   :  { %v2018_v24 = vpop.f32.mrf.mxu0 }
 0xb7a   :  { %v2528_v11 = vpack.c.bf16 %v2018_v24, %v2014_v43 }
 0xb7b   :  { %2990 = vset.pattern.permute.xlu1 %v3263_v2  ;;  %2116 = vperm.xlu0 %2996, %v2006_v39   ;;  %v2020_v23 = vpop.f32.mrf.mxu0 }
 0xb7c   :  { %v2532_v38 = vpack.c.bf16 %v2020_v23, %v2016_v19  ;;  %2038 = vperm.xlu1 %2990, %v1994_v57  }
 0xb7e   :  { %2935 = vmatprep.subr.bf16.mxu1 %v2532_v38 }
 0xb7f   :  { %2119 = vperm.xlu0 %2996, %v2010_v9   ;;  %2936 = vmatpush3.bf16.msra.mxu1 %v2532_v38 }
 0xb80   :  { %2110 = vperm.xlu1 %2990, %v1996_v1   ;;  %2937 = vmatprep.subr.bf16.mxu1 %v2531_v3 }
 0xb83   :  { %2122 = vperm.xlu0 %2996, %v2016_v19   ;;  %2938 = vmatpush3.bf16.msra.mxu1 %v2531_v3 }
 0xb84   :  { %2041 = vperm.xlu1 %2990, %v1998_v47   ;;  %2939 = vmatprep.subr.bf16.mxu1 %v2530_v20 }
 0xb87   :  { %2125 = vperm.xlu0 %2996, %v2020_v23   ;;  %2940 = vmatpush3.bf16.msra.mxu1 %v2530_v20 }
 0xb88   :  { %2991 = vset.pattern.permute.xlu1 %v3264_v33  ;;  %2941 = vmatprep.subr.bf16.mxu1 %v2529_v4 }
 0xb89   :  { %2181 = vperm.xlu1 %2991, %v1998_v47  }
 0xb8b   :  { %2997 = vset.pattern.permute.xlu0 %v3264_v33  ;;  %2942 = vmatpush3.bf16.msra.mxu1 %v2529_v4 }
 0xb8c   :  { %2193 = vperm.xlu0 %2997, %v2014_v43   ;;  %2943 = vmatprep.subr.bf16.mxu1 %v2528_v11 }
 0xb8d   :  { %2992 = vset.pattern.permute.xlu1 %v3263_v2 }
 0xb8e   :  { %2113 = vperm.xlu1 %2992, %v2000_v60  }
 0xb8f   :  { %2944 = vmatpush3.bf16.msra.mxu1 %v2528_v11 }
 0xb90   :  { %2225 = vperm.xlu0 %2997, %v2016_v19   ;;  %2945 = vmatprep.subr.bf16.mxu1 %v2527_v6 }
 0xb92   :  { %2993 = vset.pattern.permute.xlu1 %v3264_v33 }
 0xb93   :  { %2213 = vperm.xlu1 %2993, %v2000_v60   ;;  %2946 = vmatpush3.bf16.msra.mxu1 %v2527_v6 }
 0xb94   :  { %2947 = vmatprep.subr.bf16.mxu1 %v2526_v8 }
 0xb97   :  { %2994 = vset.pattern.permute.xlu1 %v3263_v2  ;;  %2948 = vmatpush3.bf16.msra.mxu1 %v2526_v8 }
 0xb98   :  { %2044 = vperm.xlu1 %2994, %v2004_v35   ;;  %2949 = vmatprep.subr.bf16.mxu1 %v2525_v59 }
 0xb9b   :  { %2950 = vmatpush3.bf16.msra.mxu1 %v2525_v59 }
 0xb9c   :  { %2047 = vperm.xlu1 %2994, %v2008_v42  }
 0xba0   :  { %2050 = vperm.xlu1 %2994, %v2014_v43  }
 0xba4   :  { %2053 = vperm.xlu1 %2994, %v2018_v24  }
 0xba8   :  { %2995 = vset.pattern.permute.xlu1 %v3264_v33 }
 0xba9   :  { %2189 = vperm.xlu1 %2995, %v2008_v42  }
 0xbad   :  { %2221 = vperm.xlu1 %2995, %v2010_v9  }
 0xbb1   :  { %2197 = vperm.xlu1 %2995, %v2018_v24  }
 0xbb5   :  { %2229 = vperm.xlu1 %2995, %v2020_v23  }
 0xbd9   :  { %v2033_v29 = vpop.permute.xlu1 %2032 }
 0xbdd   :  { %v2174_v48 = vpop.permute.xlu0 %2173 }
 0xbde   :  { %v4320_v52 = vpop.permute.xlu1 %2169 }
 0xbe1   :  { %v2178_v2 = vpop.permute.xlu0 %2177 }
 0xbe3   :  { %v2105_v63 = vpop.permute.xlu1 %2104 }
 0xbe4   :  { %v2130_v40 = vrot.slane %v2105_v63, %v3430_v16  ;;  %v2058_v16 = vrot.slane %v2033_v29, %v3425_v13 }
 0xbe5   :  { %v2210_v58 = vpop.permute.xlu0 %2209 }
 0xbe8   :  { %v2202_v49 = vpop.permute.xlu1 %2201 }
 0xbe9   :  { %v4322_v7 = vpop.permute.xlu0 %2185 }
 0xbed   :  { %v2108_v41 = vpop.permute.xlu1 %2107  ;;  %v4324_v56 = vpop.permute.xlu0 %2217 }
 0xbee   :  { %v2134_v30 = vrot.slane %v2108_v41, %v3436_v18  ;;  %v4375_v41 = vld [vmem:[%s4693_s2 + $0x90] sm:$0xff] }
 0xbef   :  { %vm2287_vm11 = vcmp.gt.f32.partialorder %v4375_v41, 0.5 }
 0xbf0   :  { %v2135_v47 = vsel %vm329_vm1, %v2134_v30, %v2130_v40  ;;  %vm4716_vm1 = vcmask 130112  }
 0xbf2   :  { %v2206_v15 = vpop.permute.xlu1 %2205  ;;  %v2036_v51 = vpop.permute.xlu0 %2035 }
 0xbf3   :  { %v2062_v18 = vrot.slane %v2036_v51, %v3433_v17 }
 0xbf5   :  { %v2063_v38 = vsel %vm4716_vm1, %v2062_v18, %v2058_v16  ;;  %v4418_v18 = vld [vmem:[%s4693_s2 + $0x98] sm:$0xff] }
 0xbf6   :  { %v2117_v10 = vpop.permute.xlu0 %2116 }
 0xbf7   :  { %v2039_v53 = vpop.permute.xlu1 %2038  ;;  %v2149_v39 = vrot.slane %v2117_v10, %v3460_v32 }
 0xbf8   :  { %v2067_v43 = vrot.slane %v2039_v53, %v3441_v21  ;;  %v2234_v53 = vsel %vm374_vm14, %v2178_v2, %v2210_v58 }
 0xbfa   :  { %v2120_v50 = vpop.permute.xlu0 %2119 }
 0xbfb   :  { %v2111_v5 = vpop.permute.xlu1 %2110 }
 0xbfc   :  { %v2139_v37 = vrot.slane %v2111_v5, %v3444_v22  ;;  %v2232_v5 = vsel %vm374_vm14, %v4320_v52, %v2202_v49 }
 0xbfe   :  { %v2140_v60 = vsel %vm336_vm3, %v2139_v37, %v2135_v47  ;;  %v2123_v42 = vpop.permute.xlu0 %2122  ;;  %vm4717_vm3 = vcmask 917312  }
 0xbff   :  { %v2042_v33 = vpop.permute.xlu1 %2041  ;;  %v2159_v21 = vrot.slane %v2123_v42, %v3482_v45  ;;  %v4413_v42 = vld [vmem:[%s4693_s2 + $0xa0] sm:$0xff] }
 0xc00   :  { %v2072_v19 = vrot.slane %v2042_v33, %v3449_v27  ;;  %v2233_v33 = vsel %vm374_vm14, %v2174_v48, %v2206_v15  ;;  %v2236_v48 = vsel %vm374_vm14, %v4322_v7, %v4324_v56 }
 0xc02   :  { %v2126_v20 = vpop.permute.xlu0 %2125 }
 0xc03   :  { %v2164_v11 = vrot.slane %v2126_v20, %v3498_v55  ;;  %v4365_v55 = vld [vmem:[%s4693_s2 + $0x88] sm:$0xff] }
 0xc04   :  { %v4326_v12 = vpop.permute.xlu1 %2181  ;;  %vm2286_vm13 = vcmp.gt.f32.partialorder %v4365_v55, 0.5 }
 0xc07   :  { %v2194_v30 = vpop.permute.xlu0 %2193 }
 0xc09   :  { %v2114_v25 = vpop.permute.xlu1 %2113 }
 0xc0a   :  { %v2144_v57 = vrot.slane %v2114_v25, %v3452_v28  ;;  %v2154_v28 = vrot.slane %v2120_v50, %v3466_v36 }
 0xc0c   :  { %v2145_v35 = vsel %vm343_vm5, %v2144_v57, %v2140_v60  ;;  %vm4718_vm5 = vcmask 195712   ;;  %v2226_v60 = vpop.permute.xlu0 %2225 }
 0xc0d   :  { %v2150_v22 = vsel %vm350_vm7, %v2149_v39, %v2145_v35  ;;  %v2068_v17 = vsel %vm4718_vm5, %v2067_v43, %v2063_v38  ;;  %vm4719_vm7 = vcmask 261312  }
 0xc0e   :  { %v2214_v61 = vpop.permute.xlu1 %2213  ;;  %v2155_v32 = vsel %vm4717_vm3, %v2154_v28, %v2150_v22  ;;  %v2073_v36 = vsel %vm4719_vm7, %v2072_v19, %v2068_v17  ;;  %v2238_v28 = vsel %vm374_vm14, %v2194_v30, %v2226_v60 }
 0xc0f   :  { %v2235_v49 = vsel %vm374_vm14, %v4326_v12, %v2214_v61 }
 0xc13   :  { %v2045_v1 = vpop.permute.xlu1 %2044 }
 0xc14   :  { %v2077_v24 = vrot.slane %v2045_v1, %v3457_v31  ;;  %v2160_v31 = vsel %vm4721_vm4, %v2159_v21, %v2155_v32  ;;  %vm2288_vm4 = vcmp.gt.f32.partialorder %v4418_v18, 0.5 }
 0xc15   :  { %v2165_v59 = vsel %vm4725_vm9, %v2164_v11, %v2160_v31  ;;  %v4451_v31 = vld [vmem:[%s4693_s2 + $0xa8] sm:$0xff] }
 0xc16   :  { %v2078_v27 = vsel %vm4720_vm2, %v2077_v24, %v2073_v36  ;;  %vm2289_vm2 = vcmp.gt.f32.partialorder %v4413_v42, 0.5  ;;  %vm2290_vm9 = vcmp.gt.f32.partialorder %v4451_v31, 0.5 }
 0xc17   :  { %v2048_v9 = vpop.permute.xlu1 %2047 }
 0xc18   :  { %v2082_v3 = vrot.slane %v2048_v9, %v3463_v34 }
 0xc1a   :  { %v2083_v6 = vsel %vm4722_vm6, %v2082_v3, %v2078_v27  ;;  %v4445_v27 = vld [vmem:[%s4693_s2 + $0xb0] sm:$0xff] }
 0xc1b   :  { %v2051_v23 = vpop.permute.xlu1 %2050 }
 0xc1c   :  { %v2087_v13 = vrot.slane %v2051_v23, %v3479_v44 }
 0xc1e   :  { %v2088_v8 = vsel %vm4723_vm10, %v2087_v13, %v2083_v6 }
 0xc1f   :  { %v2054_v4 = vpop.permute.xlu1 %2053 }
 0xc20   :  { %v2092_v34 = vrot.slane %v2054_v4, %v3495_v54  ;;  %v4370_v54 = vld [vmem:[%s4693_s2 + $0x80] sm:$0xff] }
 0xc21   :  { %vm2285_vm15 = vcmp.gt.f32.partialorder %v4370_v54, 0.5 }
 0xc22   :  { %v2093_v45 = vsel %vm4724_vm0, %v2092_v34, %v2088_v8  ;;  %vm2291_vm0 = vcmp.gt.f32.partialorder %v4445_v27, 0.5 }
 0xc23   :  { %v2167_v44 = vsel %vm374_vm14, %v2093_v45, %v2165_v59 }
 0xc24   :  { %v4360_v29 = vrot.slane %v2167_v44, %v3513_v14  ;;  %v2190_v63 = vpop.permute.xlu1 %2189 }
 0xc26   :  { %v2245_v51 = vadd.f32 %v4360_v29, %v2233_v33  ;;  %v2244_v25 = vadd.f32 %v4360_v29, %v2232_v5  ;;  %v2246_v10 = vadd.f32 %v4360_v29, %v2234_v53  ;;  %v2248_v40 = vadd.f32 %v4360_v29, %v2236_v48  ;;  %v4473_v5 = vld [vmem:[%s4693_s2 + $0xb8] sm:$0xff] }
 0xc27   :  { %v2247_v57 = vadd.f32 %v4360_v29, %v2235_v49  ;;  %v2250_v38 = vadd.f32 %v4360_v29, %v2238_v28 }
 0xc28   :  { %v2222_v50 = vpop.permute.xlu1 %2221  ;;  %vm2253_vm8 = vcmp.ge.f32.partialorder %v2245_v51, 0.0  ;;  %v2261_v2 = vmul.f32 0.2, %v2245_v51  ;;  %vm2252_vm1 = vcmp.ge.f32.partialorder %v2244_v25, 0.0  ;;  %v2260_v52 = vmul.f32 0.2, %v2244_v25 }
 0xc29   :  { %vm2254_vm3 = vcmp.ge.f32.partialorder %v2246_v10, 0.0  ;;  %v2262_v15 = vmul.f32 0.2, %v2246_v10  ;;  %v2264_v39 = vmul.f32 0.2, %v2248_v40  ;;  %v2237_v43 = vsel %vm374_vm14, %v2190_v63, %v2222_v50 }
 0xc2a   :  { %v2269_v58 = vsel %vm2253_vm8, %v2245_v51, %v2261_v2  ;;  %v2268_v37 = vsel %vm2252_vm1, %v2244_v25, %v2260_v52  ;;  %v2263_v9 = vmul.f32 0.2, %v2247_v57  ;;  %vm2256_vm5 = vcmp.ge.f32.partialorder %v2248_v40, 0.0 }
 0xc2b   :  { %v4396_v1 = vsel %vm2286_vm13, %v2269_v58, -1e+30  ;;  %v4400_v47 = vsel %vm2285_vm15, %v2268_v37, -1e+30  ;;  %v2270_v7 = vsel %vm2254_vm3, %v2246_v10, %v2262_v15  ;;  %vm2255_vm7 = vcmp.ge.f32.partialorder %v2247_v57, 0.0 }
 0xc2c   :  { %v2304_v56 = vsel %vm374_vm14, %v4396_v1, -inf  ;;  %v2301_v12 = vsel %vm374_vm14, %v4400_v47, -inf  ;;  %v4408_v61 = vsel %vm2287_vm11, %v2270_v7, -1e+30  ;;  %v2198_v35 = vpop.permute.xlu1 %2197  ;;  %v2325_v16 = vsel %vm532_vm12, %v4400_v47, -inf }
 0xc2d   :  { %2305 = vmax.xlane.f32.xlu1 %v2304_v56  ;;  %2302 = vmax.xlane.f32.xlu0 %v2301_v12  ;;  %v2307_v22 = vsel %vm374_vm14, %v4408_v61, -inf  ;;  %v2249_v19 = vadd.f32 %v4360_v29, %v2237_v43  ;;  %v2272_v24 = vsel %vm2256_vm5, %v2248_v40, %v2264_v39  ;;  %v2271_v23 = vsel %vm2255_vm7, %v2247_v57, %v2263_v9 }
 0xc2e   :  { %v2331_v3 = vsel %vm532_vm12, %v4408_v61, -inf  ;;  %v2328_v17 = vsel %vm532_vm12, %v4396_v1, -inf  ;;  %v4436_v21 = vsel %vm2289_vm2, %v2272_v24, -1e+30  ;;  %v4440_v20 = vsel %vm2288_vm4, %v2271_v23, -1e+30 }
 0xc2f   :  { %v2265_v13 = vmul.f32 0.2, %v2249_v19  ;;  %v2266_v36 = vmul.f32 0.2, %v2250_v38  ;;  %vm2257_vm6 = vcmp.ge.f32.partialorder %v2249_v19, 0.0  ;;  %vm2258_vm10 = vcmp.ge.f32.partialorder %v2250_v38, 0.0 }
 0xc30   :  { %v2230_v32 = vpop.permute.xlu1 %2229  ;;  %v2313_v11 = vsel %vm374_vm14, %v4436_v21, -inf  ;;  %v2310_v6 = vsel %vm374_vm14, %v4440_v20, -inf  ;;  %v2337_v59 = vsel %vm532_vm12, %v4436_v21, -inf  ;;  %v2334_v44 = vsel %vm532_vm12, %v4440_v20, -inf }
 0xc31   :  { %2308 = vmax.xlane.f32.xlu1 %v2307_v22  ;;  %2326 = vmax.xlane.f32.xlu0 %v2325_v16  ;;  %v2239_v4 = vsel %vm374_vm14, %v2198_v35, %v2230_v32  ;;  %v2273_v8 = vsel %vm2257_vm6, %v2249_v19, %v2265_v13  ;;  %v2274_v45 = vsel %vm2258_vm10, %v2250_v38, %v2266_v36  ;;  %vm2292_vm1 = vcmp.gt.f32.partialorder %v4473_v5, 0.5 }
 0xc32   :  { %v2251_v34 = vadd.f32 %v4360_v29, %v2239_v4  ;;  %v4466_v63 = vsel %vm2290_vm9, %v2273_v8, -1e+30  ;;  %v2299_v53 = vsel %vm2291_vm0, %v2274_v45, -1e+30 }
 0xc33   :  { %v2316_v33 = vsel %vm374_vm14, %v4466_v63, -inf  ;;  %v2319_v51 = vsel %vm374_vm14, %v2299_v53, -inf  ;;  %v2340_v10 = vsel %vm532_vm12, %v4466_v63, -inf  ;;  %v2343_v30 = vsel %vm532_vm12, %v2299_v53, -inf }
 0xc34   :  { %v2267_v29 = vmul.f32 0.2, %v2251_v34  ;;  %vm2259_vm8 = vcmp.ge.f32.partialorder %v2251_v34, 0.0 }
 0xc35   :  { %2332 = vmax.xlane.f32.xlu1 %v2331_v3  ;;  %2329 = vmax.xlane.f32.xlu0 %v2328_v17 }
 0xc36   :  { %v2275_v25 = vsel %vm2259_vm8, %v2251_v34, %v2267_v29 }
 0xc37   :  { %v2300_v50 = vsel %vm2292_vm1, %v2275_v25, -1e+30 }
 0xc38   :  { %v2322_v2 = vsel %vm374_vm14, %v2300_v50, -inf  ;;  %v2346_v52 = vsel %vm532_vm12, %v2300_v50, -inf  ;;  %vm2608_vm12 = vcmp.lt.s32.totalorder %v3406_v0, 16 }
 0xc39   :  { %2314 = vmax.xlane.f32.xlu1 %v2313_v11  ;;  %2311 = vmax.xlane.f32.xlu0 %v2310_v6 }
 0xc3d   :  { %2338 = vmax.xlane.f32.xlu1 %v2337_v59  ;;  %2335 = vmax.xlane.f32.xlu0 %v2334_v44 }
 0xc41   :  { %2317 = vmax.xlane.f32.xlu0 %v2316_v33  ;;  %2320 = vmax.xlane.f32.xlu1 %v2319_v51 }
 0xc45   :  { %2341 = vmax.xlane.f32.xlu0 %v2340_v10  ;;  %2344 = vmax.xlane.f32.xlu1 %v2343_v30 }
 0xc49   :  { %2323 = vmax.xlane.f32.xlu0 %v2322_v2 }
 0xc4d   :  { %2347 = vmax.xlane.f32.xlu0 %v2346_v52 }
 0xcb6   :  { %v2306_v48 = vpop.xlane.xlu1 %2305  ;;  %v2303_v49 = vpop.xlane.xlu0 %2302 }
 0xcba   :  { %v2309_v15 = vpop.xlane.xlu1 %2308  ;;  %v2327_v58 = vpop.xlane.xlu0 %2326 }
 0xcbb   :  { %v2349_v37 = vsel %vm374_vm14, %v2303_v49, %v2327_v58 }
 0xcbc   :  { %v2357_v40 = vsub.f32 %v4400_v47, %v2349_v37 }
 0xcbe   :  { %v2365_v57 = vmul.f32 1.442695, %v2357_v40  ;;  %v2333_v7 = vpop.xlane.xlu1 %2332  ;;  %v2330_v56 = vpop.xlane.xlu0 %2329 }
 0xcbf   :  { %v2351_v12 = vsel %vm374_vm14, %v2309_v15, %v2333_v7  ;;  %v2350_v60 = vsel %vm374_vm14, %v2306_v48, %v2330_v56 }
 0xcc0   :  { %3198 = vpow2.f32 %v2365_v57  ;;  %v2359_v35 = vsub.f32 %v4408_v61, %v2351_v12  ;;  %v2358_v39 = vsub.f32 %v4396_v1, %v2350_v60 }
 0xcc2   :  { %v2369_v9 = vmul.f32 1.442695, %v2359_v35  ;;  %v2367_v43 = vmul.f32 1.442695, %v2358_v39  ;;  %v2315_v22 = vpop.xlane.xlu1 %2314  ;;  %v2312_v16 = vpop.xlane.xlu0 %2311 }
 0xcc4   :  { %3200 = vpow2.f32 %v2369_v9 }
 0xcc5   :  { %3202 = vpow2.f32 %v2367_v43 }
 0xcc6   :  { %v2339_v28 = vpop.xlane.xlu1 %2338  ;;  %v2336_v47 = vpop.xlane.xlu0 %2335 }
 0xcc7   :  { %v2353_v19 = vsel %vm374_vm14, %v2315_v22, %v2339_v28  ;;  %v2352_v24 = vsel %vm374_vm14, %v2312_v16, %v2336_v47 }
 0xcc8   :  { %v2361_v23 = vsub.f32 %v4436_v21, %v2353_v19  ;;  %v2360_v38 = vsub.f32 %v4440_v20, %v2352_v24 }
 0xcca   :  { %v2373_v32 = vmul.f32 1.442695, %v2361_v23  ;;  %v2371_v61 = vmul.f32 1.442695, %v2360_v38  ;;  %v2321_v3 = vpop.xlane.xlu1 %2320  ;;  %v2318_v1 = vpop.xlane.xlu0 %2317 }
 0xccc   :  { %3204 = vpow2.f32 %v2373_v32 }
 0xccd   :  { %v3199_v17 = vpop.eup %3198  ;;  %3206 = vpow2.f32 %v2371_v61 }
 0xcce   :  { %v2345_v13 = vpop.xlane.xlu1 %2344  ;;  %v2342_v36 = vpop.xlane.xlu0 %2341  ;;  %v4498_v4 = vsel %vm2285_vm15, %v3199_v17, 0.0 }
 0xccf   :  { %v2355_v11 = vsel %vm374_vm14, %v2321_v3, %v2345_v13  ;;  %v2354_v6 = vsel %vm374_vm14, %v2318_v1, %v2342_v36  ;;  %2445 = vrot.lane.b32.xlu1 %v4498_v4, %s3265_s26  ;;  %v2389_v27 = vsel %vm374_vm14, %v4498_v4, 0.0 }
 0xcd0   :  { %v2363_v21 = vsub.f32 %v2299_v53, %v2355_v11  ;;  %v2362_v20 = vsub.f32 %v4466_v63, %v2354_v6 }
 0xcd1   :  { %v3201_v34 = vpop.eup %3200 }
 0xcd2   :  { %v3203_v8 = vpop.eup %3202  ;;  %v2377_v45 = vmul.f32 1.442695, %v2363_v21  ;;  %v2375_v59 = vmul.f32 1.442695, %v2362_v20  ;;  %v2324_v44 = vpop.xlane.xlu0 %2323  ;;  %v4507_v54 = vsel %vm2287_vm11, %v3201_v34, 0.0 }
 0xcd3   :  { %2449 = vrot.lane.b32.xlu1 %v4507_v54, %s3265_s26  ;;  %v4513_v29 = vsel %vm2286_vm13, %v3203_v8, 0.0  ;;  %v2395_v15 = vsel %vm374_vm14, %v4507_v54, 0.0 }
 0xcd4   :  { %3208 = vpow2.f32 %v2377_v45  ;;  %2447 = vrot.lane.b32.xlu0 %v4513_v29, %s3265_s26  ;;  %v2392_v49 = vsel %vm374_vm14, %v4513_v29, 0.0 }
 0xcd5   :  { %3210 = vpow2.f32 %v2375_v59 }
 0xcd6   :  { %v2348_v63 = vpop.xlane.xlu0 %2347 }
 0xcd7   :  { %v2356_v53 = vsel %vm374_vm14, %v2324_v44, %v2348_v63 }
 0xcd8   :  { %v2364_v33 = vsub.f32 %v2300_v50, %v2356_v53 }
 0xcd9   :  { %v3205_v51 = vpop.eup %3204 }
 0xcda   :  { %v3207_v41 = vpop.eup %3206  ;;  %v2379_v25 = vmul.f32 1.442695, %v2364_v33  ;;  %v4520_v10 = vsel %vm2289_vm2, %v3205_v51, 0.0 }
 0xcdb   :  { %2453 = vrot.lane.b32.xlu0 %v4520_v10, %s3265_s26  ;;  %v4526_v55 = vsel %vm2288_vm4, %v3207_v41, 0.0  ;;  %v2401_v58 = vsel %vm374_vm14, %v4520_v10, 0.0 }
 0xcdc   :  { %3212 = vpow2.f32 %v2379_v25  ;;  %2451 = vrot.lane.b32.xlu1 %v4526_v55, %s3265_s26  ;;  %v2398_v31 = vsel %vm374_vm14, %v4526_v55, 0.0 }
 0xce1   :  { %v3209_v30 = vpop.eup %3208 }
 0xce2   :  { %v3211_v50 = vpop.eup %3210  ;;  %v4532_v2 = vsel %vm2291_vm0, %v3209_v30, 0.0 }
 0xce3   :  { %2457 = vrot.lane.b32.xlu0 %v4532_v2, %s3265_s26  ;;  %v4538_v42 = vsel %vm2290_vm9, %v3211_v50, 0.0  ;;  %v2407_v37 = vsel %vm374_vm14, %v4532_v2, 0.0 }
 0xce4   :  { %2455 = vrot.lane.b32.xlu1 %v4538_v42, %s3265_s26  ;;  %v2404_v48 = vsel %vm374_vm14, %v4538_v42, 0.0 }
 0xce9   :  { %v3213_v18 = vpop.eup %3212 }
 0xcea   :  { %v4544_v52 = vsel %vm2292_vm1, %v3213_v18, 0.0 }
 0xceb   :  { %2459 = vrot.lane.b32.xlu1 %v4544_v52, %s3265_s26  ;;  %v2410_v5 = vsel %vm374_vm14, %v4544_v52, 0.0 }
 0xd02   :  { %2390 = vadd.xlane.f32.xlu0 %v2389_v27 }
 0xd06   :  { %2399 = vadd.xlane.f32.xlu0 %v2398_v31 }
 0xd0a   :  { %2405 = vadd.xlane.f32.xlu0 %v2404_v48 }
 0xd0e   :  { %2411 = vadd.xlane.f32.xlu0 %v2410_v5 }
 0xd0f   :  { %2393 = vadd.xlane.f32.xlu1 %v2392_v49 }
 0xd13   :  { %2396 = vadd.xlane.f32.xlu1 %v2395_v15 }
 0xd17   :  { %2402 = vadd.xlane.f32.xlu1 %v2401_v58 }
 0xd1b   :  { %2408 = vadd.xlane.f32.xlu1 %v2407_v37 }
 0xd41   :  { %v2446_v40 = vpop.permute.xlu1 %2445 }
 0xd42   :  { %v2469_v57 = vsel %vm374_vm14, %v2446_v40, 0.0 }
 0xd43   :  { %2470 = vadd.xlane.f32.xlu0 %v2469_v57 }
 0xd45   :  { %v2450_v7 = vpop.permute.xlu1 %2449 }
 0xd46   :  { %v2475_v56 = vsel %vm374_vm14, %v2450_v7, 0.0  ;;  %v2448_v12 = vpop.permute.xlu0 %2447 }
 0xd47   :  { %v2472_v60 = vsel %vm374_vm14, %v2448_v12, 0.0  ;;  %2476 = vadd.xlane.f32.xlu1 %v2475_v56 }
 0xd48   :  { %2473 = vadd.xlane.f32.xlu0 %v2472_v60 }
 0xd4d   :  { %v2454_v35 = vpop.permute.xlu0 %2453 }
 0xd4e   :  { %v2452_v39 = vpop.permute.xlu1 %2451  ;;  %v2481_v9 = vsel %vm374_vm14, %v2454_v35, 0.0 }
 0xd4f   :  { %v2478_v43 = vsel %vm374_vm14, %v2452_v39, 0.0  ;;  %2482 = vadd.xlane.f32.xlu1 %v2481_v9 }
 0xd50   :  { %2479 = vadd.xlane.f32.xlu0 %v2478_v43 }
 0xd55   :  { %v2458_v22 = vpop.permute.xlu0 %2457 }
 0xd56   :  { %v2456_v16 = vpop.permute.xlu1 %2455  ;;  %v2487_v28 = vsel %vm374_vm14, %v2458_v22, 0.0 }
 0xd57   :  { %v2484_v47 = vsel %vm374_vm14, %v2456_v16, 0.0  ;;  %2488 = vadd.xlane.f32.xlu1 %v2487_v28 }
 0xd58   :  { %2485 = vadd.xlane.f32.xlu0 %v2484_v47 }
 0xd5d   :  { %v2460_v19 = vpop.permute.xlu1 %2459 }
 0xd5e   :  { %v2490_v24 = vsel %vm374_vm14, %v2460_v19, 0.0 }
 0xd5f   :  { %2491 = vadd.xlane.f32.xlu0 %v2490_v24 }
 0xd8b   :  { %v2391_v23 = vpop.xlane.xlu0 %2390 }
 0xd8c   :  { %v2413_v36 = vmax.f32 %v2391_v23, 1e-30 }
 0xd8f   :  { %v2400_v32 = vpop.xlane.xlu0 %2399 }
 0xd90   :  { %v2416_v59 = vmax.f32 %v2400_v32, 1e-30 }
 0xd93   :  { %v2406_v3 = vpop.xlane.xlu0 %2405 }
 0xd94   :  { %v2418_v25 = vmax.f32 %v2406_v3, 1e-30 }
 0xd97   :  { %v2412_v17 = vpop.xlane.xlu0 %2411 }
 0xd98   :  { %v2394_v38 = vpop.xlane.xlu1 %2393  ;;  %v2420_v57 = vmax.f32 %v2412_v17, 1e-30 }
 0xd99   :  { %v2414_v21 = vmax.f32 %v2394_v38, 1e-30 }
 0xd9c   :  { %v2397_v61 = vpop.xlane.xlu1 %2396 }
 0xd9d   :  { %v2415_v44 = vmax.f32 %v2397_v61, 1e-30 }
 0xda0   :  { %v2403_v1 = vpop.xlane.xlu1 %2402 }
 0xda1   :  { %v2417_v50 = vmax.f32 %v2403_v1, 1e-30 }
 0xda4   :  { %v2409_v11 = vpop.xlane.xlu1 %2408 }
 0xda5   :  { %v2419_v60 = vmax.f32 %v2409_v11, 1e-30 }
 0xdcc   :  { %v2471_v13 = vpop.xlane.xlu0 %2470 }
 0xdcd   :  { %v2493_v6 = vmax.f32 %v2471_v13, 1e-30 }
 0xdcf   :  { %3214 = vrcp.f32 %v2493_v6 }
 0xdd0   :  { %3216 = vrcp.f32 %v2413_v36  ;;  %v2477_v20 = vpop.xlane.xlu1 %2476 }
 0xdd1   :  { %v2474_v34 = vpop.xlane.xlu0 %2473  ;;  %3218 = vrcp.f32 %v2414_v21  ;;  %v2495_v45 = vmax.f32 %v2477_v20, 1e-30 }
 0xdd2   :  { %v2494_v8 = vmax.f32 %v2474_v34, 1e-30 }
 0xdd4   :  { %3220 = vrcp.f32 %v2494_v8 }
 0xdd5   :  { %3222 = vrcp.f32 %v2495_v45 }
 0xdd6   :  { %3224 = vrcp.f32 %v2416_v59 }
 0xdd7   :  { %3226 = vrcp.f32 %v2415_v44 }
 0xdd8   :  { %v2483_v63 = vpop.xlane.xlu1 %2482 }
 0xdd9   :  { %v2480_v53 = vpop.xlane.xlu0 %2479  ;;  %v2497_v51 = vmax.f32 %v2483_v63, 1e-30 }
 0xdda   :  { %v2496_v33 = vmax.f32 %v2480_v53, 1e-30  ;;  %v4599_v53 = vld [vmem:[%s4694_s3 + $0x10] sm:$0xff] }
 0xddc   :  { %3228 = vrcp.f32 %v2496_v33  ;;  %v3215_v41 = vpop.eup %3214  ;;  %v2542_v33 = vrot.slane %v4599_v53, %v3513_v14 }
 0xddd   :  { %v3217_v30 = vpop.eup %3216  ;;  %3230 = vrcp.f32 %v2497_v51  ;;  %v2509_v31 = vmul.f32 %v3215_v41, %v4498_v4  ;;  %v4605_v51 = vsel %vm2608_vm12, 1.0, %v3266_v26 }
 0xdde   :  { %v3219_v18 = vpop.eup %3218  ;;  %3232 = vrcp.f32 %v2418_v25  ;;  %v2429_v49 = vmul.f32 %v3217_v30, %v4498_v4 }
 0xddf   :  { %3234 = vrcp.f32 %v2417_v50  ;;  %v2430_v58 = vmul.f32 %v3219_v18, %v4513_v29 }
 0xde0   :  { %v2489_v27 = vpop.xlane.xlu1 %2488  ;;  %v2517_v7 = vsel %vm374_vm14, %v2429_v49, %v2509_v31 }
 0xde1   :  { %v3221_v48 = vpop.eup %3220  ;;  %v2486_v5 = vpop.xlane.xlu0 %2485  ;;  %v2499_v40 = vmax.f32 %v2489_v27, 1e-30 }
 0xde2   :  { %v2498_v15 = vmax.f32 %v2486_v5, 1e-30  ;;  %v2510_v37 = vmul.f32 %v3221_v48, %v4513_v29  ;;  %v3223_v12 = vpop.eup %3222 }
 0xde3   :  { %v3225_v39 = vpop.eup %3224  ;;  %v2511_v4 = vmul.f32 %v3223_v12, %v4507_v54 }
 0xde4   :  { %3236 = vrcp.f32 %v2498_v15  ;;  %v2518_v56 = vsel %vm374_vm14, %v2430_v58, %v2510_v37  ;;  %v3227_v9 = vpop.eup %3226  ;;  %v2432_v16 = vmul.f32 %v3225_v39, %v4526_v55 }
 0xde5   :  { %v2533_v35 = vpack.c.bf16 %v2518_v56, %v2517_v7  ;;  %3238 = vrcp.f32 %v2499_v40  ;;  %v2431_v28 = vmul.f32 %v3227_v9, %v4507_v54 }
 0xde6   :  { %3240 = vrcp.f32 %v2420_v57 }
 0xde7   :  { %2951 = vmatprep.mubr.bf16.mxu1 %v2533_v35  ;;  %3242 = vrcp.f32 %v2419_v60  ;;  %v2519_v19 = vsel %vm374_vm14, %v2431_v28, %v2511_v4 }
 0xde8   :  { %v2492_v43 = vpop.xlane.xlu0 %2491 }
 0xde9   :  { %v3229_v22 = vpop.eup %3228  ;;  %v2500_v29 = vmax.f32 %v2492_v43, 1e-30 }
 0xdea   :  { %v2512_v47 = vmul.f32 %v3229_v22, %v4526_v55  ;;  %v3231_v23 = vpop.eup %3230 }
 0xdeb   :  { %3244 = vrcp.f32 %v2500_v29  ;;  %v3233_v32 = vpop.eup %3232  ;;  %v2513_v3 = vmul.f32 %v3231_v23, %v4520_v10 }
 0xdec   :  { %v2520_v24 = vsel %vm374_vm14, %v2432_v16, %v2512_v47  ;;  %v3235_v61 = vpop.eup %3234  ;;  %v2434_v13 = vmul.f32 %v3233_v32, %v4538_v42 }
 0xded   :  { %v2534_v38 = vpack.c.bf16 %v2520_v24, %v2519_v19  ;;  %v2433_v17 = vmul.f32 %v3235_v61, %v4520_v10 }
 0xdef   :  { %2952 = vmatmul.mubr.bf16.vlgmr.msra.gmra.mxu1 %v2534_v38  ;;  %v2521_v36 = vsel %vm374_vm14, %v2433_v17, %v2513_v3 }
 0xdf1   :  { %v3237_v1 = vpop.eup %3236 }
 0xdf2   :  { %v2514_v54 = vmul.f32 %v3237_v1, %v4538_v42  ;;  %v3239_v55 = vpop.eup %3238 }
 0xdf3   :  { %v3241_v6 = vpop.eup %3240  ;;  %v2515_v34 = vmul.f32 %v3239_v55, %v4532_v2 }
 0xdf4   :  { %v2522_v11 = vsel %vm374_vm14, %v2434_v13, %v2514_v54  ;;  %v3243_v20 = vpop.eup %3242  ;;  %v2436_v10 = vmul.f32 %v3241_v6, %v4544_v52 }
 0xdf5   :  { %v2535_v21 = vpack.c.bf16 %v2522_v11, %v2521_v36  ;;  %v2435_v45 = vmul.f32 %v3243_v20, %v4532_v2 }
 0xdf7   :  { %2955 = vmatprep.mubr.bf16.mxu1 %v2535_v21  ;;  %v2523_v42 = vsel %vm374_vm14, %v2435_v45, %v2515_v34 }
 0xdf8   :  { %v3245_v8 = vpop.eup %3244 }
 0xdf9   :  { %v2516_v59 = vmul.f32 %v3245_v8, %v4544_v52 }
 0xdfb   :  { %v2524_v44 = vsel %vm374_vm14, %v2436_v10, %v2516_v59 }
 0xdfc   :  { %v2536_v63 = vpack.c.bf16 %v2524_v44, %v2523_v42 }
 0xdfe   :  { %2956 = vmatmul.mubr.bf16.gmra.mxu1 %v2536_v63 }
 0xeaf   :  { %v2953_v2 = vpop.f32.mrf.mxu1 }
 0xeb0   :  { %v2586_v52 = vadd.f32 %v2953_v2, %v2542_v33 }
 0xeb1   :  { %v2577_v41 = vpop.f32.mrf.mxu1 }
 0xeb2   :  { %v2613_v25 = vmul.f32 %v4605_v51, %v2586_v52  ;;  %v2578_v30 = vadd.f32 %v2577_v41, %v2542_v33 }
 0xeb3   :  { %v2954_v50 = vpop.f32.mrf.mxu1 }
 0xeb4   :  { %v2589_v18 = vadd.f32 %v2954_v50, %v2542_v33  ;;  %2623 = vadd.xlane.f32.xlu1 %v2613_v25  ;;  %v2611_v31 = vmul.f32 %v4605_v51, %v2578_v30 }
 0xeb5   :  { %v2580_v27 = vpop.f32.mrf.mxu1 }
 0xeb6   :  { %v2614_v48 = vmul.f32 %v4605_v51, %v2589_v18  ;;  %v2581_v14 = vadd.f32 %v2580_v27, %v2542_v33 }
 0xeb8   :  { %2625 = vadd.xlane.f32.xlu0 %v2614_v48  ;;  %2619 = vadd.xlane.f32.xlu1 %v2611_v31  ;;  %v2612_v0 = vmul.f32 %v4605_v51, %v2581_v14 }
 0xebc   :  { %2621 = vadd.xlane.f32.xlu0 %v2612_v0 }
 0xebe   :  { %v2957_v26 = vpop.f32.mrf.mxu1 }
 0xebf   :  { %v2602_v58 = vadd.f32 %v2957_v26, %v2542_v33 }
 0xec0   :  { %v2593_v5 = vpop.f32.mrf.mxu1 }
 0xec1   :  { %v2594_v49 = vadd.f32 %v2593_v5, %v2542_v33  ;;  %v2617_v7 = vmul.f32 %v4605_v51, %v2602_v58 }
 0xec2   :  { %v2958_v15 = vpop.f32.mrf.mxu1 }
 0xec3   :  { %v2615_v37 = vmul.f32 %v4605_v51, %v2594_v49  ;;  %v2605_v56 = vadd.f32 %v2958_v15, %v2542_v33  ;;  %v2718_v15 = vrot.slane %v4599_v53, %v3874_v46 }
 0xec4   :  { %v2596_v40 = vpop.f32.mrf.mxu1 }
 0xec5   :  { %v2597_v57 = vadd.f32 %v2596_v40, %v2542_v33  ;;  %2627 = vadd.xlane.f32.xlu1 %v2615_v37  ;;  %v2618_v60 = vmul.f32 %v4605_v51, %v2605_v56 }
 0xec7   :  { %v2616_v12 = vmul.f32 %v4605_v51, %v2597_v57  ;;  %v2730_v57 = vrot.slane %v4599_v53, %v3879_v62 }
 0xec9   :  { %2629 = vadd.xlane.f32.xlu0 %v2616_v12  ;;  %2631 = vadd.xlane.f32.xlu1 %v2617_v7 }
 0xecd   :  { %2633 = vadd.xlane.f32.xlu0 %v2618_v60 }
 0xf3d   :  { %v2624_v35 = vpop.xlane.xlu1 %2623 }
 0xf3e   :  { %v2637_v39 = vmul.f32 0.0625, %v2624_v35 }
 0xf40   :  { %v2645_v9 = vsub.f32 %v2613_v25, %v2637_v39 }
 0xf41   :  { %v2620_v4 = vpop.xlane.xlu1 %2619  ;;  %v2626_v43 = vpop.xlane.xlu0 %2625 }
 0xf42   :  { %v4616_v22 = vmul.f32 %v4605_v51, %v2645_v9  ;;  %v2635_v29 = vmul.f32 0.0625, %v2620_v4  ;;  %v2638_v16 = vmul.f32 0.0625, %v2626_v43 }
 0xf44   :  { %v2643_v28 = vsub.f32 %v2611_v31, %v2635_v29  ;;  %v2646_v47 = vsub.f32 %v2614_v48, %v2638_v16  ;;  %v2661_v19 = vmul.f32 %v4616_v22, %v4616_v22 }
 0xf45   :  { %v2622_v24 = vpop.xlane.xlu0 %2621 }
 0xf46   :  { %v4621_v23 = vmul.f32 %v4605_v51, %v2643_v28  ;;  %v4624_v38 = vmul.f32 %v4605_v51, %v2646_v47  ;;  %v2636_v32 = vmul.f32 0.0625, %v2622_v24  ;;  %2671 = vadd.xlane.f32.xlu1 %v2661_v19 }
 0xf48   :  { %v2644_v61 = vsub.f32 %v2612_v0, %v2636_v32  ;;  %v2659_v3 = vmul.f32 %v4621_v23, %v4621_v23  ;;  %v2662_v1 = vmul.f32 %v4624_v38, %v4624_v38 }
 0xf4a   :  { %v4631_v17 = vmul.f32 %v4605_v51, %v2644_v61  ;;  %2667 = vadd.xlane.f32.xlu1 %v2659_v3  ;;  %2673 = vadd.xlane.f32.xlu0 %v2662_v1 }
 0xf4c   :  { %v2660_v13 = vmul.f32 %v4631_v17, %v4631_v17 }
 0xf4e   :  { %2669 = vadd.xlane.f32.xlu0 %v2660_v13  ;;  %v2628_v54 = vpop.xlane.xlu1 %2627 }
 0xf4f   :  { %v2639_v55 = vmul.f32 0.0625, %v2628_v54 }
 0xf51   :  { %v2647_v36 = vsub.f32 %v2615_v37, %v2639_v55 }
 0xf52   :  { %v2632_v11 = vpop.xlane.xlu1 %2631  ;;  %v2630_v6 = vpop.xlane.xlu0 %2629 }
 0xf53   :  { %v4636_v21 = vmul.f32 %v4605_v51, %v2647_v36  ;;  %v2641_v20 = vmul.f32 0.0625, %v2632_v11  ;;  %v2640_v34 = vmul.f32 0.0625, %v2630_v6 }
 0xf55   :  { %v2649_v8 = vsub.f32 %v2617_v7, %v2641_v20  ;;  %v2648_v45 = vsub.f32 %v2616_v12, %v2640_v34  ;;  %v2663_v10 = vmul.f32 %v4636_v21, %v4636_v21 }
 0xf56   :  { %v2634_v59 = vpop.xlane.xlu0 %2633 }
 0xf57   :  { %v4641_v42 = vmul.f32 %v4605_v51, %v2649_v8  ;;  %v4644_v44 = vmul.f32 %v4605_v51, %v2648_v45  ;;  %v2642_v63 = vmul.f32 0.0625, %v2634_v59  ;;  %2675 = vadd.xlane.f32.xlu1 %v2663_v10 }
 0xf59   :  { %v2650_v33 = vsub.f32 %v2618_v60, %v2642_v63  ;;  %v2665_v2 = vmul.f32 %v4641_v42, %v4641_v42  ;;  %v2664_v52 = vmul.f32 %v4644_v44, %v4644_v44 }
 0xf5b   :  { %v4651_v41 = vmul.f32 %v4605_v51, %v2650_v33  ;;  %2679 = vadd.xlane.f32.xlu1 %v2665_v2  ;;  %2677 = vadd.xlane.f32.xlu0 %v2664_v52 }
 0xf5d   :  { %v2666_v25 = vmul.f32 %v4651_v41, %v4651_v41 }
 0xf5f   :  { %2681 = vadd.xlane.f32.xlu0 %v2666_v25 }
 0xfcf   :  { %v2672_v30 = vpop.xlane.xlu1 %2671 }
 0xfd0   :  { %v2685_v50 = vmul.f32 0.0625, %v2672_v30 }
 0xfd2   :  { %v2693_v18 = vadd.f32 1e-05, %v2685_v50 }
 0xfd3   :  { %v2668_v27 = vpop.xlane.xlu1 %2667  ;;  %v2674_v31 = vpop.xlane.xlu0 %2673 }
 0xfd4   :  { %3246 = vrsqrt.f32 %v2693_v18  ;;  %v2683_v48 = vmul.f32 0.0625, %v2668_v27  ;;  %v2686_v14 = vmul.f32 0.0625, %v2674_v31 }
 0xfd6   :  { %v2691_v0 = vadd.f32 1e-05, %v2683_v48  ;;  %v2694_v26 = vadd.f32 1e-05, %v2686_v14 }
 0xfd7   :  { %v2670_v5 = vpop.xlane.xlu0 %2669 }
 0xfd8   :  { %3248 = vrsqrt.f32 %v2691_v0  ;;  %v2684_v51 = vmul.f32 0.0625, %v2670_v5 }
 0xfd9   :  { %3250 = vrsqrt.f32 %v2694_v26 }
 0xfda   :  { %v2692_v49 = vadd.f32 1e-05, %v2684_v51 }
 0xfdc   :  { %3252 = vrsqrt.f32 %v2692_v49 }
 0xfe0   :  { %v2676_v58 = vpop.xlane.xlu1 %2675 }
 0xfe1   :  { %v3247_v37 = vpop.eup %3246  ;;  %v2687_v40 = vmul.f32 0.0625, %v2676_v58 }
 0xfe2   :  { %v2709_v7 = vmul.f32 %v3247_v37, %v4616_v22 }
 0xfe3   :  { %v2695_v56 = vadd.f32 1e-05, %v2687_v40 }
 0xfe4   :  { %v2721_v12 = vmul.f32 %v2718_v15, %v2709_v7  ;;  %v2680_v60 = vpop.xlane.xlu1 %2679  ;;  %v2678_v35 = vpop.xlane.xlu0 %2677 }
 0xfe5   :  { %v3249_v39 = vpop.eup %3248  ;;  %3254 = vrsqrt.f32 %v2695_v56  ;;  %v2689_v9 = vmul.f32 0.0625, %v2680_v60  ;;  %v2688_v4 = vmul.f32 0.0625, %v2678_v35 }
 0xfe6   :  { %v3251_v43 = vpop.eup %3250  ;;  %v2733_v29 = vadd.f32 %v2730_v57, %v2721_v12  ;;  %v2707_v46 = vmul.f32 %v3249_v39, %v4621_v23 }
 0xfe7   :  { %v2710_v16 = vmul.f32 %v3251_v43, %v4624_v38  ;;  %v2697_v28 = vadd.f32 1e-05, %v2689_v9  ;;  %v2696_v47 = vadd.f32 1e-05, %v2688_v4 }
 0xfe8   :  { %2741 = vst [vmem:[%s4695_s4 + $0x10] sm:$0xff] %v2733_v29  ;;  %v2719_v62 = vmul.f32 %v2718_v15, %v2707_v46  ;;  %v2682_v53 = vpop.xlane.xlu0 %2681 }
 0xfe9   :  { %v3253_v22 = vpop.eup %3252  ;;  %v2722_v19 = vmul.f32 %v2718_v15, %v2710_v16  ;;  %3256 = vrsqrt.f32 %v2697_v28  ;;  %v2690_v24 = vmul.f32 0.0625, %v2682_v53 }
 0xfea   :  { %v2731_v32 = vadd.f32 %v2730_v57, %v2719_v62  ;;  %v2708_v61 = vmul.f32 %v3253_v22, %v4631_v17  ;;  %3258 = vrsqrt.f32 %v2696_v47 }
 0xfeb   :  { %v2734_v3 = vadd.f32 %v2730_v57, %v2722_v19  ;;  %v2698_v23 = vadd.f32 1e-05, %v2690_v24 }
 0xfec   :  { %2739 = vst [vmem:[%s4695_s4] sm:$0xff] %v2731_v32  ;;  %v2720_v38 = vmul.f32 %v2718_v15, %v2708_v61 }
 0xfed   :  { %2742 = vst [vmem:[%s4695_s4 + $0x18] sm:$0xff] %v2734_v3  ;;  %3260 = vrsqrt.f32 %v2698_v23 }
 0xfee   :  { %v2732_v1 = vadd.f32 %v2730_v57, %v2720_v38 }
 0xff0   :  { %2740 = vst [vmem:[%s4695_s4 + $0x8] sm:$0xff] %v2732_v1 }
 0xff2   :  { %v3255_v13 = vpop.eup %3254 }
 0xff3   :  { %v2711_v17 = vmul.f32 %v3255_v13, %v4636_v21 }
 0xff5   :  { %v2723_v54 = vmul.f32 %v2718_v15, %v2711_v17 }
 0xff6   :  { %v3257_v55 = vpop.eup %3256 }
 0xff7   :  { %v3259_v36 = vpop.eup %3258  ;;  %v2735_v11 = vadd.f32 %v2730_v57, %v2723_v54  ;;  %v2713_v6 = vmul.f32 %v3257_v55, %v4641_v42 }
 0xff8   :  { %v2712_v20 = vmul.f32 %v3259_v36, %v4644_v44 }
 0xff9   :  { %2743 = vst [vmem:[%s4695_s4 + $0x20] sm:$0xff] %v2735_v11  ;;  %v2725_v34 = vmul.f32 %v2718_v15, %v2713_v6 }
 0xffa   :  { %v3261_v8 = vpop.eup %3260  ;;  %v2724_v45 = vmul.f32 %v2718_v15, %v2712_v20 }
 0xffb   :  { %v2737_v10 = vadd.f32 %v2730_v57, %v2725_v34  ;;  %v2714_v59 = vmul.f32 %v3261_v8, %v4651_v41 }
 0xffc   :  { %v2736_v63 = vadd.f32 %v2730_v57, %v2724_v45 }
 0xffd   :  { %2745 = vst [vmem:[%s4695_s4 + $0x30] sm:$0xff] %v2737_v10  ;;  %v2726_v21 = vmul.f32 %v2718_v15, %v2714_v59 }
 0xffe   :  { %2744 = vst [vmem:[%s4695_s4 + $0x28] sm:$0xff] %v2736_v63 }
 0xfff   :  { %v2738_v42 = vadd.f32 %v2730_v57, %v2726_v21 }
0x1001   :  { %2746 = vst [vmem:[%s4695_s4 + $0x38] sm:$0xff] %v2738_v42 }

</bundles_post_ra>
